<compile_context>
chip_gen: v5e
topology: v5e:2x2
jax: 0.10.0
libtpu: 0.0.40
codegen_flags: <defaults>
</compile_context>

<pallas_src>
import math

import jax
import jax.numpy as jnp
from jax.experimental import pallas as pl
from jax.experimental.pallas import tpu as pltpu


# ----------------------------------------------------------------------------
# Kernel 1: fused ChebNet GCN stack — all 5 bands, all 4 layers, one grid step
#           per (ensemble model, batch element).
# ----------------------------------------------------------------------------
def _gcn_kernel(x_ref, a_ref, wi_ref, bi_ref, wh_ref, bh_ref, wo_ref, bo_ref, o_ref):
    # x_ref : [1, NB, N, Fin]        a_ref : [1, NB, N, N]
    # wi_ref: [1, NB, 3*Fin, H]      bi_ref: [1, NB, 1, H]
    # wh_ref: [1, NB*NH, 3*H, H]     bh_ref: [1, NB*NH, 1, H]
    # wo_ref: [1, NB, 3*H, Co]       bo_ref: [1, NB, 1, Co]
    # o_ref : [1, 1, N, NB*Co]   (lane-dense 5*32 = 160 wide output slab)
    num_bands = a_ref.shape[1]
    num_hidden = wh_ref.shape[1] // num_bands

    band_outs = []
    for band in range(num_bands):
        lap = a_ref[0, band]                                   # [N, N]

        def cheb_layer(h, w, b, relu):
            # Chebyshev recursion (K = 3) + fused Linear on the K-major concat.
            x0 = h
            x1 = jnp.dot(lap, x0, preferred_element_type=jnp.float32)
            x2 = 2.0 * jnp.dot(lap, x1, preferred_element_type=jnp.float32) - x0
            xc = jnp.concatenate([x0, x1, x2], axis=-1)        # [N, 3*F]
            y = jnp.dot(xc, w, preferred_element_type=jnp.float32) + b
            return jnp.maximum(y, 0.0) if relu else y

        h = cheb_layer(x_ref[0, band], wi_ref[0, band], bi_ref[0, band], True)
        for l in range(num_hidden):
            h = cheb_layer(h, wh_ref[0, band * num_hidden + l],
                           bh_ref[0, band * num_hidden + l], True)
        h = cheb_layer(h, wo_ref[0, band], bo_ref[0, band], False)
        band_outs.append(h)                                    # [N, Co]

    # Single lane-dense store of the concatenated per-band features.
    o_ref[0, 0] = jnp.concatenate(band_outs, axis=-1).astype(o_ref.dtype)


def gcn_forward_all(x_bands, A, packed):
    """x_bands: [B, 5, N, Fin], A: [B, 5, N, N] -> [M, B, N, 5*Co]."""
    B, NB, N, Fin = x_bands.shape
    M = packed["wi"].shape[0]
    H = packed["wi"].shape[-1]
    Co = packed["wo"].shape[-1]
    NH = packed["wh"].shape[1] // NB

    return pl.pallas_call(
        _gcn_kernel,
        out_shape=jax.ShapeDtypeStruct((M, B, N, NB * Co), jnp.float32),
        grid=(M, B),
        in_specs=[
            pl.BlockSpec((1, NB, N, Fin), lambda m, b: (b, 0, 0, 0)),
            pl.BlockSpec((1, NB, N, N), lambda m, b: (b, 0, 0, 0)),
            pl.BlockSpec((1, NB, 3 * Fin, H), lambda m, b: (m, 0, 0, 0)),
            pl.BlockSpec((1, NB, 1, H), lambda m, b: (m, 0, 0, 0)),
            pl.BlockSpec((1, NB * NH, 3 * H, H), lambda m, b: (m, 0, 0, 0)),
            pl.BlockSpec((1, NB * NH, 1, H), lambda m, b: (m, 0, 0, 0)),
            pl.BlockSpec((1, NB, 3 * H, Co), lambda m, b: (m, 0, 0, 0)),
            pl.BlockSpec((1, NB, 1, Co), lambda m, b: (m, 0, 0, 0)),
        ],
        out_specs=pl.BlockSpec((1, 1, N, NB * Co), lambda m, b: (m, b, 0, 0)),
        compiler_params=pltpu.CompilerParams(
            dimension_semantics=("parallel", "parallel")),
    )(x_bands, A, packed["wi"], packed["bi"], packed["wh"], packed["bh"],
      packed["wo"], packed["bo"])


# ----------------------------------------------------------------------------
# Kernel 2: fused tail — Conv1d(19->10,k=3) + global_mean_pool (folded into the
#           conv weights) + BatchNorm1d(158, training-mode batch stats) + FC.
#           One grid step per ensemble model (whole batch per step, BN needs it).
# ----------------------------------------------------------------------------
def _tail_kernel(g_ref, wtap_ref, bconv_ref, gamma_ref, beta_ref, fcw_ref, fcb_ref,
                 o_ref):
    # g_ref   : [1, B, N, L]  (L = 160)      wtap_ref: [1, K, N, 1]
    # bconv_ref: [1, 1, 1]                    gamma/beta: [1, 1, Lout]
    # fcw_ref : [1, Lout, C]                  fcb_ref  : [1, 1, C]
    # o_ref   : [1, B, C]
    B = g_ref.shape[1]
    K = wtap_ref.shape[1]
    Lout = gamma_ref.shape[-1]

    rows = []
    for b in range(B):
        x = g_ref[0, b]                                          # [N, L]
        taps = []
        for k in range(K):
            p = x * wtap_ref[0, k]                               # [N, L] * [N, 1]
            taps.append(jnp.sum(p, axis=0, keepdims=True))       # [1, L] (sublane reduce)
        # conv_out[l] = sum_k taps_k[l + k]  — shift/add on a single [1, L] row.
        rows.append(sum(taps[k][:, k:k + Lout] for k in range(K)))   # [1, Lout]

    feats = jnp.concatenate(rows, axis=0) + bconv_ref[0]         # [B, Lout]

    # BatchNorm1d, training mode: biased batch variance, eps=1e-5.
    mean = jnp.mean(feats, axis=0, keepdims=True)
    var = jnp.mean((feats - mean) ** 2, axis=0, keepdims=True)
    xn = (feats - mean) * jax.lax.rsqrt(var + 1e-5)
    xn = xn * gamma_ref[0] + beta_ref[0]

    o_ref[0] = (jnp.dot(xn, fcw_ref[0], preferred_element_type=jnp.float32)
                + fcb_ref[0]).astype(o_ref.dtype)


def tail_forward(gcn_out, packed):
    """gcn_out: [M, B, N, L] -> per-model logits [M, B, C]."""
    M, B, N, L = gcn_out.shape
    K = packed["wtap"].shape[1]
    Lout = packed["gamma"].shape[-1]
    C = packed["fcw"].shape[-1]

    return pl.pallas_call(
        _tail_kernel,
        out_shape=jax.ShapeDtypeStruct((M, B, C), jnp.float32),
        grid=(M,),
        in_specs=[
            pl.BlockSpec((1, B, N, L), lambda m: (m, 0, 0, 0)),
            pl.BlockSpec((1, K, N, 1), lambda m: (m, 0, 0, 0)),
            pl.BlockSpec((1, 1, 1), lambda m: (m, 0, 0)),
            pl.BlockSpec((1, 1, Lout), lambda m: (m, 0, 0)),
            pl.BlockSpec((1, 1, Lout), lambda m: (m, 0, 0)),
            pl.BlockSpec((1, Lout, C), lambda m: (m, 0, 0)),
            pl.BlockSpec((1, 1, C), lambda m: (m, 0, 0)),
        ],
        out_specs=pl.BlockSpec((1, B, C), lambda m: (m, 0, 0)),
        compiler_params=pltpu.CompilerParams(dimension_semantics=("parallel",)),
    )(gcn_out, packed["wtap"], packed["bconv"], packed["gamma"], packed["beta"],
      packed["fcw"], packed["fcb"])


# ----------------------------------------------------------------------------
# Parameter init (deterministic, PyTorch-default uniform(-1/sqrt(fan_in), +))
# ----------------------------------------------------------------------------
def _uniform(key, shape, bound):
    return jax.random.uniform(key, shape, jnp.float32, -bound, bound)


def init_linear(key, in_f, out_f):
    k1, k2 = jax.random.split(key)
    bound = 1.0 / math.sqrt(in_f)
    return _uniform(k1, (out_f, in_f), bound), _uniform(k2, (out_f,), bound)


def init_chebgcn(key, in_features, hidden, out_ch, k=3, num_hidden=2):
    keys = jax.random.split(key, num_hidden + 2)
    return {
        "input": init_linear(keys[0], in_features * k, hidden),
        "hidden": [init_linear(keys[1 + i], hidden * k, hidden) for i in range(num_hidden)],
        "output": init_linear(keys[-1], hidden * k, out_ch),
    }


def init_corr(key, in_features, num_classes):
    keys = jax.random.split(key, 8)
    gcns = [init_chebgcn(keys[i], in_features, 32, 32) for i in range(5)]
    conv_bound = 1.0 / math.sqrt(19 * 3)
    return {
        "gcns": gcns,
        "conv_w": _uniform(keys[5], (10, 19, 3), conv_bound),
        "conv_b": _uniform(keys[6], (10,), conv_bound),
        "bn_gamma": jnp.ones((158,), jnp.float32),
        "bn_beta": jnp.zeros((158,), jnp.float32),
        "fc": init_linear(keys[7], 158, num_classes),
    }


def init_ensemble(key, num_models, in_features, num_classes):
    return [init_corr(k, in_features, num_classes)
            for k in jax.random.split(key, num_models)]


# ----------------------------------------------------------------------------
# One-time packing: stack per-model / per-band weights, pre-transpose Linear
# weights, fold global_mean_pool into the conv filter.  Done ONCE, outside the
# per-forward wrappers.
# ----------------------------------------------------------------------------
def pack_ensemble(params_list, num_bands=5):
    def per_model(p):
        wi = jnp.stack([p["gcns"][b]["input"][0].T for b in range(num_bands)])
        bi = jnp.stack([p["gcns"][b]["input"][1][None, :] for b in range(num_bands)])
        # Hidden layers flattened to a single (band * layer) axis -> 4-D arrays.
        wh = jnp.concatenate(
            [jnp.stack([w.T for (w, _) in p["gcns"][b]["hidden"]]) for b in range(num_bands)],
            axis=0)
        bh = jnp.concatenate(
            [jnp.stack([bb[None, :] for (_, bb) in p["gcns"][b]["hidden"]])
             for b in range(num_bands)], axis=0)
        wo = jnp.stack([p["gcns"][b]["output"][0].T for b in range(num_bands)])
        bo = jnp.stack([p["gcns"][b]["output"][1][None, :] for b in range(num_bands)])
        # Mean over conv output channels commutes with the (linear) conv:
        # fold global_mean_pool into averaged conv weights / bias.
        w_mean = jnp.mean(p["conv_w"], axis=0)                 # [19, 3]
        wtap = jnp.transpose(w_mean)[:, :, None]               # [3, 19, 1]
        bconv = jnp.mean(p["conv_b"]).reshape(1, 1)            # [1, 1]
        return dict(
            wi=wi, bi=bi, wh=wh, bh=bh, wo=wo, bo=bo,
            wtap=wtap, bconv=bconv,
            gamma=p["bn_gamma"][None, :], beta=p["bn_beta"][None, :],
            fcw=p["fc"][0].T, fcb=p["fc"][1][None, :],
        )

    per = [per_model(p) for p in params_list]
    return {k: jnp.stack([pm[k] for pm in per], axis=0) for k in per[0]}


# ----------------------------------------------------------------------------
# Forward pass: 2 pallas_call launches per ensemble forward.
# ----------------------------------------------------------------------------
def ensemble_forward(x, A, packed):
    # x: [B, N, Fin, 5], A: [B, 5, N, N]
    x_bands = jnp.transpose(x, (0, 3, 1, 2))        # [B, 5, N, Fin] (one tiny transpose)
    g = gcn_forward_all(x_bands, A, packed)         # [M, B, N, 160]
    logits = tail_forward(g, packed)                # [M, B, num_classes]
    return jnp.mean(logits, axis=0)                 # ensemble average (sum / num_models)


# ----------------------------------------------------------------------------
if __name__ == "__main__":
    NUM_MODELS = 2
    IN_FEATURES = 16
    NUM_CLASSES = 4
    B, N, BANDS = 2, 19, 5

    root = jax.random.PRNGKey(0)
    kx, ka, kp = jax.random.split(root, 3)

    x = jax.random.normal(kx, (B, N, IN_FEATURES, BANDS), jnp.float32)
    A = jax.random.normal(ka, (B, BANDS, N, N), jnp.float32) * 0.2
    A = 0.5 * (A + jnp.swapaxes(A, -1, -2))         # symmetric Laplacian-like matrices

    params = init_ensemble(kp, NUM_MODELS, IN_FEATURES, NUM_CLASSES)
    packed = pack_ensemble(params)                  # one-time weight packing

    fwd = jax.jit(lambda x_, A_: ensemble_forward(x_, A_, packed))
    out = fwd(x, A)
    jax.block_until_ready(out)

    assert out.shape == (B, NUM_CLASSES), out.shape
    assert bool(jnp.all(jnp.isfinite(out)))
    print("KERNEL_OK")
</pallas_src>

<mosaic_0001>
module attributes {stable_mosaic.version = 11 : i64} {
  func.func @_gcn_kernel(%arg0: i32, %arg1: i32, %arg2: memref<1x5x19x16xf32, #tpu.memory_space<vmem>>, %arg3: memref<1x5x19x19xf32, #tpu.memory_space<vmem>>, %arg4: memref<1x5x48x32xf32, #tpu.memory_space<vmem>>, %arg5: memref<1x5x1x32xf32, #tpu.memory_space<vmem>>, %arg6: memref<1x10x96x32xf32, #tpu.memory_space<vmem>>, %arg7: memref<1x10x1x32xf32, #tpu.memory_space<vmem>>, %arg8: memref<1x5x96x32xf32, #tpu.memory_space<vmem>>, %arg9: memref<1x5x1x32xf32, #tpu.memory_space<vmem>>, %arg10: memref<1x1x19x160xf32, #tpu.memory_space<vmem>>) attributes {dimension_semantics = [#tpu.dimension_semantics<parallel>, #tpu.dimension_semantics<parallel>], iteration_bounds = array<i64: 2, 2>, scalar_prefetch = 0 : i64, scratch_operands = 0 : i64, tpu.core_type = #tpu.core_type<tc>, window_params = [{transform_indices = @transform_0, window_bounds = array<i64: 1, 5, 19, 16>}, {transform_indices = @transform_1, window_bounds = array<i64: 1, 5, 19, 19>}, {transform_indices = @transform_2, window_bounds = array<i64: 1, 5, 48, 32>}, {transform_indices = @transform_3, window_bounds = array<i64: 1, 5, 1, 32>}, {transform_indices = @transform_4, window_bounds = array<i64: 1, 10, 96, 32>}, {transform_indices = @transform_5, window_bounds = array<i64: 1, 10, 1, 32>}, {transform_indices = @transform_6, window_bounds = array<i64: 1, 5, 96, 32>}, {transform_indices = @transform_7, window_bounds = array<i64: 1, 5, 1, 32>}, {transform_indices = @transform_8, window_bounds = array<i64: 1, 1, 19, 160>}]} {
    %c0 = arith.constant 0 : index
    %c0_0 = arith.constant 0 : index
    %c0_1 = arith.constant 0 : index
    %c0_2 = arith.constant 0 : index
    %0 = vector.load %arg3[%c0, %c0_0, %c0_1, %c0_2] : memref<1x5x19x19xf32, #tpu.memory_space<vmem>>, vector<1x1x19x19xf32>
    %1 = vector.shape_cast %0 : vector<1x1x19x19xf32> to vector<19x19xf32>
    %c0_3 = arith.constant 0 : index
    %c0_4 = arith.constant 0 : index
    %c0_5 = arith.constant 0 : index
    %c0_6 = arith.constant 0 : index
    %2 = vector.load %arg2[%c0_3, %c0_4, %c0_5, %c0_6] : memref<1x5x19x16xf32, #tpu.memory_space<vmem>>, vector<1x1x19x16xf32>
    %3 = vector.shape_cast %2 : vector<1x1x19x16xf32> to vector<19x16xf32>
    %c0_7 = arith.constant 0 : index
    %c0_8 = arith.constant 0 : index
    %c0_9 = arith.constant 0 : index
    %c0_10 = arith.constant 0 : index
    %4 = vector.load %arg4[%c0_7, %c0_8, %c0_9, %c0_10] : memref<1x5x48x32xf32, #tpu.memory_space<vmem>>, vector<1x1x48x32xf32>
    %5 = vector.shape_cast %4 : vector<1x1x48x32xf32> to vector<48x32xf32>
    %c0_11 = arith.constant 0 : index
    %c0_12 = arith.constant 0 : index
    %c0_13 = arith.constant 0 : index
    %c0_14 = arith.constant 0 : index
    %6 = vector.load %arg5[%c0_11, %c0_12, %c0_13, %c0_14] : memref<1x5x1x32xf32, #tpu.memory_space<vmem>>, vector<1x1x1x32xf32>
    %7 = vector.shape_cast %6 : vector<1x1x1x32xf32> to vector<1x32xf32>
    %cst = arith.constant dense<0.000000e+00> : vector<19x16xf32>
    %8 = tpu.matmul %1, %3, %cst {dimension_numbers = #tpu.dot_dimension_numbers<[1], [0], [0], [1], [0, 0, 1, 1], [], []>} : vector<19x19xf32>, vector<19x16xf32>, vector<19x16xf32> -> vector<19x16xf32>
    %cst_15 = arith.constant dense<0.000000e+00> : vector<19x16xf32>
    %9 = tpu.matmul %1, %8, %cst_15 {dimension_numbers = #tpu.dot_dimension_numbers<[1], [0], [0], [1], [0, 0, 1, 1], [], []>} : vector<19x19xf32>, vector<19x16xf32>, vector<19x16xf32> -> vector<19x16xf32>
    %cst_16 = arith.constant 2.000000e+00 : f32
    %10 = vector.broadcast %cst_16 : f32 to vector<19x16xf32>
    %11 = arith.mulf %10, %9 : vector<19x16xf32>
    %12 = arith.subf %11, %3 : vector<19x16xf32>
    %13 = tpu.concatenate %3, %8, %12 in 1 : vector<19x16xf32>, vector<19x16xf32>, vector<19x16xf32> -> vector<19x48xf32>
    %cst_17 = arith.constant dense<0.000000e+00> : vector<19x32xf32>
    %14 = tpu.matmul %13, %5, %cst_17 {dimension_numbers = #tpu.dot_dimension_numbers<[1], [0], [0], [1], [0, 0, 1, 1], [], []>} : vector<19x48xf32>, vector<48x32xf32>, vector<19x32xf32> -> vector<19x32xf32>
    %15 = vector.broadcast %7 : vector<1x32xf32> to vector<19x32xf32>
    %16 = arith.addf %14, %15 : vector<19x32xf32>
    %cst_18 = arith.constant 0.000000e+00 : f32
    %17 = vector.broadcast %cst_18 : f32 to vector<19x32xf32>
    %18 = arith.maximumf %16, %17 : vector<19x32xf32>
    %c0_19 = arith.constant 0 : index
    %c0_20 = arith.constant 0 : index
    %c0_21 = arith.constant 0 : index
    %c0_22 = arith.constant 0 : index
    %19 = vector.load %arg6[%c0_19, %c0_20, %c0_21, %c0_22] : memref<1x10x96x32xf32, #tpu.memory_space<vmem>>, vector<1x1x96x32xf32>
    %20 = vector.shape_cast %19 : vector<1x1x96x32xf32> to vector<96x32xf32>
    %c0_23 = arith.constant 0 : index
    %c0_24 = arith.constant 0 : index
    %c0_25 = arith.constant 0 : index
    %c0_26 = arith.constant 0 : index
    %21 = vector.load %arg7[%c0_23, %c0_24, %c0_25, %c0_26] : memref<1x10x1x32xf32, #tpu.memory_space<vmem>>, vector<1x1x1x32xf32>
    %22 = vector.shape_cast %21 : vector<1x1x1x32xf32> to vector<1x32xf32>
    %cst_27 = arith.constant dense<0.000000e+00> : vector<19x32xf32>
    %23 = tpu.matmul %1, %18, %cst_27 {dimension_numbers = #tpu.dot_dimension_numbers<[1], [0], [0], [1], [0, 0, 1, 1], [], []>} : vector<19x19xf32>, vector<19x32xf32>, vector<19x32xf32> -> vector<19x32xf32>
    %cst_28 = arith.constant dense<0.000000e+00> : vector<19x32xf32>
    %24 = tpu.matmul %1, %23, %cst_28 {dimension_numbers = #tpu.dot_dimension_numbers<[1], [0], [0], [1], [0, 0, 1, 1], [], []>} : vector<19x19xf32>, vector<19x32xf32>, vector<19x32xf32> -> vector<19x32xf32>
    %cst_29 = arith.constant 2.000000e+00 : f32
    %25 = vector.broadcast %cst_29 : f32 to vector<19x32xf32>
    %26 = arith.mulf %25, %24 : vector<19x32xf32>
    %27 = arith.subf %26, %18 : vector<19x32xf32>
    %28 = tpu.concatenate %18, %23, %27 in 1 : vector<19x32xf32>, vector<19x32xf32>, vector<19x32xf32> -> vector<19x96xf32>
    %cst_30 = arith.constant dense<0.000000e+00> : vector<19x32xf32>
    %29 = tpu.matmul %28, %20, %cst_30 {dimension_numbers = #tpu.dot_dimension_numbers<[1], [0], [0], [1], [0, 0, 1, 1], [], []>} : vector<19x96xf32>, vector<96x32xf32>, vector<19x32xf32> -> vector<19x32xf32>
    %30 = vector.broadcast %22 : vector<1x32xf32> to vector<19x32xf32>
    %31 = arith.addf %29, %30 : vector<19x32xf32>
    %cst_31 = arith.constant 0.000000e+00 : f32
    %32 = vector.broadcast %cst_31 : f32 to vector<19x32xf32>
    %33 = arith.maximumf %31, %32 : vector<19x32xf32>
    %c0_32 = arith.constant 0 : index
    %c1 = arith.constant 1 : index
    %c0_33 = arith.constant 0 : index
    %c0_34 = arith.constant 0 : index
    %34 = vector.load %arg6[%c0_32, %c1, %c0_33, %c0_34] : memref<1x10x96x32xf32, #tpu.memory_space<vmem>>, vector<1x1x96x32xf32>
    %35 = vector.shape_cast %34 : vector<1x1x96x32xf32> to vector<96x32xf32>
    %c0_35 = arith.constant 0 : index
    %c1_36 = arith.constant 1 : index
    %c0_37 = arith.constant 0 : index
    %c0_38 = arith.constant 0 : index
    %36 = vector.load %arg7[%c0_35, %c1_36, %c0_37, %c0_38] : memref<1x10x1x32xf32, #tpu.memory_space<vmem>>, vector<1x1x1x32xf32>
    %37 = vector.shape_cast %36 : vector<1x1x1x32xf32> to vector<1x32xf32>
    %cst_39 = arith.constant dense<0.000000e+00> : vector<19x32xf32>
    %38 = tpu.matmul %1, %33, %cst_39 {dimension_numbers = #tpu.dot_dimension_numbers<[1], [0], [0], [1], [0, 0, 1, 1], [], []>} : vector<19x19xf32>, vector<19x32xf32>, vector<19x32xf32> -> vector<19x32xf32>
    %cst_40 = arith.constant dense<0.000000e+00> : vector<19x32xf32>
    %39 = tpu.matmul %1, %38, %cst_40 {dimension_numbers = #tpu.dot_dimension_numbers<[1], [0], [0], [1], [0, 0, 1, 1], [], []>} : vector<19x19xf32>, vector<19x32xf32>, vector<19x32xf32> -> vector<19x32xf32>
    %cst_41 = arith.constant 2.000000e+00 : f32
    %40 = vector.broadcast %cst_41 : f32 to vector<19x32xf32>
    %41 = arith.mulf %40, %39 : vector<19x32xf32>
    %42 = arith.subf %41, %33 : vector<19x32xf32>
    %43 = tpu.concatenate %33, %38, %42 in 1 : vector<19x32xf32>, vector<19x32xf32>, vector<19x32xf32> -> vector<19x96xf32>
    %cst_42 = arith.constant dense<0.000000e+00> : vector<19x32xf32>
    %44 = tpu.matmul %43, %35, %cst_42 {dimension_numbers = #tpu.dot_dimension_numbers<[1], [0], [0], [1], [0, 0, 1, 1], [], []>} : vector<19x96xf32>, vector<96x32xf32>, vector<19x32xf32> -> vector<19x32xf32>
    %45 = vector.broadcast %37 : vector<1x32xf32> to vector<19x32xf32>
    %46 = arith.addf %44, %45 : vector<19x32xf32>
    %cst_43 = arith.constant 0.000000e+00 : f32
    %47 = vector.broadcast %cst_43 : f32 to vector<19x32xf32>
    %48 = arith.maximumf %46, %47 : vector<19x32xf32>
    %c0_44 = arith.constant 0 : index
    %c0_45 = arith.constant 0 : index
    %c0_46 = arith.constant 0 : index
    %c0_47 = arith.constant 0 : index
    %49 = vector.load %arg8[%c0_44, %c0_45, %c0_46, %c0_47] : memref<1x5x96x32xf32, #tpu.memory_space<vmem>>, vector<1x1x96x32xf32>
    %50 = vector.shape_cast %49 : vector<1x1x96x32xf32> to vector<96x32xf32>
    %c0_48 = arith.constant 0 : index
    %c0_49 = arith.constant 0 : index
    %c0_50 = arith.constant 0 : index
    %c0_51 = arith.constant 0 : index
    %51 = vector.load %arg9[%c0_48, %c0_49, %c0_50, %c0_51] : memref<1x5x1x32xf32, #tpu.memory_space<vmem>>, vector<1x1x1x32xf32>
    %52 = vector.shape_cast %51 : vector<1x1x1x32xf32> to vector<1x32xf32>
    %cst_52 = arith.constant dense<0.000000e+00> : vector<19x32xf32>
    %53 = tpu.matmul %1, %48, %cst_52 {dimension_numbers = #tpu.dot_dimension_numbers<[1], [0], [0], [1], [0, 0, 1, 1], [], []>} : vector<19x19xf32>, vector<19x32xf32>, vector<19x32xf32> -> vector<19x32xf32>
    %cst_53 = arith.constant dense<0.000000e+00> : vector<19x32xf32>
    %54 = tpu.matmul %1, %53, %cst_53 {dimension_numbers = #tpu.dot_dimension_numbers<[1], [0], [0], [1], [0, 0, 1, 1], [], []>} : vector<19x19xf32>, vector<19x32xf32>, vector<19x32xf32> -> vector<19x32xf32>
    %cst_54 = arith.constant 2.000000e+00 : f32
    %55 = vector.broadcast %cst_54 : f32 to vector<19x32xf32>
    %56 = arith.mulf %55, %54 : vector<19x32xf32>
    %57 = arith.subf %56, %48 : vector<19x32xf32>
    %58 = tpu.concatenate %48, %53, %57 in 1 : vector<19x32xf32>, vector<19x32xf32>, vector<19x32xf32> -> vector<19x96xf32>
    %cst_55 = arith.constant dense<0.000000e+00> : vector<19x32xf32>
    %59 = tpu.matmul %58, %50, %cst_55 {dimension_numbers = #tpu.dot_dimension_numbers<[1], [0], [0], [1], [0, 0, 1, 1], [], []>} : vector<19x96xf32>, vector<96x32xf32>, vector<19x32xf32> -> vector<19x32xf32>
    %60 = vector.broadcast %52 : vector<1x32xf32> to vector<19x32xf32>
    %61 = arith.addf %59, %60 : vector<19x32xf32>
    %c0_56 = arith.constant 0 : index
    %c1_57 = arith.constant 1 : index
    %c0_58 = arith.constant 0 : index
    %c0_59 = arith.constant 0 : index
    %62 = vector.load %arg3[%c0_56, %c1_57, %c0_58, %c0_59] : memref<1x5x19x19xf32, #tpu.memory_space<vmem>>, vector<1x1x19x19xf32>
    %63 = vector.shape_cast %62 : vector<1x1x19x19xf32> to vector<19x19xf32>
    %c0_60 = arith.constant 0 : index
    %c1_61 = arith.constant 1 : index
    %c0_62 = arith.constant 0 : index
    %c0_63 = arith.constant 0 : index
    %64 = vector.load %arg2[%c0_60, %c1_61, %c0_62, %c0_63] : memref<1x5x19x16xf32, #tpu.memory_space<vmem>>, vector<1x1x19x16xf32>
    %65 = vector.shape_cast %64 : vector<1x1x19x16xf32> to vector<19x16xf32>
    %c0_64 = arith.constant 0 : index
    %c1_65 = arith.constant 1 : index
    %c0_66 = arith.constant 0 : index
    %c0_67 = arith.constant 0 : index
    %66 = vector.load %arg4[%c0_64, %c1_65, %c0_66, %c0_67] : memref<1x5x48x32xf32, #tpu.memory_space<vmem>>, vector<1x1x48x32xf32>
    %67 = vector.shape_cast %66 : vector<1x1x48x32xf32> to vector<48x32xf32>
    %c0_68 = arith.constant 0 : index
    %c1_69 = arith.constant 1 : index
    %c0_70 = arith.constant 0 : index
    %c0_71 = arith.constant 0 : index
    %68 = vector.load %arg5[%c0_68, %c1_69, %c0_70, %c0_71] : memref<1x5x1x32xf32, #tpu.memory_space<vmem>>, vector<1x1x1x32xf32>
    %69 = vector.shape_cast %68 : vector<1x1x1x32xf32> to vector<1x32xf32>
    %cst_72 = arith.constant dense<0.000000e+00> : vector<19x16xf32>
    %70 = tpu.matmul %63, %65, %cst_72 {dimension_numbers = #tpu.dot_dimension_numbers<[1], [0], [0], [1], [0, 0, 1, 1], [], []>} : vector<19x19xf32>, vector<19x16xf32>, vector<19x16xf32> -> vector<19x16xf32>
    %cst_73 = arith.constant dense<0.000000e+00> : vector<19x16xf32>
    %71 = tpu.matmul %63, %70, %cst_73 {dimension_numbers = #tpu.dot_dimension_numbers<[1], [0], [0], [1], [0, 0, 1, 1], [], []>} : vector<19x19xf32>, vector<19x16xf32>, vector<19x16xf32> -> vector<19x16xf32>
    %cst_74 = arith.constant 2.000000e+00 : f32
    %72 = vector.broadcast %cst_74 : f32 to vector<19x16xf32>
    %73 = arith.mulf %72, %71 : vector<19x16xf32>
    %74 = arith.subf %73, %65 : vector<19x16xf32>
    %75 = tpu.concatenate %65, %70, %74 in 1 : vector<19x16xf32>, vector<19x16xf32>, vector<19x16xf32> -> vector<19x48xf32>
    %cst_75 = arith.constant dense<0.000000e+00> : vector<19x32xf32>
    %76 = tpu.matmul %75, %67, %cst_75 {dimension_numbers = #tpu.dot_dimension_numbers<[1], [0], [0], [1], [0, 0, 1, 1], [], []>} : vector<19x48xf32>, vector<48x32xf32>, vector<19x32xf32> -> vector<19x32xf32>
    %77 = vector.broadcast %69 : vector<1x32xf32> to vector<19x32xf32>
    %78 = arith.addf %76, %77 : vector<19x32xf32>
    %cst_76 = arith.constant 0.000000e+00 : f32
    %79 = vector.broadcast %cst_76 : f32 to vector<19x32xf32>
    %80 = arith.maximumf %78, %79 : vector<19x32xf32>
    %c0_77 = arith.constant 0 : index
    %c2 = arith.constant 2 : index
    %c0_78 = arith.constant 0 : index
    %c0_79 = arith.constant 0 : index
    %81 = vector.load %arg6[%c0_77, %c2, %c0_78, %c0_79] : memref<1x10x96x32xf32, #tpu.memory_space<vmem>>, vector<1x1x96x32xf32>
    %82 = vector.shape_cast %81 : vector<1x1x96x32xf32> to vector<96x32xf32>
    %c0_80 = arith.constant 0 : index
    %c2_81 = arith.constant 2 : index
    %c0_82 = arith.constant 0 : index
    %c0_83 = arith.constant 0 : index
    %83 = vector.load %arg7[%c0_80, %c2_81, %c0_82, %c0_83] : memref<1x10x1x32xf32, #tpu.memory_space<vmem>>, vector<1x1x1x32xf32>
    %84 = vector.shape_cast %83 : vector<1x1x1x32xf32> to vector<1x32xf32>
    %cst_84 = arith.constant dense<0.000000e+00> : vector<19x32xf32>
    %85 = tpu.matmul %63, %80, %cst_84 {dimension_numbers = #tpu.dot_dimension_numbers<[1], [0], [0], [1], [0, 0, 1, 1], [], []>} : vector<19x19xf32>, vector<19x32xf32>, vector<19x32xf32> -> vector<19x32xf32>
    %cst_85 = arith.constant dense<0.000000e+00> : vector<19x32xf32>
    %86 = tpu.matmul %63, %85, %cst_85 {dimension_numbers = #tpu.dot_dimension_numbers<[1], [0], [0], [1], [0, 0, 1, 1], [], []>} : vector<19x19xf32>, vector<19x32xf32>, vector<19x32xf32> -> vector<19x32xf32>
    %cst_86 = arith.constant 2.000000e+00 : f32
    %87 = vector.broadcast %cst_86 : f32 to vector<19x32xf32>
    %88 = arith.mulf %87, %86 : vector<19x32xf32>
    %89 = arith.subf %88, %80 : vector<19x32xf32>
    %90 = tpu.concatenate %80, %85, %89 in 1 : vector<19x32xf32>, vector<19x32xf32>, vector<19x32xf32> -> vector<19x96xf32>
    %cst_87 = arith.constant dense<0.000000e+00> : vector<19x32xf32>
    %91 = tpu.matmul %90, %82, %cst_87 {dimension_numbers = #tpu.dot_dimension_numbers<[1], [0], [0], [1], [0, 0, 1, 1], [], []>} : vector<19x96xf32>, vector<96x32xf32>, vector<19x32xf32> -> vector<19x32xf32>
    %92 = vector.broadcast %84 : vector<1x32xf32> to vector<19x32xf32>
    %93 = arith.addf %91, %92 : vector<19x32xf32>
    %cst_88 = arith.constant 0.000000e+00 : f32
    %94 = vector.broadcast %cst_88 : f32 to vector<19x32xf32>
    %95 = arith.maximumf %93, %94 : vector<19x32xf32>
    %c0_89 = arith.constant 0 : index
    %c3 = arith.constant 3 : index
    %c0_90 = arith.constant 0 : index
    %c0_91 = arith.constant 0 : index
    %96 = vector.load %arg6[%c0_89, %c3, %c0_90, %c0_91] : memref<1x10x96x32xf32, #tpu.memory_space<vmem>>, vector<1x1x96x32xf32>
    %97 = vector.shape_cast %96 : vector<1x1x96x32xf32> to vector<96x32xf32>
    %c0_92 = arith.constant 0 : index
    %c3_93 = arith.constant 3 : index
    %c0_94 = arith.constant 0 : index
    %c0_95 = arith.constant 0 : index
    %98 = vector.load %arg7[%c0_92, %c3_93, %c0_94, %c0_95] : memref<1x10x1x32xf32, #tpu.memory_space<vmem>>, vector<1x1x1x32xf32>
    %99 = vector.shape_cast %98 : vector<1x1x1x32xf32> to vector<1x32xf32>
    %cst_96 = arith.constant dense<0.000000e+00> : vector<19x32xf32>
    %100 = tpu.matmul %63, %95, %cst_96 {dimension_numbers = #tpu.dot_dimension_numbers<[1], [0], [0], [1], [0, 0, 1, 1], [], []>} : vector<19x19xf32>, vector<19x32xf32>, vector<19x32xf32> -> vector<19x32xf32>
    %cst_97 = arith.constant dense<0.000000e+00> : vector<19x32xf32>
    %101 = tpu.matmul %63, %100, %cst_97 {dimension_numbers = #tpu.dot_dimension_numbers<[1], [0], [0], [1], [0, 0, 1, 1], [], []>} : vector<19x19xf32>, vector<19x32xf32>, vector<19x32xf32> -> vector<19x32xf32>
    %cst_98 = arith.constant 2.000000e+00 : f32
    %102 = vector.broadcast %cst_98 : f32 to vector<19x32xf32>
    %103 = arith.mulf %102, %101 : vector<19x32xf32>
    %104 = arith.subf %103, %95 : vector<19x32xf32>
    %105 = tpu.concatenate %95, %100, %104 in 1 : vector<19x32xf32>, vector<19x32xf32>, vector<19x32xf32> -> vector<19x96xf32>
    %cst_99 = arith.constant dense<0.000000e+00> : vector<19x32xf32>
    %106 = tpu.matmul %105, %97, %cst_99 {dimension_numbers = #tpu.dot_dimension_numbers<[1], [0], [0], [1], [0, 0, 1, 1], [], []>} : vector<19x96xf32>, vector<96x32xf32>, vector<19x32xf32> -> vector<19x32xf32>
    %107 = vector.broadcast %99 : vector<1x32xf32> to vector<19x32xf32>
    %108 = arith.addf %106, %107 : vector<19x32xf32>
    %cst_100 = arith.constant 0.000000e+00 : f32
    %109 = vector.broadcast %cst_100 : f32 to vector<19x32xf32>
    %110 = arith.maximumf %108, %109 : vector<19x32xf32>
    %c0_101 = arith.constant 0 : index
    %c1_102 = arith.constant 1 : index
    %c0_103 = arith.constant 0 : index
    %c0_104 = arith.constant 0 : index
    %111 = vector.load %arg8[%c0_101, %c1_102, %c0_103, %c0_104] : memref<1x5x96x32xf32, #tpu.memory_space<vmem>>, vector<1x1x96x32xf32>
    %112 = vector.shape_cast %111 : vector<1x1x96x32xf32> to vector<96x32xf32>
    %c0_105 = arith.constant 0 : index
    %c1_106 = arith.constant 1 : index
    %c0_107 = arith.constant 0 : index
    %c0_108 = arith.constant 0 : index
    %113 = vector.load %arg9[%c0_105, %c1_106, %c0_107, %c0_108] : memref<1x5x1x32xf32, #tpu.memory_space<vmem>>, vector<1x1x1x32xf32>
    %114 = vector.shape_cast %113 : vector<1x1x1x32xf32> to vector<1x32xf32>
    %cst_109 = arith.constant dense<0.000000e+00> : vector<19x32xf32>
    %115 = tpu.matmul %63, %110, %cst_109 {dimension_numbers = #tpu.dot_dimension_numbers<[1], [0], [0], [1], [0, 0, 1, 1], [], []>} : vector<19x19xf32>, vector<19x32xf32>, vector<19x32xf32> -> vector<19x32xf32>
    %cst_110 = arith.constant dense<0.000000e+00> : vector<19x32xf32>
    %116 = tpu.matmul %63, %115, %cst_110 {dimension_numbers = #tpu.dot_dimension_numbers<[1], [0], [0], [1], [0, 0, 1, 1], [], []>} : vector<19x19xf32>, vector<19x32xf32>, vector<19x32xf32> -> vector<19x32xf32>
    %cst_111 = arith.constant 2.000000e+00 : f32
    %117 = vector.broadcast %cst_111 : f32 to vector<19x32xf32>
    %118 = arith.mulf %117, %116 : vector<19x32xf32>
    %119 = arith.subf %118, %110 : vector<19x32xf32>
    %120 = tpu.concatenate %110, %115, %119 in 1 : vector<19x32xf32>, vector<19x32xf32>, vector<19x32xf32> -> vector<19x96xf32>
    %cst_112 = arith.constant dense<0.000000e+00> : vector<19x32xf32>
    %121 = tpu.matmul %120, %112, %cst_112 {dimension_numbers = #tpu.dot_dimension_numbers<[1], [0], [0], [1], [0, 0, 1, 1], [], []>} : vector<19x96xf32>, vector<96x32xf32>, vector<19x32xf32> -> vector<19x32xf32>
    %122 = vector.broadcast %114 : vector<1x32xf32> to vector<19x32xf32>
    %123 = arith.addf %121, %122 : vector<19x32xf32>
    %c0_113 = arith.constant 0 : index
    %c2_114 = arith.constant 2 : index
    %c0_115 = arith.constant 0 : index
    %c0_116 = arith.constant 0 : index
    %124 = vector.load %arg3[%c0_113, %c2_114, %c0_115, %c0_116] : memref<1x5x19x19xf32, #tpu.memory_space<vmem>>, vector<1x1x19x19xf32>
    %125 = vector.shape_cast %124 : vector<1x1x19x19xf32> to vector<19x19xf32>
    %c0_117 = arith.constant 0 : index
    %c2_118 = arith.constant 2 : index
    %c0_119 = arith.constant 0 : index
    %c0_120 = arith.constant 0 : index
    %126 = vector.load %arg2[%c0_117, %c2_118, %c0_119, %c0_120] : memref<1x5x19x16xf32, #tpu.memory_space<vmem>>, vector<1x1x19x16xf32>
    %127 = vector.shape_cast %126 : vector<1x1x19x16xf32> to vector<19x16xf32>
    %c0_121 = arith.constant 0 : index
    %c2_122 = arith.constant 2 : index
    %c0_123 = arith.constant 0 : index
    %c0_124 = arith.constant 0 : index
    %128 = vector.load %arg4[%c0_121, %c2_122, %c0_123, %c0_124] : memref<1x5x48x32xf32, #tpu.memory_space<vmem>>, vector<1x1x48x32xf32>
    %129 = vector.shape_cast %128 : vector<1x1x48x32xf32> to vector<48x32xf32>
    %c0_125 = arith.constant 0 : index
    %c2_126 = arith.constant 2 : index
    %c0_127 = arith.constant 0 : index
    %c0_128 = arith.constant 0 : index
    %130 = vector.load %arg5[%c0_125, %c2_126, %c0_127, %c0_128] : memref<1x5x1x32xf32, #tpu.memory_space<vmem>>, vector<1x1x1x32xf32>
    %131 = vector.shape_cast %130 : vector<1x1x1x32xf32> to vector<1x32xf32>
    %cst_129 = arith.constant dense<0.000000e+00> : vector<19x16xf32>
    %132 = tpu.matmul %125, %127, %cst_129 {dimension_numbers = #tpu.dot_dimension_numbers<[1], [0], [0], [1], [0, 0, 1, 1], [], []>} : vector<19x19xf32>, vector<19x16xf32>, vector<19x16xf32> -> vector<19x16xf32>
    %cst_130 = arith.constant dense<0.000000e+00> : vector<19x16xf32>
    %133 = tpu.matmul %125, %132, %cst_130 {dimension_numbers = #tpu.dot_dimension_numbers<[1], [0], [0], [1], [0, 0, 1, 1], [], []>} : vector<19x19xf32>, vector<19x16xf32>, vector<19x16xf32> -> vector<19x16xf32>
    %cst_131 = arith.constant 2.000000e+00 : f32
    %134 = vector.broadcast %cst_131 : f32 to vector<19x16xf32>
    %135 = arith.mulf %134, %133 : vector<19x16xf32>
    %136 = arith.subf %135, %127 : vector<19x16xf32>
    %137 = tpu.concatenate %127, %132, %136 in 1 : vector<19x16xf32>, vector<19x16xf32>, vector<19x16xf32> -> vector<19x48xf32>
    %cst_132 = arith.constant dense<0.000000e+00> : vector<19x32xf32>
    %138 = tpu.matmul %137, %129, %cst_132 {dimension_numbers = #tpu.dot_dimension_numbers<[1], [0], [0], [1], [0, 0, 1, 1], [], []>} : vector<19x48xf32>, vector<48x32xf32>, vector<19x32xf32> -> vector<19x32xf32>
    %139 = vector.broadcast %131 : vector<1x32xf32> to vector<19x32xf32>
    %140 = arith.addf %138, %139 : vector<19x32xf32>
    %cst_133 = arith.constant 0.000000e+00 : f32
    %141 = vector.broadcast %cst_133 : f32 to vector<19x32xf32>
    %142 = arith.maximumf %140, %141 : vector<19x32xf32>
    %c0_134 = arith.constant 0 : index
    %c4 = arith.constant 4 : index
    %c0_135 = arith.constant 0 : index
    %c0_136 = arith.constant 0 : index
    %143 = vector.load %arg6[%c0_134, %c4, %c0_135, %c0_136] : memref<1x10x96x32xf32, #tpu.memory_space<vmem>>, vector<1x1x96x32xf32>
    %144 = vector.shape_cast %143 : vector<1x1x96x32xf32> to vector<96x32xf32>
    %c0_137 = arith.constant 0 : index
    %c4_138 = arith.constant 4 : index
    %c0_139 = arith.constant 0 : index
    %c0_140 = arith.constant 0 : index
    %145 = vector.load %arg7[%c0_137, %c4_138, %c0_139, %c0_140] : memref<1x10x1x32xf32, #tpu.memory_space<vmem>>, vector<1x1x1x32xf32>
    %146 = vector.shape_cast %145 : vector<1x1x1x32xf32> to vector<1x32xf32>
    %cst_141 = arith.constant dense<0.000000e+00> : vector<19x32xf32>
    %147 = tpu.matmul %125, %142, %cst_141 {dimension_numbers = #tpu.dot_dimension_numbers<[1], [0], [0], [1], [0, 0, 1, 1], [], []>} : vector<19x19xf32>, vector<19x32xf32>, vector<19x32xf32> -> vector<19x32xf32>
    %cst_142 = arith.constant dense<0.000000e+00> : vector<19x32xf32>
    %148 = tpu.matmul %125, %147, %cst_142 {dimension_numbers = #tpu.dot_dimension_numbers<[1], [0], [0], [1], [0, 0, 1, 1], [], []>} : vector<19x19xf32>, vector<19x32xf32>, vector<19x32xf32> -> vector<19x32xf32>
    %cst_143 = arith.constant 2.000000e+00 : f32
    %149 = vector.broadcast %cst_143 : f32 to vector<19x32xf32>
    %150 = arith.mulf %149, %148 : vector<19x32xf32>
    %151 = arith.subf %150, %142 : vector<19x32xf32>
    %152 = tpu.concatenate %142, %147, %151 in 1 : vector<19x32xf32>, vector<19x32xf32>, vector<19x32xf32> -> vector<19x96xf32>
    %cst_144 = arith.constant dense<0.000000e+00> : vector<19x32xf32>
    %153 = tpu.matmul %152, %144, %cst_144 {dimension_numbers = #tpu.dot_dimension_numbers<[1], [0], [0], [1], [0, 0, 1, 1], [], []>} : vector<19x96xf32>, vector<96x32xf32>, vector<19x32xf32> -> vector<19x32xf32>
    %154 = vector.broadcast %146 : vector<1x32xf32> to vector<19x32xf32>
    %155 = arith.addf %153, %154 : vector<19x32xf32>
    %cst_145 = arith.constant 0.000000e+00 : f32
    %156 = vector.broadcast %cst_145 : f32 to vector<19x32xf32>
    %157 = arith.maximumf %155, %156 : vector<19x32xf32>
    %c0_146 = arith.constant 0 : index
    %c5 = arith.constant 5 : index
    %c0_147 = arith.constant 0 : index
    %c0_148 = arith.constant 0 : index
    %158 = vector.load %arg6[%c0_146, %c5, %c0_147, %c0_148] : memref<1x10x96x32xf32, #tpu.memory_space<vmem>>, vector<1x1x96x32xf32>
    %159 = vector.shape_cast %158 : vector<1x1x96x32xf32> to vector<96x32xf32>
    %c0_149 = arith.constant 0 : index
    %c5_150 = arith.constant 5 : index
    %c0_151 = arith.constant 0 : index
    %c0_152 = arith.constant 0 : index
    %160 = vector.load %arg7[%c0_149, %c5_150, %c0_151, %c0_152] : memref<1x10x1x32xf32, #tpu.memory_space<vmem>>, vector<1x1x1x32xf32>
    %161 = vector.shape_cast %160 : vector<1x1x1x32xf32> to vector<1x32xf32>
    %cst_153 = arith.constant dense<0.000000e+00> : vector<19x32xf32>
    %162 = tpu.matmul %125, %157, %cst_153 {dimension_numbers = #tpu.dot_dimension_numbers<[1], [0], [0], [1], [0, 0, 1, 1], [], []>} : vector<19x19xf32>, vector<19x32xf32>, vector<19x32xf32> -> vector<19x32xf32>
    %cst_154 = arith.constant dense<0.000000e+00> : vector<19x32xf32>
    %163 = tpu.matmul %125, %162, %cst_154 {dimension_numbers = #tpu.dot_dimension_numbers<[1], [0], [0], [1], [0, 0, 1, 1], [], []>} : vector<19x19xf32>, vector<19x32xf32>, vector<19x32xf32> -> vector<19x32xf32>
    %cst_155 = arith.constant 2.000000e+00 : f32
    %164 = vector.broadcast %cst_155 : f32 to vector<19x32xf32>
    %165 = arith.mulf %164, %163 : vector<19x32xf32>
    %166 = arith.subf %165, %157 : vector<19x32xf32>
    %167 = tpu.concatenate %157, %162, %166 in 1 : vector<19x32xf32>, vector<19x32xf32>, vector<19x32xf32> -> vector<19x96xf32>
    %cst_156 = arith.constant dense<0.000000e+00> : vector<19x32xf32>
    %168 = tpu.matmul %167, %159, %cst_156 {dimension_numbers = #tpu.dot_dimension_numbers<[1], [0], [0], [1], [0, 0, 1, 1], [], []>} : vector<19x96xf32>, vector<96x32xf32>, vector<19x32xf32> -> vector<19x32xf32>
    %169 = vector.broadcast %161 : vector<1x32xf32> to vector<19x32xf32>
    %170 = arith.addf %168, %169 : vector<19x32xf32>
    %cst_157 = arith.constant 0.000000e+00 : f32
    %171 = vector.broadcast %cst_157 : f32 to vector<19x32xf32>
    %172 = arith.maximumf %170, %171 : vector<19x32xf32>
    %c0_158 = arith.constant 0 : index
    %c2_159 = arith.constant 2 : index
    %c0_160 = arith.constant 0 : index
    %c0_161 = arith.constant 0 : index
    %173 = vector.load %arg8[%c0_158, %c2_159, %c0_160, %c0_161] : memref<1x5x96x32xf32, #tpu.memory_space<vmem>>, vector<1x1x96x32xf32>
    %174 = vector.shape_cast %173 : vector<1x1x96x32xf32> to vector<96x32xf32>
    %c0_162 = arith.constant 0 : index
    %c2_163 = arith.constant 2 : index
    %c0_164 = arith.constant 0 : index
    %c0_165 = arith.constant 0 : index
    %175 = vector.load %arg9[%c0_162, %c2_163, %c0_164, %c0_165] : memref<1x5x1x32xf32, #tpu.memory_space<vmem>>, vector<1x1x1x32xf32>
    %176 = vector.shape_cast %175 : vector<1x1x1x32xf32> to vector<1x32xf32>
    %cst_166 = arith.constant dense<0.000000e+00> : vector<19x32xf32>
    %177 = tpu.matmul %125, %172, %cst_166 {dimension_numbers = #tpu.dot_dimension_numbers<[1], [0], [0], [1], [0, 0, 1, 1], [], []>} : vector<19x19xf32>, vector<19x32xf32>, vector<19x32xf32> -> vector<19x32xf32>
    %cst_167 = arith.constant dense<0.000000e+00> : vector<19x32xf32>
    %178 = tpu.matmul %125, %177, %cst_167 {dimension_numbers = #tpu.dot_dimension_numbers<[1], [0], [0], [1], [0, 0, 1, 1], [], []>} : vector<19x19xf32>, vector<19x32xf32>, vector<19x32xf32> -> vector<19x32xf32>
    %cst_168 = arith.constant 2.000000e+00 : f32
    %179 = vector.broadcast %cst_168 : f32 to vector<19x32xf32>
    %180 = arith.mulf %179, %178 : vector<19x32xf32>
    %181 = arith.subf %180, %172 : vector<19x32xf32>
    %182 = tpu.concatenate %172, %177, %181 in 1 : vector<19x32xf32>, vector<19x32xf32>, vector<19x32xf32> -> vector<19x96xf32>
    %cst_169 = arith.constant dense<0.000000e+00> : vector<19x32xf32>
    %183 = tpu.matmul %182, %174, %cst_169 {dimension_numbers = #tpu.dot_dimension_numbers<[1], [0], [0], [1], [0, 0, 1, 1], [], []>} : vector<19x96xf32>, vector<96x32xf32>, vector<19x32xf32> -> vector<19x32xf32>
    %184 = vector.broadcast %176 : vector<1x32xf32> to vector<19x32xf32>
    %185 = arith.addf %183, %184 : vector<19x32xf32>
    %c0_170 = arith.constant 0 : index
    %c3_171 = arith.constant 3 : index
    %c0_172 = arith.constant 0 : index
    %c0_173 = arith.constant 0 : index
    %186 = vector.load %arg3[%c0_170, %c3_171, %c0_172, %c0_173] : memref<1x5x19x19xf32, #tpu.memory_space<vmem>>, vector<1x1x19x19xf32>
    %187 = vector.shape_cast %186 : vector<1x1x19x19xf32> to vector<19x19xf32>
    %c0_174 = arith.constant 0 : index
    %c3_175 = arith.constant 3 : index
    %c0_176 = arith.constant 0 : index
    %c0_177 = arith.constant 0 : index
    %188 = vector.load %arg2[%c0_174, %c3_175, %c0_176, %c0_177] : memref<1x5x19x16xf32, #tpu.memory_space<vmem>>, vector<1x1x19x16xf32>
    %189 = vector.shape_cast %188 : vector<1x1x19x16xf32> to vector<19x16xf32>
    %c0_178 = arith.constant 0 : index
    %c3_179 = arith.constant 3 : index
    %c0_180 = arith.constant 0 : index
    %c0_181 = arith.constant 0 : index
    %190 = vector.load %arg4[%c0_178, %c3_179, %c0_180, %c0_181] : memref<1x5x48x32xf32, #tpu.memory_space<vmem>>, vector<1x1x48x32xf32>
    %191 = vector.shape_cast %190 : vector<1x1x48x32xf32> to vector<48x32xf32>
    %c0_182 = arith.constant 0 : index
    %c3_183 = arith.constant 3 : index
    %c0_184 = arith.constant 0 : index
    %c0_185 = arith.constant 0 : index
    %192 = vector.load %arg5[%c0_182, %c3_183, %c0_184, %c0_185] : memref<1x5x1x32xf32, #tpu.memory_space<vmem>>, vector<1x1x1x32xf32>
    %193 = vector.shape_cast %192 : vector<1x1x1x32xf32> to vector<1x32xf32>
    %cst_186 = arith.constant dense<0.000000e+00> : vector<19x16xf32>
    %194 = tpu.matmul %187, %189, %cst_186 {dimension_numbers = #tpu.dot_dimension_numbers<[1], [0], [0], [1], [0, 0, 1, 1], [], []>} : vector<19x19xf32>, vector<19x16xf32>, vector<19x16xf32> -> vector<19x16xf32>
    %cst_187 = arith.constant dense<0.000000e+00> : vector<19x16xf32>
    %195 = tpu.matmul %187, %194, %cst_187 {dimension_numbers = #tpu.dot_dimension_numbers<[1], [0], [0], [1], [0, 0, 1, 1], [], []>} : vector<19x19xf32>, vector<19x16xf32>, vector<19x16xf32> -> vector<19x16xf32>
    %cst_188 = arith.constant 2.000000e+00 : f32
    %196 = vector.broadcast %cst_188 : f32 to vector<19x16xf32>
    %197 = arith.mulf %196, %195 : vector<19x16xf32>
    %198 = arith.subf %197, %189 : vector<19x16xf32>
    %199 = tpu.concatenate %189, %194, %198 in 1 : vector<19x16xf32>, vector<19x16xf32>, vector<19x16xf32> -> vector<19x48xf32>
    %cst_189 = arith.constant dense<0.000000e+00> : vector<19x32xf32>
    %200 = tpu.matmul %199, %191, %cst_189 {dimension_numbers = #tpu.dot_dimension_numbers<[1], [0], [0], [1], [0, 0, 1, 1], [], []>} : vector<19x48xf32>, vector<48x32xf32>, vector<19x32xf32> -> vector<19x32xf32>
    %201 = vector.broadcast %193 : vector<1x32xf32> to vector<19x32xf32>
    %202 = arith.addf %200, %201 : vector<19x32xf32>
    %cst_190 = arith.constant 0.000000e+00 : f32
    %203 = vector.broadcast %cst_190 : f32 to vector<19x32xf32>
    %204 = arith.maximumf %202, %203 : vector<19x32xf32>
    %c0_191 = arith.constant 0 : index
    %c6 = arith.constant 6 : index
    %c0_192 = arith.constant 0 : index
    %c0_193 = arith.constant 0 : index
    %205 = vector.load %arg6[%c0_191, %c6, %c0_192, %c0_193] : memref<1x10x96x32xf32, #tpu.memory_space<vmem>>, vector<1x1x96x32xf32>
    %206 = vector.shape_cast %205 : vector<1x1x96x32xf32> to vector<96x32xf32>
    %c0_194 = arith.constant 0 : index
    %c6_195 = arith.constant 6 : index
    %c0_196 = arith.constant 0 : index
    %c0_197 = arith.constant 0 : index
    %207 = vector.load %arg7[%c0_194, %c6_195, %c0_196, %c0_197] : memref<1x10x1x32xf32, #tpu.memory_space<vmem>>, vector<1x1x1x32xf32>
    %208 = vector.shape_cast %207 : vector<1x1x1x32xf32> to vector<1x32xf32>
    %cst_198 = arith.constant dense<0.000000e+00> : vector<19x32xf32>
    %209 = tpu.matmul %187, %204, %cst_198 {dimension_numbers = #tpu.dot_dimension_numbers<[1], [0], [0], [1], [0, 0, 1, 1], [], []>} : vector<19x19xf32>, vector<19x32xf32>, vector<19x32xf32> -> vector<19x32xf32>
    %cst_199 = arith.constant dense<0.000000e+00> : vector<19x32xf32>
    %210 = tpu.matmul %187, %209, %cst_199 {dimension_numbers = #tpu.dot_dimension_numbers<[1], [0], [0], [1], [0, 0, 1, 1], [], []>} : vector<19x19xf32>, vector<19x32xf32>, vector<19x32xf32> -> vector<19x32xf32>
    %cst_200 = arith.constant 2.000000e+00 : f32
    %211 = vector.broadcast %cst_200 : f32 to vector<19x32xf32>
    %212 = arith.mulf %211, %210 : vector<19x32xf32>
    %213 = arith.subf %212, %204 : vector<19x32xf32>
    %214 = tpu.concatenate %204, %209, %213 in 1 : vector<19x32xf32>, vector<19x32xf32>, vector<19x32xf32> -> vector<19x96xf32>
    %cst_201 = arith.constant dense<0.000000e+00> : vector<19x32xf32>
    %215 = tpu.matmul %214, %206, %cst_201 {dimension_numbers = #tpu.dot_dimension_numbers<[1], [0], [0], [1], [0, 0, 1, 1], [], []>} : vector<19x96xf32>, vector<96x32xf32>, vector<19x32xf32> -> vector<19x32xf32>
    %216 = vector.broadcast %208 : vector<1x32xf32> to vector<19x32xf32>
    %217 = arith.addf %215, %216 : vector<19x32xf32>
    %cst_202 = arith.constant 0.000000e+00 : f32
    %218 = vector.broadcast %cst_202 : f32 to vector<19x32xf32>
    %219 = arith.maximumf %217, %218 : vector<19x32xf32>
    %c0_203 = arith.constant 0 : index
    %c7 = arith.constant 7 : index
    %c0_204 = arith.constant 0 : index
    %c0_205 = arith.constant 0 : index
    %220 = vector.load %arg6[%c0_203, %c7, %c0_204, %c0_205] : memref<1x10x96x32xf32, #tpu.memory_space<vmem>>, vector<1x1x96x32xf32>
    %221 = vector.shape_cast %220 : vector<1x1x96x32xf32> to vector<96x32xf32>
    %c0_206 = arith.constant 0 : index
    %c7_207 = arith.constant 7 : index
    %c0_208 = arith.constant 0 : index
    %c0_209 = arith.constant 0 : index
    %222 = vector.load %arg7[%c0_206, %c7_207, %c0_208, %c0_209] : memref<1x10x1x32xf32, #tpu.memory_space<vmem>>, vector<1x1x1x32xf32>
    %223 = vector.shape_cast %222 : vector<1x1x1x32xf32> to vector<1x32xf32>
    %cst_210 = arith.constant dense<0.000000e+00> : vector<19x32xf32>
    %224 = tpu.matmul %187, %219, %cst_210 {dimension_numbers = #tpu.dot_dimension_numbers<[1], [0], [0], [1], [0, 0, 1, 1], [], []>} : vector<19x19xf32>, vector<19x32xf32>, vector<19x32xf32> -> vector<19x32xf32>
    %cst_211 = arith.constant dense<0.000000e+00> : vector<19x32xf32>
    %225 = tpu.matmul %187, %224, %cst_211 {dimension_numbers = #tpu.dot_dimension_numbers<[1], [0], [0], [1], [0, 0, 1, 1], [], []>} : vector<19x19xf32>, vector<19x32xf32>, vector<19x32xf32> -> vector<19x32xf32>
    %cst_212 = arith.constant 2.000000e+00 : f32
    %226 = vector.broadcast %cst_212 : f32 to vector<19x32xf32>
    %227 = arith.mulf %226, %225 : vector<19x32xf32>
    %228 = arith.subf %227, %219 : vector<19x32xf32>
    %229 = tpu.concatenate %219, %224, %228 in 1 : vector<19x32xf32>, vector<19x32xf32>, vector<19x32xf32> -> vector<19x96xf32>
    %cst_213 = arith.constant dense<0.000000e+00> : vector<19x32xf32>
    %230 = tpu.matmul %229, %221, %cst_213 {dimension_numbers = #tpu.dot_dimension_numbers<[1], [0], [0], [1], [0, 0, 1, 1], [], []>} : vector<19x96xf32>, vector<96x32xf32>, vector<19x32xf32> -> vector<19x32xf32>
    %231 = vector.broadcast %223 : vector<1x32xf32> to vector<19x32xf32>
    %232 = arith.addf %230, %231 : vector<19x32xf32>
    %cst_214 = arith.constant 0.000000e+00 : f32
    %233 = vector.broadcast %cst_214 : f32 to vector<19x32xf32>
    %234 = arith.maximumf %232, %233 : vector<19x32xf32>
    %c0_215 = arith.constant 0 : index
    %c3_216 = arith.constant 3 : index
    %c0_217 = arith.constant 0 : index
    %c0_218 = arith.constant 0 : index
    %235 = vector.load %arg8[%c0_215, %c3_216, %c0_217, %c0_218] : memref<1x5x96x32xf32, #tpu.memory_space<vmem>>, vector<1x1x96x32xf32>
    %236 = vector.shape_cast %235 : vector<1x1x96x32xf32> to vector<96x32xf32>
    %c0_219 = arith.constant 0 : index
    %c3_220 = arith.constant 3 : index
    %c0_221 = arith.constant 0 : index
    %c0_222 = arith.constant 0 : index
    %237 = vector.load %arg9[%c0_219, %c3_220, %c0_221, %c0_222] : memref<1x5x1x32xf32, #tpu.memory_space<vmem>>, vector<1x1x1x32xf32>
    %238 = vector.shape_cast %237 : vector<1x1x1x32xf32> to vector<1x32xf32>
    %cst_223 = arith.constant dense<0.000000e+00> : vector<19x32xf32>
    %239 = tpu.matmul %187, %234, %cst_223 {dimension_numbers = #tpu.dot_dimension_numbers<[1], [0], [0], [1], [0, 0, 1, 1], [], []>} : vector<19x19xf32>, vector<19x32xf32>, vector<19x32xf32> -> vector<19x32xf32>
    %cst_224 = arith.constant dense<0.000000e+00> : vector<19x32xf32>
    %240 = tpu.matmul %187, %239, %cst_224 {dimension_numbers = #tpu.dot_dimension_numbers<[1], [0], [0], [1], [0, 0, 1, 1], [], []>} : vector<19x19xf32>, vector<19x32xf32>, vector<19x32xf32> -> vector<19x32xf32>
    %cst_225 = arith.constant 2.000000e+00 : f32
    %241 = vector.broadcast %cst_225 : f32 to vector<19x32xf32>
    %242 = arith.mulf %241, %240 : vector<19x32xf32>
    %243 = arith.subf %242, %234 : vector<19x32xf32>
    %244 = tpu.concatenate %234, %239, %243 in 1 : vector<19x32xf32>, vector<19x32xf32>, vector<19x32xf32> -> vector<19x96xf32>
    %cst_226 = arith.constant dense<0.000000e+00> : vector<19x32xf32>
    %245 = tpu.matmul %244, %236, %cst_226 {dimension_numbers = #tpu.dot_dimension_numbers<[1], [0], [0], [1], [0, 0, 1, 1], [], []>} : vector<19x96xf32>, vector<96x32xf32>, vector<19x32xf32> -> vector<19x32xf32>
    %246 = vector.broadcast %238 : vector<1x32xf32> to vector<19x32xf32>
    %247 = arith.addf %245, %246 : vector<19x32xf32>
    %c0_227 = arith.constant 0 : index
    %c4_228 = arith.constant 4 : index
    %c0_229 = arith.constant 0 : index
    %c0_230 = arith.constant 0 : index
    %248 = vector.load %arg3[%c0_227, %c4_228, %c0_229, %c0_230] : memref<1x5x19x19xf32, #tpu.memory_space<vmem>>, vector<1x1x19x19xf32>
    %249 = vector.shape_cast %248 : vector<1x1x19x19xf32> to vector<19x19xf32>
    %c0_231 = arith.constant 0 : index
    %c4_232 = arith.constant 4 : index
    %c0_233 = arith.constant 0 : index
    %c0_234 = arith.constant 0 : index
    %250 = vector.load %arg2[%c0_231, %c4_232, %c0_233, %c0_234] : memref<1x5x19x16xf32, #tpu.memory_space<vmem>>, vector<1x1x19x16xf32>
    %251 = vector.shape_cast %250 : vector<1x1x19x16xf32> to vector<19x16xf32>
    %c0_235 = arith.constant 0 : index
    %c4_236 = arith.constant 4 : index
    %c0_237 = arith.constant 0 : index
    %c0_238 = arith.constant 0 : index
    %252 = vector.load %arg4[%c0_235, %c4_236, %c0_237, %c0_238] : memref<1x5x48x32xf32, #tpu.memory_space<vmem>>, vector<1x1x48x32xf32>
    %253 = vector.shape_cast %252 : vector<1x1x48x32xf32> to vector<48x32xf32>
    %c0_239 = arith.constant 0 : index
    %c4_240 = arith.constant 4 : index
    %c0_241 = arith.constant 0 : index
    %c0_242 = arith.constant 0 : index
    %254 = vector.load %arg5[%c0_239, %c4_240, %c0_241, %c0_242] : memref<1x5x1x32xf32, #tpu.memory_space<vmem>>, vector<1x1x1x32xf32>
    %255 = vector.shape_cast %254 : vector<1x1x1x32xf32> to vector<1x32xf32>
    %cst_243 = arith.constant dense<0.000000e+00> : vector<19x16xf32>
    %256 = tpu.matmul %249, %251, %cst_243 {dimension_numbers = #tpu.dot_dimension_numbers<[1], [0], [0], [1], [0, 0, 1, 1], [], []>} : vector<19x19xf32>, vector<19x16xf32>, vector<19x16xf32> -> vector<19x16xf32>
    %cst_244 = arith.constant dense<0.000000e+00> : vector<19x16xf32>
    %257 = tpu.matmul %249, %256, %cst_244 {dimension_numbers = #tpu.dot_dimension_numbers<[1], [0], [0], [1], [0, 0, 1, 1], [], []>} : vector<19x19xf32>, vector<19x16xf32>, vector<19x16xf32> -> vector<19x16xf32>
    %cst_245 = arith.constant 2.000000e+00 : f32
    %258 = vector.broadcast %cst_245 : f32 to vector<19x16xf32>
    %259 = arith.mulf %258, %257 : vector<19x16xf32>
    %260 = arith.subf %259, %251 : vector<19x16xf32>
    %261 = tpu.concatenate %251, %256, %260 in 1 : vector<19x16xf32>, vector<19x16xf32>, vector<19x16xf32> -> vector<19x48xf32>
    %cst_246 = arith.constant dense<0.000000e+00> : vector<19x32xf32>
    %262 = tpu.matmul %261, %253, %cst_246 {dimension_numbers = #tpu.dot_dimension_numbers<[1], [0], [0], [1], [0, 0, 1, 1], [], []>} : vector<19x48xf32>, vector<48x32xf32>, vector<19x32xf32> -> vector<19x32xf32>
    %263 = vector.broadcast %255 : vector<1x32xf32> to vector<19x32xf32>
    %264 = arith.addf %262, %263 : vector<19x32xf32>
    %cst_247 = arith.constant 0.000000e+00 : f32
    %265 = vector.broadcast %cst_247 : f32 to vector<19x32xf32>
    %266 = arith.maximumf %264, %265 : vector<19x32xf32>
    %c0_248 = arith.constant 0 : index
    %c8 = arith.constant 8 : index
    %c0_249 = arith.constant 0 : index
    %c0_250 = arith.constant 0 : index
    %267 = vector.load %arg6[%c0_248, %c8, %c0_249, %c0_250] : memref<1x10x96x32xf32, #tpu.memory_space<vmem>>, vector<1x1x96x32xf32>
    %268 = vector.shape_cast %267 : vector<1x1x96x32xf32> to vector<96x32xf32>
    %c0_251 = arith.constant 0 : index
    %c8_252 = arith.constant 8 : index
    %c0_253 = arith.constant 0 : index
    %c0_254 = arith.constant 0 : index
    %269 = vector.load %arg7[%c0_251, %c8_252, %c0_253, %c0_254] : memref<1x10x1x32xf32, #tpu.memory_space<vmem>>, vector<1x1x1x32xf32>
    %270 = vector.shape_cast %269 : vector<1x1x1x32xf32> to vector<1x32xf32>
    %cst_255 = arith.constant dense<0.000000e+00> : vector<19x32xf32>
    %271 = tpu.matmul %249, %266, %cst_255 {dimension_numbers = #tpu.dot_dimension_numbers<[1], [0], [0], [1], [0, 0, 1, 1], [], []>} : vector<19x19xf32>, vector<19x32xf32>, vector<19x32xf32> -> vector<19x32xf32>
    %cst_256 = arith.constant dense<0.000000e+00> : vector<19x32xf32>
    %272 = tpu.matmul %249, %271, %cst_256 {dimension_numbers = #tpu.dot_dimension_numbers<[1], [0], [0], [1], [0, 0, 1, 1], [], []>} : vector<19x19xf32>, vector<19x32xf32>, vector<19x32xf32> -> vector<19x32xf32>
    %cst_257 = arith.constant 2.000000e+00 : f32
    %273 = vector.broadcast %cst_257 : f32 to vector<19x32xf32>
    %274 = arith.mulf %273, %272 : vector<19x32xf32>
    %275 = arith.subf %274, %266 : vector<19x32xf32>
    %276 = tpu.concatenate %266, %271, %275 in 1 : vector<19x32xf32>, vector<19x32xf32>, vector<19x32xf32> -> vector<19x96xf32>
    %cst_258 = arith.constant dense<0.000000e+00> : vector<19x32xf32>
    %277 = tpu.matmul %276, %268, %cst_258 {dimension_numbers = #tpu.dot_dimension_numbers<[1], [0], [0], [1], [0, 0, 1, 1], [], []>} : vector<19x96xf32>, vector<96x32xf32>, vector<19x32xf32> -> vector<19x32xf32>
    %278 = vector.broadcast %270 : vector<1x32xf32> to vector<19x32xf32>
    %279 = arith.addf %277, %278 : vector<19x32xf32>
    %cst_259 = arith.constant 0.000000e+00 : f32
    %280 = vector.broadcast %cst_259 : f32 to vector<19x32xf32>
    %281 = arith.maximumf %279, %280 : vector<19x32xf32>
    %c0_260 = arith.constant 0 : index
    %c9 = arith.constant 9 : index
    %c0_261 = arith.constant 0 : index
    %c0_262 = arith.constant 0 : index
    %282 = vector.load %arg6[%c0_260, %c9, %c0_261, %c0_262] : memref<1x10x96x32xf32, #tpu.memory_space<vmem>>, vector<1x1x96x32xf32>
    %283 = vector.shape_cast %282 : vector<1x1x96x32xf32> to vector<96x32xf32>
    %c0_263 = arith.constant 0 : index
    %c9_264 = arith.constant 9 : index
    %c0_265 = arith.constant 0 : index
    %c0_266 = arith.constant 0 : index
    %284 = vector.load %arg7[%c0_263, %c9_264, %c0_265, %c0_266] : memref<1x10x1x32xf32, #tpu.memory_space<vmem>>, vector<1x1x1x32xf32>
    %285 = vector.shape_cast %284 : vector<1x1x1x32xf32> to vector<1x32xf32>
    %cst_267 = arith.constant dense<0.000000e+00> : vector<19x32xf32>
    %286 = tpu.matmul %249, %281, %cst_267 {dimension_numbers = #tpu.dot_dimension_numbers<[1], [0], [0], [1], [0, 0, 1, 1], [], []>} : vector<19x19xf32>, vector<19x32xf32>, vector<19x32xf32> -> vector<19x32xf32>
    %cst_268 = arith.constant dense<0.000000e+00> : vector<19x32xf32>
    %287 = tpu.matmul %249, %286, %cst_268 {dimension_numbers = #tpu.dot_dimension_numbers<[1], [0], [0], [1], [0, 0, 1, 1], [], []>} : vector<19x19xf32>, vector<19x32xf32>, vector<19x32xf32> -> vector<19x32xf32>
    %cst_269 = arith.constant 2.000000e+00 : f32
    %288 = vector.broadcast %cst_269 : f32 to vector<19x32xf32>
    %289 = arith.mulf %288, %287 : vector<19x32xf32>
    %290 = arith.subf %289, %281 : vector<19x32xf32>
    %291 = tpu.concatenate %281, %286, %290 in 1 : vector<19x32xf32>, vector<19x32xf32>, vector<19x32xf32> -> vector<19x96xf32>
    %cst_270 = arith.constant dense<0.000000e+00> : vector<19x32xf32>
    %292 = tpu.matmul %291, %283, %cst_270 {dimension_numbers = #tpu.dot_dimension_numbers<[1], [0], [0], [1], [0, 0, 1, 1], [], []>} : vector<19x96xf32>, vector<96x32xf32>, vector<19x32xf32> -> vector<19x32xf32>
    %293 = vector.broadcast %285 : vector<1x32xf32> to vector<19x32xf32>
    %294 = arith.addf %292, %293 : vector<19x32xf32>
    %cst_271 = arith.constant 0.000000e+00 : f32
    %295 = vector.broadcast %cst_271 : f32 to vector<19x32xf32>
    %296 = arith.maximumf %294, %295 : vector<19x32xf32>
    %c0_272 = arith.constant 0 : index
    %c4_273 = arith.constant 4 : index
    %c0_274 = arith.constant 0 : index
    %c0_275 = arith.constant 0 : index
    %297 = vector.load %arg8[%c0_272, %c4_273, %c0_274, %c0_275] : memref<1x5x96x32xf32, #tpu.memory_space<vmem>>, vector<1x1x96x32xf32>
    %298 = vector.shape_cast %297 : vector<1x1x96x32xf32> to vector<96x32xf32>
    %c0_276 = arith.constant 0 : index
    %c4_277 = arith.constant 4 : index
    %c0_278 = arith.constant 0 : index
    %c0_279 = arith.constant 0 : index
    %299 = vector.load %arg9[%c0_276, %c4_277, %c0_278, %c0_279] : memref<1x5x1x32xf32, #tpu.memory_space<vmem>>, vector<1x1x1x32xf32>
    %300 = vector.shape_cast %299 : vector<1x1x1x32xf32> to vector<1x32xf32>
    %cst_280 = arith.constant dense<0.000000e+00> : vector<19x32xf32>
    %301 = tpu.matmul %249, %296, %cst_280 {dimension_numbers = #tpu.dot_dimension_numbers<[1], [0], [0], [1], [0, 0, 1, 1], [], []>} : vector<19x19xf32>, vector<19x32xf32>, vector<19x32xf32> -> vector<19x32xf32>
    %cst_281 = arith.constant dense<0.000000e+00> : vector<19x32xf32>
    %302 = tpu.matmul %249, %301, %cst_281 {dimension_numbers = #tpu.dot_dimension_numbers<[1], [0], [0], [1], [0, 0, 1, 1], [], []>} : vector<19x19xf32>, vector<19x32xf32>, vector<19x32xf32> -> vector<19x32xf32>
    %cst_282 = arith.constant 2.000000e+00 : f32
    %303 = vector.broadcast %cst_282 : f32 to vector<19x32xf32>
    %304 = arith.mulf %303, %302 : vector<19x32xf32>
    %305 = arith.subf %304, %296 : vector<19x32xf32>
    %306 = tpu.concatenate %296, %301, %305 in 1 : vector<19x32xf32>, vector<19x32xf32>, vector<19x32xf32> -> vector<19x96xf32>
    %cst_283 = arith.constant dense<0.000000e+00> : vector<19x32xf32>
    %307 = tpu.matmul %306, %298, %cst_283 {dimension_numbers = #tpu.dot_dimension_numbers<[1], [0], [0], [1], [0, 0, 1, 1], [], []>} : vector<19x96xf32>, vector<96x32xf32>, vector<19x32xf32> -> vector<19x32xf32>
    %308 = vector.broadcast %300 : vector<1x32xf32> to vector<19x32xf32>
    %309 = arith.addf %307, %308 : vector<19x32xf32>
    %310 = tpu.concatenate %61, %123, %185, %247, %309 in 1 : vector<19x32xf32>, vector<19x32xf32>, vector<19x32xf32>, vector<19x32xf32>, vector<19x32xf32> -> vector<19x160xf32>
    %c0_284 = arith.constant 0 : index
    %c0_285 = arith.constant 0 : index
    %c0_286 = arith.constant 0 : index
    %c0_287 = arith.constant 0 : index
    %311 = vector.load %arg10[%c0_284, %c0_285, %c0_286, %c0_287] : memref<1x1x19x160xf32, #tpu.memory_space<vmem>>, vector<1x1x19x160xf32>
    %312 = vector.shape_cast %311 : vector<1x1x19x160xf32> to vector<19x160xf32>
    %313 = vector.shape_cast %310 : vector<19x160xf32> to vector<1x1x19x160xf32>
    tpu.vector_store %arg10[%c0_284, %c0_285, %c0_286, %c0_287], %313 {strides = array<i32>} : memref<1x1x19x160xf32, #tpu.memory_space<vmem>>, vector<1x1x19x160xf32>,
    return
  }
  func.func @transform_0(%arg0: i32, %arg1: i32) -> (i32, i32, i32, i32) {
    %c0_i32 = arith.constant 0 : i32
    %c0_i32_0 = arith.constant 0 : i32
    %c0_i32_1 = arith.constant 0 : i32
    %c0_i32_2 = arith.constant 0 : i32
    return %arg1, %c0_i32, %c0_i32_0, %c0_i32_1 : i32, i32, i32, i32
  }
  func.func @transform_1(%arg0: i32, %arg1: i32) -> (i32, i32, i32, i32) {
    %c0_i32 = arith.constant 0 : i32
    %c0_i32_0 = arith.constant 0 : i32
    %c0_i32_1 = arith.constant 0 : i32
    %c0_i32_2 = arith.constant 0 : i32
    return %arg1, %c0_i32, %c0_i32_0, %c0_i32_1 : i32, i32, i32, i32
  }
  func.func @transform_2(%arg0: i32, %arg1: i32) -> (i32, i32, i32, i32) {
    %c0_i32 = arith.constant 0 : i32
    %c0_i32_0 = arith.constant 0 : i32
    %c0_i32_1 = arith.constant 0 : i32
    %c0_i32_2 = arith.constant 0 : i32
    return %arg0, %c0_i32, %c0_i32_0, %c0_i32_1 : i32, i32, i32, i32
  }
  func.func @transform_3(%arg0: i32, %arg1: i32) -> (i32, i32, i32, i32) {
    %c0_i32 = arith.constant 0 : i32
    %c0_i32_0 = arith.constant 0 : i32
    %c0_i32_1 = arith.constant 0 : i32
    %c0_i32_2 = arith.constant 0 : i32
    return %arg0, %c0_i32, %c0_i32_0, %c0_i32_1 : i32, i32, i32, i32
  }
  func.func @transform_4(%arg0: i32, %arg1: i32) -> (i32, i32, i32, i32) {
    %c0_i32 = arith.constant 0 : i32
    %c0_i32_0 = arith.constant 0 : i32
    %c0_i32_1 = arith.constant 0 : i32
    %c0_i32_2 = arith.constant 0 : i32
    return %arg0, %c0_i32, %c0_i32_0, %c0_i32_1 : i32, i32, i32, i32
  }
  func.func @transform_5(%arg0: i32, %arg1: i32) -> (i32, i32, i32, i32) {
    %c0_i32 = arith.constant 0 : i32
    %c0_i32_0 = arith.constant 0 : i32
    %c0_i32_1 = arith.constant 0 : i32
    %c0_i32_2 = arith.constant 0 : i32
    return %arg0, %c0_i32, %c0_i32_0, %c0_i32_1 : i32, i32, i32, i32
  }
  func.func @transform_6(%arg0: i32, %arg1: i32) -> (i32, i32, i32, i32) {
    %c0_i32 = arith.constant 0 : i32
    %c0_i32_0 = arith.constant 0 : i32
    %c0_i32_1 = arith.constant 0 : i32
    %c0_i32_2 = arith.constant 0 : i32
    return %arg0, %c0_i32, %c0_i32_0, %c0_i32_1 : i32, i32, i32, i32
  }
  func.func @transform_7(%arg0: i32, %arg1: i32) -> (i32, i32, i32, i32) {
    %c0_i32 = arith.constant 0 : i32
    %c0_i32_0 = arith.constant 0 : i32
    %c0_i32_1 = arith.constant 0 : i32
    %c0_i32_2 = arith.constant 0 : i32
    return %arg0, %c0_i32, %c0_i32_0, %c0_i32_1 : i32, i32, i32, i32
  }
  func.func @transform_8(%arg0: i32, %arg1: i32) -> (i32, i32, i32, i32) {
    %c0_i32 = arith.constant 0 : i32
    %c0_i32_0 = arith.constant 0 : i32
    %c0_i32_1 = arith.constant 0 : i32
    return %arg0, %arg1, %c0_i32, %c0_i32_0 : i32, i32, i32, i32
  }
}

module attributes {stable_mosaic.version = 11 : i64} {
  func.func @_tail_kernel(%arg0: i32, %arg1: memref<1x2x19x160xf32, #tpu.memory_space<vmem>>, %arg2: memref<1x3x19x1xf32, #tpu.memory_space<vmem>>, %arg3: memref<1x1x1xf32, #tpu.memory_space<vmem>>, %arg4: memref<1x1x158xf32, #tpu.memory_space<vmem>>, %arg5: memref<1x1x158xf32, #tpu.memory_space<vmem>>, %arg6: memref<1x158x4xf32, #tpu.memory_space<vmem>>, %arg7: memref<1x1x4xf32, #tpu.memory_space<vmem>>, %arg8: memref<1x2x4xf32, #tpu.memory_space<vmem>>) attributes {dimension_semantics = [#tpu.dimension_semantics<parallel>], iteration_bounds = array<i64: 2>, scalar_prefetch = 0 : i64, scratch_operands = 0 : i64, tpu.core_type = #tpu.core_type<tc>, window_params = [{transform_indices = @transform_0, window_bounds = array<i64: 1, 2, 19, 160>}, {transform_indices = @transform_1, window_bounds = array<i64: 1, 3, 19, 1>}, {transform_indices = @transform_2, window_bounds = array<i64: 1, 1, 1>}, {transform_indices = @transform_3, window_bounds = array<i64: 1, 1, 158>}, {transform_indices = @transform_4, window_bounds = array<i64: 1, 1, 158>}, {transform_indices = @transform_5, window_bounds = array<i64: 1, 158, 4>}, {transform_indices = @transform_6, window_bounds = array<i64: 1, 1, 4>}, {transform_indices = @transform_7, window_bounds = array<i64: 1, 2, 4>}]} {
    %c0 = arith.constant 0 : index
    %c0_0 = arith.constant 0 : index
    %c0_1 = arith.constant 0 : index
    %c0_2 = arith.constant 0 : index
    %0 = vector.load %arg1[%c0, %c0_0, %c0_1, %c0_2] : memref<1x2x19x160xf32, #tpu.memory_space<vmem>>, vector<1x1x19x160xf32>
    %1 = vector.shape_cast %0 : vector<1x1x19x160xf32> to vector<19x160xf32>
    %c0_3 = arith.constant 0 : index
    %c0_4 = arith.constant 0 : index
    %c0_5 = arith.constant 0 : index
    %c0_6 = arith.constant 0 : index
    %2 = vector.load %arg2[%c0_3, %c0_4, %c0_5, %c0_6] : memref<1x3x19x1xf32, #tpu.memory_space<vmem>>, vector<1x1x19x1xf32>
    %3 = vector.shape_cast %2 : vector<1x1x19x1xf32> to vector<19x1xf32>
    %4 = vector.broadcast %3 : vector<19x1xf32> to vector<19x160xf32>
    %5 = arith.mulf %1, %4 : vector<19x160xf32>
    %cst = arith.constant dense<0.000000e+00> : vector<160xf32>
    %6 = vector.multi_reduction <add>, %5, %cst [0] : vector<19x160xf32> to vector<160xf32>
    %7 = vector.shape_cast %6 : vector<160xf32> to vector<1x160xf32>
    %c0_7 = arith.constant 0 : index
    %c1 = arith.constant 1 : index
    %c0_8 = arith.constant 0 : index
    %c0_9 = arith.constant 0 : index
    %8 = vector.load %arg2[%c0_7, %c1, %c0_8, %c0_9] : memref<1x3x19x1xf32, #tpu.memory_space<vmem>>, vector<1x1x19x1xf32>
    %9 = vector.shape_cast %8 : vector<1x1x19x1xf32> to vector<19x1xf32>
    %10 = vector.broadcast %9 : vector<19x1xf32> to vector<19x160xf32>
    %11 = arith.mulf %1, %10 : vector<19x160xf32>
    %cst_10 = arith.constant dense<0.000000e+00> : vector<160xf32>
    %12 = vector.multi_reduction <add>, %11, %cst_10 [0] : vector<19x160xf32> to vector<160xf32>
    %13 = vector.shape_cast %12 : vector<160xf32> to vector<1x160xf32>
    %c0_11 = arith.constant 0 : index
    %c2 = arith.constant 2 : index
    %c0_12 = arith.constant 0 : index
    %c0_13 = arith.constant 0 : index
    %14 = vector.load %arg2[%c0_11, %c2, %c0_12, %c0_13] : memref<1x3x19x1xf32, #tpu.memory_space<vmem>>, vector<1x1x19x1xf32>
    %15 = vector.shape_cast %14 : vector<1x1x19x1xf32> to vector<19x1xf32>
    %16 = vector.broadcast %15 : vector<19x1xf32> to vector<19x160xf32>
    %17 = arith.mulf %1, %16 : vector<19x160xf32>
    %cst_14 = arith.constant dense<0.000000e+00> : vector<160xf32>
    %18 = vector.multi_reduction <add>, %17, %cst_14 [0] : vector<19x160xf32> to vector<160xf32>
    %19 = vector.shape_cast %18 : vector<160xf32> to vector<1x160xf32>
    %20 = vector.extract_strided_slice %7 {offsets = [0, 0], sizes = [1, 158], strides = [1, 1]} : vector<1x160xf32> to vector<1x158xf32>
    %cst_15 = arith.constant 0.000000e+00 : f32
    %21 = vector.broadcast %cst_15 : f32 to vector<1x158xf32>
    %22 = arith.addf %21, %20 : vector<1x158xf32>
    %23 = vector.extract_strided_slice %13 {offsets = [0, 1], sizes = [1, 158], strides = [1, 1]} : vector<1x160xf32> to vector<1x158xf32>
    %24 = arith.addf %22, %23 : vector<1x158xf32>
    %25 = vector.extract_strided_slice %19 {offsets = [0, 2], sizes = [1, 158], strides = [1, 1]} : vector<1x160xf32> to vector<1x158xf32>
    %26 = arith.addf %24, %25 : vector<1x158xf32>
    %c0_16 = arith.constant 0 : index
    %c1_17 = arith.constant 1 : index
    %c0_18 = arith.constant 0 : index
    %c0_19 = arith.constant 0 : index
    %27 = vector.load %arg1[%c0_16, %c1_17, %c0_18, %c0_19] : memref<1x2x19x160xf32, #tpu.memory_space<vmem>>, vector<1x1x19x160xf32>
    %28 = vector.shape_cast %27 : vector<1x1x19x160xf32> to vector<19x160xf32>
    %c0_20 = arith.constant 0 : index
    %c0_21 = arith.constant 0 : index
    %c0_22 = arith.constant 0 : index
    %c0_23 = arith.constant 0 : index
    %29 = vector.load %arg2[%c0_20, %c0_21, %c0_22, %c0_23] : memref<1x3x19x1xf32, #tpu.memory_space<vmem>>, vector<1x1x19x1xf32>
    %30 = vector.shape_cast %29 : vector<1x1x19x1xf32> to vector<19x1xf32>
    %31 = vector.broadcast %30 : vector<19x1xf32> to vector<19x160xf32>
    %32 = arith.mulf %28, %31 : vector<19x160xf32>
    %cst_24 = arith.constant dense<0.000000e+00> : vector<160xf32>
    %33 = vector.multi_reduction <add>, %32, %cst_24 [0] : vector<19x160xf32> to vector<160xf32>
    %34 = vector.shape_cast %33 : vector<160xf32> to vector<1x160xf32>
    %c0_25 = arith.constant 0 : index
    %c1_26 = arith.constant 1 : index
    %c0_27 = arith.constant 0 : index
    %c0_28 = arith.constant 0 : index
    %35 = vector.load %arg2[%c0_25, %c1_26, %c0_27, %c0_28] : memref<1x3x19x1xf32, #tpu.memory_space<vmem>>, vector<1x1x19x1xf32>
    %36 = vector.shape_cast %35 : vector<1x1x19x1xf32> to vector<19x1xf32>
    %37 = vector.broadcast %36 : vector<19x1xf32> to vector<19x160xf32>
    %38 = arith.mulf %28, %37 : vector<19x160xf32>
    %cst_29 = arith.constant dense<0.000000e+00> : vector<160xf32>
    %39 = vector.multi_reduction <add>, %38, %cst_29 [0] : vector<19x160xf32> to vector<160xf32>
    %40 = vector.shape_cast %39 : vector<160xf32> to vector<1x160xf32>
    %c0_30 = arith.constant 0 : index
    %c2_31 = arith.constant 2 : index
    %c0_32 = arith.constant 0 : index
    %c0_33 = arith.constant 0 : index
    %41 = vector.load %arg2[%c0_30, %c2_31, %c0_32, %c0_33] : memref<1x3x19x1xf32, #tpu.memory_space<vmem>>, vector<1x1x19x1xf32>
    %42 = vector.shape_cast %41 : vector<1x1x19x1xf32> to vector<19x1xf32>
    %43 = vector.broadcast %42 : vector<19x1xf32> to vector<19x160xf32>
    %44 = arith.mulf %28, %43 : vector<19x160xf32>
    %cst_34 = arith.constant dense<0.000000e+00> : vector<160xf32>
    %45 = vector.multi_reduction <add>, %44, %cst_34 [0] : vector<19x160xf32> to vector<160xf32>
    %46 = vector.shape_cast %45 : vector<160xf32> to vector<1x160xf32>
    %47 = vector.extract_strided_slice %34 {offsets = [0, 0], sizes = [1, 158], strides = [1, 1]} : vector<1x160xf32> to vector<1x158xf32>
    %cst_35 = arith.constant 0.000000e+00 : f32
    %48 = vector.broadcast %cst_35 : f32 to vector<1x158xf32>
    %49 = arith.addf %48, %47 : vector<1x158xf32>
    %50 = vector.extract_strided_slice %40 {offsets = [0, 1], sizes = [1, 158], strides = [1, 1]} : vector<1x160xf32> to vector<1x158xf32>
    %51 = arith.addf %49, %50 : vector<1x158xf32>
    %52 = vector.extract_strided_slice %46 {offsets = [0, 2], sizes = [1, 158], strides = [1, 1]} : vector<1x160xf32> to vector<1x158xf32>
    %53 = arith.addf %51, %52 : vector<1x158xf32>
    %54 = tpu.concatenate %26, %53 in 0 : vector<1x158xf32>, vector<1x158xf32> -> vector<2x158xf32>
    %c0_36 = arith.constant 0 : index
    %c0_37 = arith.constant 0 : index
    %c0_38 = arith.constant 0 : index
    %55 = vector.load %arg3[%c0_36, %c0_37, %c0_38] : memref<1x1x1xf32, #tpu.memory_space<vmem>>, vector<1x1x1xf32>
    %56 = vector.shape_cast %55 : vector<1x1x1xf32> to vector<1x1xf32>
    %57 = vector.broadcast %56 : vector<1x1xf32> to vector<2x158xf32>
    %58 = arith.addf %54, %57 : vector<2x158xf32>
    %cst_39 = arith.constant dense<0.000000e+00> : vector<158xf32>
    %59 = vector.multi_reduction <add>, %58, %cst_39 [0] : vector<2x158xf32> to vector<158xf32>
    %60 = vector.shape_cast %59 : vector<158xf32> to vector<1x158xf32>
    %cst_40 = arith.constant 2.000000e+00 : f32
    %61 = vector.broadcast %cst_40 : f32 to vector<1x158xf32>
    %62 = arith.divf %60, %61 : vector<1x158xf32>
    %63 = vector.broadcast %62 : vector<1x158xf32> to vector<2x158xf32>
    %64 = arith.subf %58, %63 : vector<2x158xf32>
    %65 = arith.mulf %64, %64 : vector<2x158xf32>
    %cst_41 = arith.constant dense<0.000000e+00> : vector<158xf32>
    %66 = vector.multi_reduction <add>, %65, %cst_41 [0] : vector<2x158xf32> to vector<158xf32>
    %67 = vector.shape_cast %66 : vector<158xf32> to vector<1x158xf32>
    %cst_42 = arith.constant 2.000000e+00 : f32
    %68 = vector.broadcast %cst_42 : f32 to vector<1x158xf32>
    %69 = arith.divf %67, %68 : vector<1x158xf32>
    %70 = vector.broadcast %62 : vector<1x158xf32> to vector<2x158xf32>
    %71 = arith.subf %58, %70 : vector<2x158xf32>
    %cst_43 = arith.constant 9.99999974E-6 : f32
    %72 = vector.broadcast %cst_43 : f32 to vector<1x158xf32>
    %73 = arith.addf %69, %72 : vector<1x158xf32>
    %74 = math.rsqrt %73 : vector<1x158xf32>
    %75 = vector.broadcast %74 : vector<1x158xf32> to vector<2x158xf32>
    %76 = arith.mulf %71, %75 : vector<2x158xf32>
    %c0_44 = arith.constant 0 : index
    %c0_45 = arith.constant 0 : index
    %c0_46 = arith.constant 0 : index
    %77 = vector.load %arg4[%c0_44, %c0_45, %c0_46] : memref<1x1x158xf32, #tpu.memory_space<vmem>>, vector<1x1x158xf32>
    %78 = vector.shape_cast %77 : vector<1x1x158xf32> to vector<1x158xf32>
    %79 = vector.broadcast %78 : vector<1x158xf32> to vector<2x158xf32>
    %80 = arith.mulf %76, %79 : vector<2x158xf32>
    %c0_47 = arith.constant 0 : index
    %c0_48 = arith.constant 0 : index
    %c0_49 = arith.constant 0 : index
    %81 = vector.load %arg5[%c0_47, %c0_48, %c0_49] : memref<1x1x158xf32, #tpu.memory_space<vmem>>, vector<1x1x158xf32>
    %82 = vector.shape_cast %81 : vector<1x1x158xf32> to vector<1x158xf32>
    %83 = vector.broadcast %82 : vector<1x158xf32> to vector<2x158xf32>
    %84 = arith.addf %80, %83 : vector<2x158xf32>
    %c0_50 = arith.constant 0 : index
    %c0_51 = arith.constant 0 : index
    %c0_52 = arith.constant 0 : index
    %85 = vector.load %arg6[%c0_50, %c0_51, %c0_52] : memref<1x158x4xf32, #tpu.memory_space<vmem>>, vector<1x158x4xf32>
    %86 = vector.shape_cast %85 : vector<1x158x4xf32> to vector<158x4xf32>
    %cst_53 = arith.constant dense<0.000000e+00> : vector<2x4xf32>
    %87 = tpu.matmul %84, %86, %cst_53 {dimension_numbers = #tpu.dot_dimension_numbers<[1], [0], [0], [1], [0, 0, 1, 1], [], []>} : vector<2x158xf32>, vector<158x4xf32>, vector<2x4xf32> -> vector<2x4xf32>
    %c0_54 = arith.constant 0 : index
    %c0_55 = arith.constant 0 : index
    %c0_56 = arith.constant 0 : index
    %88 = vector.load %arg7[%c0_54, %c0_55, %c0_56] : memref<1x1x4xf32, #tpu.memory_space<vmem>>, vector<1x1x4xf32>
    %89 = vector.shape_cast %88 : vector<1x1x4xf32> to vector<1x4xf32>
    %90 = vector.broadcast %89 : vector<1x4xf32> to vector<2x4xf32>
    %91 = arith.addf %87, %90 : vector<2x4xf32>
    %c0_57 = arith.constant 0 : index
    %c0_58 = arith.constant 0 : index
    %c0_59 = arith.constant 0 : index
    %92 = vector.load %arg8[%c0_57, %c0_58, %c0_59] : memref<1x2x4xf32, #tpu.memory_space<vmem>>, vector<1x2x4xf32>
    %93 = vector.shape_cast %92 : vector<1x2x4xf32> to vector<2x4xf32>
    %94 = vector.shape_cast %91 : vector<2x4xf32> to vector<1x2x4xf32>
    tpu.vector_store %arg8[%c0_57, %c0_58, %c0_59], %94 {strides = array<i32>} : memref<1x2x4xf32, #tpu.memory_space<vmem>>, vector<1x2x4xf32>,
    return
  }
  func.func @transform_0(%arg0: i32) -> (i32, i32, i32, i32) {
    %c0_i32 = arith.constant 0 : i32
    %c0_i32_0 = arith.constant 0 : i32
    %c0_i32_1 = arith.constant 0 : i32
    %c0_i32_2 = arith.constant 0 : i32
    return %arg0, %c0_i32, %c0_i32_0, %c0_i32_1 : i32, i32, i32, i32
  }
  func.func @transform_1(%arg0: i32) -> (i32, i32, i32, i32) {
    %c0_i32 = arith.constant 0 : i32
    %c0_i32_0 = arith.constant 0 : i32
    %c0_i32_1 = arith.constant 0 : i32
    %c0_i32_2 = arith.constant 0 : i32
    return %arg0, %c0_i32, %c0_i32_0, %c0_i32_1 : i32, i32, i32, i32
  }
  func.func @transform_2(%arg0: i32) -> (i32, i32, i32) {
    %c0_i32 = arith.constant 0 : i32
    %c0_i32_0 = arith.constant 0 : i32
    %c0_i32_1 = arith.constant 0 : i32
    return %arg0, %c0_i32, %c0_i32_0 : i32, i32, i32
  }
  func.func @transform_3(%arg0: i32) -> (i32, i32, i32) {
    %c0_i32 = arith.constant 0 : i32
    %c0_i32_0 = arith.constant 0 : i32
    %c0_i32_1 = arith.constant 0 : i32
    return %arg0, %c0_i32, %c0_i32_0 : i32, i32, i32
  }
  func.func @transform_4(%arg0: i32) -> (i32, i32, i32) {
    %c0_i32 = arith.constant 0 : i32
    %c0_i32_0 = arith.constant 0 : i32
    %c0_i32_1 = arith.constant 0 : i32
    return %arg0, %c0_i32, %c0_i32_0 : i32, i32, i32
  }
  func.func @transform_5(%arg0: i32) -> (i32, i32, i32) {
    %c0_i32 = arith.constant 0 : i32
    %c0_i32_0 = arith.constant 0 : i32
    %c0_i32_1 = arith.constant 0 : i32
    return %arg0, %c0_i32, %c0_i32_0 : i32, i32, i32
  }
  func.func @transform_6(%arg0: i32) -> (i32, i32, i32) {
    %c0_i32 = arith.constant 0 : i32
    %c0_i32_0 = arith.constant 0 : i32
    %c0_i32_1 = arith.constant 0 : i32
    return %arg0, %c0_i32, %c0_i32_0 : i32, i32, i32
  }
  func.func @transform_7(%arg0: i32) -> (i32, i32, i32) {
    %c0_i32 = arith.constant 0 : i32
    %c0_i32_0 = arith.constant 0 : i32
    %c0_i32_1 = arith.constant 0 : i32
    return %arg0, %c0_i32, %c0_i32_0 : i32, i32, i32
  }
}

</mosaic_0001>

<bundles_post_ra>
// kernel: _lambda_.3
= control target key start
LH: loop header
LB: loop body
LE: loop exit
PB: predicated region body
PF: predicated region fallthrough
CT: control target
= control target key end

     0   :  { %12 = vsyncpa [#allocation3], 0  ;;  %s1432_s0 = inlined_call_operand.vmem [shape: f32[2,2,19,160], index: 0, kind: input, shape index: {}]   ;;  %s1433_s1 = inlined_call_operand.vmem [shape: f32[2,3,19,1], index: 1, kind: input, shape index: {}]   ;;  %s1434_s2 = inlined_call_operand.vmem [shape: f32[2,1,1], index: 2, kind: input, shape index: {}]   ;;  %s1435_s3 = inlined_call_operand.vmem [shape: f32[2,1,158], index: 3, kind: input, shape index: {}]   ;;  %s1436_s4 = inlined_call_operand.vmem [shape: f32[2,1,158], index: 4, kind: input, shape index: {}]   ;;  %s1437_s5 = inlined_call_operand.hbm [shape: f32[2,158,4], index: 5, kind: input, shape index: {}]   ;;  %s1438_s6 = inlined_call_operand.vmem [shape: f32[2,1,4], index: 6, kind: input, shape index: {}]   ;;  %s1439_s7 = inlined_call_operand.vmem [shape: f32[2,2,4], index: 7, kind: output, shape index: {}]  }
   0x1   :  { %14 = vsyncpa [#allocation3 + $0x1], 0  ;;  %s1186_s24 = smov 0   ;;  %s1188_s25 = smov 0  }
   0x2   :  { %s1190_s26 = smov 0   ;;  %s1192_s27 = smov 0  }
   0x3 LB: > { %s1205_s28 = sadd.s32 4294967295, %s1138_s27   ;;  %s1208_s29 = sadd.s32 1, %s1138_s27   ;;  %s1138_s27 = sphi %s1192_s27, %s1445_s27   ;;  %s1134_s26 = sphi %s1190_s26, %s1444_s26   ;;  %s1130_s25 = sphi %s1188_s25, %s1443_s25   ;;  %s1126_s24 = sphi %s1186_s24, %s1442_s24  }
   0x4   : > { %s154_s30 = ssub.s32 %s1138_s27, %s1208_s29  ;;  %s157_s8 = sadd.s32 1, %s1134_s26 }
   0x5   : > { %p155_p0 = scmp.eq.s32.totalorder %s154_s30, 0  ;;  %p164_p1 = scmp.ne.s32.totalorder %s1134_s26, %s1130_s25 }
   0x6   : > { %p165_p2 = scmp.eq.s32.totalorder %s1138_s27, 0  ;;  %p170_p3 = scmp.ne.s32.totalorder %s1130_s25, %s1126_s24 }
   0x7   : > { %s1218_s9 = scalar_select %p155_p0, %s1134_s26, %s157_s8  }
   0x8   : > { %p166_p4 = por %p165_p2, %p164_p1  ;;  %p171_p5 = scmp.eq.s32.totalorder %s1205_s28, 0 }
   0x9   : > { %p1024_p6 = scmp.lt.s32.totalorder %s1138_s27, 2  ;;  %s282_s11 = sand.u32 1, %s1134_s26  }
   0xa   : > { %p1222_p7 = por %p171_p5, %p170_p3  ;;  %s1013_s12 = smul.u32 160, %s282_s11 }
   0xb   : > { %s1014_s13 = smul.u32 160, %s1138_s27  ;;  %p1228_p8 = pnand %p1024_p6, %p166_p4 }
   0xc   : > { %s286_s18 = scalar_lea.vmem [#allocation2], %s1013_s12  ;;  %p991_p9 = scmp.ge.s32.totalorder %s1138_s27, 1 }
   0xd   : > { %s291_s17 = scalar_lea.hbm %s1437_s5, %s1014_s13  ;;  %s294_s19 = sshll.u32 %s286_s18, 4  ;;  %s295_s19 = int_to_ptr.vmem [resolvable:$true] %s294_s19 }
   0xe   : > { %s292_s20 = sshll.u32 %s291_s17, 4  ;;  %s283_s21 = scalar_lea.sflag [#allocation3], %s282_s11  ;;  %s293_s20 = int_to_ptr.hbm [resolvable:$true] %s292_s20 }
   0xf   : > { %s1074_s22 = sshra.s32 %s293_s20, 4  ;;  %p1078_p11 = pneg %p1228_p8  ;;  %s1075_s22 = int_to_ptr.hbm [resolvable:$true] %s1074_s22 }
  0x10   : > { %s1076_s23 = scalar_lea.hbm %s1075_s22, 160  ;;  %s1081_s8 = scalar_lea.hbm %s1437_s5, 320 }
  0x11   : > { %p1077_p10 = scmp.ne.s32.totalorder %s1075_s22, %s1076_s23  ;;  %p1082_p0 = scmp.lt.s32.totalorder %s1075_s22, %s1437_s5 }
  0x12   : > { %p1083_p1 = scmp.lt.s32.totalorder %s1081_s8, %s1076_s23 }
  0x13   : > { %p1079_p12 = pnand %p1078_p11, %p1077_p10 }
  0x14   : > { %p1084_p2 = por %p1083_p1, %p1082_p0 }
  0x15   : > { %p1080_p13 = pneg %p1079_p12 }
  0x17   : > { %p1085_p3 = pnand %p1084_p2, %p1080_p13 }
  0x19   : > { %1088 = shalt.err (!%p1085_p3)
}
  0x1a   : > { %s1140_s11 = smov 128   ;;  %s1141_s15 = smov 8  }
  0x1b   : > { %1023 = dma.hbm_to_vmem [thread:$0]  (!%p1228_p8), %s293_s20, 2560, %s295_s19, %s283_s21, %s1140_s11, %s1140_s11, %s1141_s15  }
  0x1c   : > { %p308_p4 = scmp.lt.s32.totalorder %s1138_s27, 3 }
  0x1e   : > { %p309_p5 = pnand %p991_p9, %p308_p4 }
  0x1f   : > { %s314_s16 = sand.u32 (!%p309_p5), 1, %s1130_s25  }
  0x20   : > { %312 = sbr.rel (%p309_p5) target bundleno = 518 (0x206), region = 48  ;;  %s315_s18 = scalar_lea.sflag (!%p309_p5), [#allocation3], %s314_s16 }
  0x21   : > { %s1015_s17 = smul.u32 (!%p309_p5), 160, %s314_s16 }
  0x23   : > { %s1250_s22 = scalar_lea.vmem (!%p309_p5), [#allocation2], %s1015_s17 }
  0x25   : > { %1121 = dma.done.wait (%p1222_p7), %s315_s18, 2560  }
  0x26   : > { %1123 = vsyncadd (%p1222_p7), %s315_s18, 4294964736  ;;  %p373_p6 = scmp.lt.s32.totalorder %s1205_s28, 1  ;;  %v1142_v0 = vmov 0   ;;  %vm432_vm0 = vcmask 1042432   ;;  %vm445_vm1 = vcmask 256000   ;;  %vm441_vm2 = vcmask 261120  }
  0x27   : > { %1064 = vset.pattern.permute.xlu1 %v1142_v0  ;;  %1063 = vset.pattern.permute.xlu0 %v1142_v0  ;;  %s1143_s12 = smov 126   ;;  %s1144_s11 = smov 127   ;;  %vm552_vm3 = vcmask 1039360   ;;  %vm564_vm4 = vcmask 1031168   ;;  %vm685_vm5 = vcmask 1040384   ;;  %vm705_vm6 = vcmask 238592  }
  0x28   : > { %s1447_s28 = smov (!%p373_p6, %s1205_s28), 1  ;;  %1065 = vset.pattern.permute.xlu2 %v1142_v0  ;;  %vm697_vm7 = vcmask 1041408   ;;  %vm810_vm8 = vcmask 1045504  }
  0x29   : > { %s1017_s27 = smul.u32 72, %s1447_s28  ;;  %s385_s23 = scalar_lea.vmem %s1434_s2, %s1447_s28 }
  0x2a   : > { %s1016_s24 = smul.u32 96, %s1447_s28  ;;  %s1399_s17 = sshll.u32 %s1447_s28, 1 }
  0x2b   : > { %s382_s20 = scalar_lea.vmem %s1433_s1, %s1017_s27  ;;  %s389_s27 = scalar_lea.vmem %s1435_s3, %s1399_s17 }
  0x2c   : > { %v999_v1 = vld [vmem:[%s382_s20 + $0x28] sm:$0x7]  ;;  %v997_v2 = vld [vmem:[%s382_s20 + $0x18] sm:$0xff]  ;;  %v1000_v4 = vld [vmem:[%s382_s20 + $0x30] sm:$0xff]  ;;  %s1272_s13 = scalar_lea.vmem %s1432_s0, %s1016_s24  ;;  %s400_s8 = scalar_lea.vmem %s1439_s7, %s1399_s17 }
  0x2d   : > { %470 = vperm.xlu1 %1064, %v999_v1   ;;  %460 = vperm.xlu0 %1063, %v997_v2   ;;  %v1001_v3 = vld [vmem:[%s382_s20 + $0x38] sm:$0xff]  ;;  %v998_v5 = vld [vmem:[%s382_s20 + $0x20] sm:$0xff]  ;;  %v408_v7 = vld [vmem:[%s382_s20 + $0x8] sm:$0xff] }
  0x2e   : > { %510 = vperm.xlu2 %1065, %v1001_v3   ;;  %v1002_v6 = vld [vmem:[%s382_s20 + $0x40] sm:$0x7]  ;;  %v409_v9 = vld [vmem:[%s382_s20 + $0x10] sm:$0x7]  ;;  %v1008_v13 = vld [vmem:[%s1272_s13 + $0x58] sm:$0x7] }
  0x2f   : > { %v407_v8 = vld [vmem:[%s382_s20] sm:$0xff]  ;;  %v1007_v12 = vld [vmem:[%s1272_s13 + $0x50] sm:$0x7]  ;;  %v406_v15 = vld [vmem:[%s1272_s13 + $0x28] sm:$0x7]  ;;  %s393_s20 = scalar_lea.vmem %s1436_s4, %s1399_s17 }
  0x30   : > { %v405_v14 = vld [vmem:[%s1272_s13 + $0x20] sm:$0x7]  ;;  %v1291_v25 = vld [vmem:[%s1272_s13 + $0x48] sm:$0xff]  ;;  %v1294_v26 = vld [vmem:[%s1272_s13 + $0x18] sm:$0xff] }
  0x31   : > { %v1299_v31 = vld [vmem:[%s1272_s13 + $0x8] sm:$0xff]  ;;  %v1302_v32 = vld [vmem:[%s1272_s13 + $0x40] sm:$0xff]  ;;  %v1305_v33 = vld [vmem:[%s1272_s13 + $0x10] sm:$0xff] }
  0x32   : > { %v1003_v42 = vld [vmem:[%s1272_s13 + $0x30] sm:$0xff]  ;;  %v1004_v43 = vld [vmem:[%s1272_s13 + $0x38] sm:$0xff]  ;;  %v401_v44 = vld [vmem:[%s1272_s13] sm:$0xff] }
  0x35   : > { %505 = vperm.xlu1 %1064, %v1000_v4   ;;  %465 = vperm.xlu0 %1063, %v998_v5  }
  0x36   : > { %515 = vperm.xlu2 %1065, %v1002_v6  }
  0x3d   : > { %417 = vperm.xlu1 %1064, %v408_v7   ;;  %412 = vperm.xlu0 %1063, %v407_v8  }
  0x3e   : > { %422 = vperm.xlu2 %1065, %v409_v9  }
  0x88   : > { %v511_v10 = vpop.permute.xlu2 %510 }
  0x89   : > { %v521_v29 = vmul.f32 %v511_v10, %v1294_v26  ;;  %v632_v30 = vmul.f32 %v1291_v25, %v511_v10  ;;  %v520_v46 = vmul.f32 %v511_v10, %v1305_v33  ;;  %v631_v48 = vmul.f32 %v1302_v32, %v511_v10 }
  0x8b   : > { %v534_v47 = vsel %vm441_vm2, %v521_v29, 0.0  ;;  %v645_v49 = vsel %vm441_vm2, %v632_v30, 0.0 }
  0x90   : > { %v516_v11 = vpop.permute.xlu2 %515 }
  0x91   : > { %v522_v34 = vmul.f32 %v516_v11, %v405_v14  ;;  %v523_v35 = vmul.f32 %v516_v11, %v406_v15  ;;  %v633_v36 = vmul.f32 %v1007_v12, %v516_v11  ;;  %v634_v37 = vmul.f32 %v1008_v13, %v516_v11 }
  0x93   : > { %v525_v50 = vsel %vm432_vm0, %v522_v34, 0.0  ;;  %v536_v51 = vsel %vm445_vm1, %v523_v35, 0.0  ;;  %v636_v52 = vsel %vm432_vm0, %v633_v36, 0.0  ;;  %v647_v53 = vsel %vm445_vm1, %v634_v37, 0.0 }
  0x98   : > { %v423_v16 = vpop.permute.xlu2 %422 }
  0x99   : > { %v429_v17 = vmul.f32 %v423_v16, %v405_v14  ;;  %v430_v18 = vmul.f32 %v423_v16, %v406_v15  ;;  %v581_v19 = vmul.f32 %v1007_v12, %v423_v16  ;;  %v582_v20 = vmul.f32 %v1008_v13, %v423_v16 }
  0x9b   : > { %v1279_v21 = vsel %vm432_vm0, %v429_v17, 0.0  ;;  %v1282_v22 = vsel %vm445_vm1, %v430_v18, 0.0  ;;  %v1285_v23 = vsel %vm432_vm0, %v581_v19, 0.0  ;;  %v1288_v24 = vsel %vm445_vm1, %v582_v20, 0.0 }
  0x9f   : > { %v471_v27 = vpop.permute.xlu1 %470  ;;  %v461_v28 = vpop.permute.xlu0 %460 }
  0xa0   : > { %v477_v38 = vmul.f32 %v471_v27, %v405_v14  ;;  %v478_v39 = vmul.f32 %v471_v27, %v406_v15  ;;  %v607_v40 = vmul.f32 %v1007_v12, %v471_v27  ;;  %v608_v41 = vmul.f32 %v1008_v13, %v471_v27 }
  0xa1   : > { %v474_v45 = vmul.f32 %v461_v28, %v1299_v31  ;;  %v473_v55 = vmul.f32 %v461_v28, %v401_v44  ;;  %v603_v56 = vmul.f32 %v1003_v42, %v461_v28  ;;  %v604_v57 = vmul.f32 %v1004_v43, %v461_v28 }
  0xa2   : > { %v480_v54 = vsel %vm432_vm0, %v477_v38, 0.0  ;;  %v491_v58 = vsel %vm445_vm1, %v478_v39, 0.0  ;;  %v610_v59 = vsel %vm432_vm0, %v607_v40, 0.0  ;;  %v621_v60 = vsel %vm445_vm1, %v608_v41, 0.0 }
  0xa3   : > { %v488_v61 = vsel %vm441_vm2, %v474_v45, 0.0  ;;  %v618_v16 = vsel %vm441_vm2, %v604_v57, 0.0  ;;  %vm806_vm0 = vcmask 244736   ;;  %vm854_vm1 = vcmask 25600  }
  0xa7   : > { %v506_v62 = vpop.permute.xlu1 %505  ;;  %v466_v63 = vpop.permute.xlu0 %465 }
  0xa8   : > { %v518_v0 = vmul.f32 %v506_v62, %v401_v44  ;;  %v519_v1 = vmul.f32 %v506_v62, %v1299_v31  ;;  %v629_v2 = vmul.f32 %v1003_v42, %v506_v62  ;;  %v630_v3 = vmul.f32 %v1004_v43, %v506_v62 }
  0xa9   : > { %v475_v4 = vmul.f32 %v466_v63, %v1305_v33  ;;  %v476_v5 = vmul.f32 %v466_v63, %v1294_v26  ;;  %v605_v6 = vmul.f32 %v1302_v32, %v466_v63  ;;  %v606_v7 = vmul.f32 %v1291_v25, %v466_v63 }
  0xaa   : > { %v524_v8 = vadd.f32 %v520_v46, %v518_v0  ;;  %v533_v9 = vsel %vm441_vm2, %v519_v1, 0.0  ;;  %v635_v10 = vadd.f32 %v631_v48, %v629_v2  ;;  %v644_v11 = vsel %vm441_vm2, %v630_v3, 0.0 }
  0xab   : > { %v535_v12 = vadd.f32 %v534_v47, %v533_v9  ;;  %v646_v13 = vadd.f32 %v645_v49, %v644_v11  ;;  %v479_v14 = vadd.f32 %v475_v4, %v473_v55  ;;  %v489_v15 = vsel %vm441_vm2, %v476_v5, 0.0 }
  0xac   : > { %v637_v17 = vadd.f32 %v636_v52, %v635_v10  ;;  %v490_v18 = vadd.f32 %v489_v15, %v488_v61  ;;  %v609_v19 = vadd.f32 %v605_v6, %v603_v56  ;;  %v619_v27 = vsel %vm441_vm2, %v606_v7, 0.0 }
  0xad   : > { %v481_v20 = vadd.f32 %v480_v54, %v479_v14  ;;  %v648_v28 = vadd.f32 %v647_v53, %v646_v13  ;;  %v537_v29 = vadd.f32 %v536_v51, %v535_v12  ;;  %v526_v30 = vadd.f32 %v525_v50, %v524_v8 }
  0xae   : > { %v611_v34 = vadd.f32 %v610_v59, %v609_v19  ;;  %v620_v35 = vadd.f32 %v619_v27, %v618_v16  ;;  %v638_v36 = vrot.slane %v637_v17, 4  ;;  %v492_v40 = vadd.f32 %v491_v58, %v490_v18 }
  0xaf   : > { %v418_v37 = vpop.permute.xlu1 %417  ;;  %v413_v38 = vpop.permute.xlu0 %412  ;;  %v482_v39 = vrot.slane %v481_v20, 4  ;;  %v649_v41 = vrot.slane %v648_v28, 4  ;;  %v538_v45 = vrot.slane %v537_v29, 4  ;;  %v527_v8 = vrot.slane %v526_v30, 4 }
  0xb0   : > { %v427_v46 = vmul.f32 %v418_v37, %v1305_v33  ;;  %v428_v47 = vmul.f32 %v418_v37, %v1294_v26  ;;  %v579_v48 = vmul.f32 %v1302_v32, %v418_v37  ;;  %v580_v49 = vmul.f32 %v1291_v25, %v418_v37 }
  0xb1   : > { %v425_v52 = vmul.f32 %v413_v38, %v401_v44  ;;  %v426_v50 = vmul.f32 %v413_v38, %v1299_v31  ;;  %v577_v51 = vmul.f32 %v1003_v42, %v413_v38  ;;  %v578_v53 = vmul.f32 %v1004_v43, %v413_v38 }
  0xb2   : > { %v443_v54 = vsel %vm441_vm2, %v428_v47, 0.0  ;;  %v593_v55 = vsel %vm441_vm2, %v580_v49, 0.0  ;;  %v639_v56 = vadd.f32 %v638_v36, %v637_v17  ;;  %v612_v57 = vrot.slane %v611_v34, 4  ;;  %v1066_v47 = vld [vmem:[%s385_s23] ss:$0 sm:$0xff]  ;;  %s396_s23 = scalar_lea.vmem %s1438_s6, %s1447_s28 }
  0xb3   : > { %v431_v58 = vadd.f32 %v427_v46, %v425_v52  ;;  %v442_v33 = vsel %vm441_vm2, %v426_v50, 0.0  ;;  %v583_v59 = vadd.f32 %v579_v48, %v577_v51  ;;  %v592_v26 = vsel %vm441_vm2, %v578_v53, 0.0 }
  0xb4   : > { %v444_v32 = vadd.f32 %v443_v54, %v442_v33  ;;  %v594_v61 = vadd.f32 %v593_v55, %v592_v26  ;;  %v640_v25 = vrot.slane %v639_v56, 2  ;;  %v613_v44 = vadd.f32 %v612_v57, %v611_v34 }
  0xb5   : > { %v1344_v31 = vadd.f32 %v1279_v21, %v431_v58  ;;  %v585_v42 = vadd.f32 %v1285_v23, %v583_v59  ;;  %v483_v43 = vadd.f32 %v482_v39, %v481_v20  ;;  %v622_v62 = vadd.f32 %v621_v60, %v620_v35 }
  0xb6   : > { %v641_v63 = vadd.f32 %v640_v25, %v639_v56  ;;  %v614_v0 = vrot.slane %v613_v44, 2  ;;  %v493_v1 = vrot.slane %v492_v40, 4  ;;  %v650_v2 = vadd.f32 %v649_v41, %v648_v28 }
  0xb7   : > { %v484_v3 = vrot.slane %v483_v43, 2  ;;  %v623_v4 = vrot.slane %v622_v62, 4  ;;  %v539_v14 = vadd.f32 %v538_v45, %v537_v29  ;;  %v528_v17 = vadd.f32 %v527_v8, %v526_v30 }
  0xb8   : > { %v642_v5 = vrot.slane %v641_v63, 1  ;;  %v615_v6 = vadd.f32 %v614_v0, %v613_v44  ;;  %v494_v7 = vadd.f32 %v493_v1, %v492_v40  ;;  %v651_v11 = vrot.slane %v650_v2, 2 }
  0xb9   : > { %v485_v9 = vadd.f32 %v484_v3, %v483_v43  ;;  %v624_v10 = vadd.f32 %v623_v4, %v622_v62  ;;  %v540_v27 = vrot.slane %v539_v14, 2  ;;  %v596_v28 = vadd.f32 %v1288_v24, %v594_v61 }
  0xba   : > { %v643_v12 = vadd.f32 %v642_v5, %v641_v63  ;;  %v616_v21 = vrot.slane %v615_v6, 1  ;;  %v495_v13 = vrot.slane %v494_v7, 2  ;;  %v652_v20 = vadd.f32 %v651_v11, %v650_v2 }
  0xbb   : > { %v486_v23 = vrot.slane %v485_v9, 1  ;;  %v625_v15 = vrot.slane %v624_v10, 2  ;;  %v529_v35 = vrot.slane %v528_v17, 2  ;;  %v447_v36 = vadd.f32 %v1282_v22, %v444_v32 }
  0xbc   : > { %670 = vrot.lane.b32.xlu1 %v643_v12, %s1143_s12  ;;  %v617_v60 = vadd.f32 %v616_v21, %v615_v6  ;;  %v496_v16 = vadd.f32 %v495_v13, %v494_v7  ;;  %v653_v37 = vrot.slane %v652_v20, 1  ;;  %v541_v39 = vadd.f32 %v540_v27, %v539_v14 }
  0xbd   : > { %v487_v18 = vadd.f32 %v486_v23, %v485_v9  ;;  %v626_v19 = vadd.f32 %v625_v15, %v624_v10  ;;  %v530_v40 = vadd.f32 %v529_v35, %v528_v17  ;;  %v597_v48 = vrot.slane %v596_v28, 4 }
  0xbe   : > { %659 = vrot.lane.b32.xlu0 %v617_v60, %s1144_s11  ;;  %v497_v29 = vrot.slane %v496_v16, 1  ;;  %v654_v41 = vadd.f32 %v653_v37, %v652_v20  ;;  %v542_v45 = vrot.slane %v541_v39, 1  ;;  %v586_v49 = vrot.slane %v585_v42, 4 }
  0xbf   : > { %548 = vrot.lane.b32.xlu2 %v487_v18, %s1144_s11  ;;  %v627_v34 = vrot.slane %v626_v19, 1  ;;  %v531_v46 = vrot.slane %v530_v40, 1  ;;  %v598_v52 = vadd.f32 %v597_v48, %v596_v28  ;;  %v448_v50 = vrot.slane %v447_v36, 4  ;;  %v794_v48 = vld [vmem:[%s1250_s22 + $0x60] sm:$0xff] }
  0xc0   : > { %v498_v30 = vadd.f32 %v497_v29, %v496_v16  ;;  %v543_v24 = vadd.f32 %v542_v45, %v541_v39  ;;  %v587_v51 = vadd.f32 %v586_v49, %v585_v42  ;;  %v435_v54 = vrot.slane %v1344_v31, 4  ;;  %v797_v39 = vld [vmem:[%s1250_s22 + $0x78] sm:$0xff] }
  0xc1   : > { %v628_v38 = vadd.f32 %v627_v34, %v626_v19  ;;  %v532_v22 = vadd.f32 %v531_v46, %v530_v40  ;;  %v599_v53 = vrot.slane %v598_v52, 2  ;;  %v449_v55 = vadd.f32 %v448_v50, %v447_v36  ;;  %814 = vmatpush.msra.mxu0 %v797_v39  ;;  %v795_v46 = vld [vmem:[%s1250_s22 + $0x68] sm:$0xff]  ;;  %v801_v49 = vld [vmem:[%s1250_s22 + $0x98] sm:$0x3f] }
  0xc2   : > { %v588_v56 = vrot.slane %v587_v51, 2  ;;  %v436_v59 = vadd.f32 %v435_v54, %v1344_v31  ;;  %v1145_v42 = vmov 2.0   ;;  %1009 = vmatpush.msk.msra.mxu1 %vm810_vm8, %v801_v49  ;;  %v793_v54 = vld [vmem:[%s1250_s22 + $0x58] sm:$0xff] }
  0xc3   : > { %v600_v58 = vadd.f32 %v599_v53, %v598_v52  ;;  %v450_v26 = vrot.slane %v449_v55, 2  ;;  %1068 = vrcp.f32 %v1145_v42  ;;  %v800_v52 = vld [vmem:[%s1250_s22 + $0x90] sm:$0xff] }
  0xc4   : > { %661 = vrot.lane.b32.xlu1 %v628_v38, %s1144_s11  ;;  %v589_v61 = vadd.f32 %v588_v56, %v587_v51  ;;  %v437_v44 = vrot.slane %v436_v59, 2  ;;  %847 = vmatpush.msra.mxu1 %v800_v52 }
  0xc5   : > { %v601_v25 = vrot.slane %v600_v58, 1  ;;  %v451_v43 = vadd.f32 %v450_v26, %v449_v55  ;;  %v799_v55 = vld [vmem:[%s1250_s22 + $0x88] sm:$0xff] }
  0xc6   : > { %550 = vrot.lane.b32.xlu0 %v498_v30, %s1144_s11  ;;  %v590_v62 = vrot.slane %v589_v61, 1  ;;  %v438_v1 = vadd.f32 %v437_v44, %v436_v59  ;;  %v796_v30 = vld [vmem:[%s1250_s22 + $0x70] sm:$0xff]  ;;  %848 = vmatpush.msra.mxu1 %v799_v55  ;;  %v790_v44 = vld [vmem:[%s1250_s22 + $0x40] sm:$0xff] }
  0xc7   : > { %672 = vrot.lane.b32.xlu2 %v654_v41, %s1143_s12  ;;  %v602_v63 = vadd.f32 %v601_v25, %v600_v58  ;;  %v452_v5 = vrot.slane %v451_v43, 1  ;;  %815 = vmatpush.msra.mxu0 %v796_v30  ;;  %v792_v58 = vld [vmem:[%s1250_s22 + $0x50] sm:$0xff] }
  0xc8   : > { %v591_v6 = vadd.f32 %v590_v62, %v589_v61  ;;  %v439_v8 = vrot.slane %v438_v1, 1  ;;  %v791_v61 = vld [vmem:[%s1250_s22 + $0x48] sm:$0xff] }
  0xc9   : > { %v1069_v9 = vpop.eup %1068  ;;  %v453_v11 = vadd.f32 %v452_v5, %v451_v43  ;;  %816 = vmatpush.msra.mxu0 %v795_v46  ;;  %v766_v46 = vld [vmem:[%s389_s27] sm:$0x3] }
  0xca   : > { %v440_v23 = vadd.f32 %v439_v8, %v438_v1  ;;  %v714_v15 = vmul.f32 2.0, %v1069_v9  ;;  %vm718_vm9 = vweird.f32 %v1069_v9  ;;  %v788_v1 = vld [vmem:[%s1250_s22 + $0x30] sm:$0xff] }
  0xcb   : > { %817 = vmatpush.msra.mxu0 %v794_v48  ;;  %v769_v48 = vperm.slane %v766_v46, 1 }
  0xcc   : > { %562 = vrot.lane.b32.xlu1 %v543_v24, %s1143_s12  ;;  %v715_v29 = vsub.f32 1.0, %v714_v15  ;;  %v783_v15 = vld [vmem:[%s1250_s22 + $0x8] sm:$0xff] }
  0xcd   : > { %818 = vmatpush.msra.mxu0 %v793_v54  ;;  %v768_v54 = vperm.slane %v766_v46, 0 }
  0xce   : > { %560 = vrot.lane.b32.xlu0 %v532_v22, %s1143_s12  ;;  %v716_v45 = vmul.f32 %v1069_v9, %v715_v29 }
  0xcf   : > { %692 = vperm.xlu2 %1065, %v1066_v47   ;;  %819 = vmatpush.msra.mxu0 %v792_v58 }
  0xd0   : > { %v717_v51 = vadd.f32 %v1069_v9, %v716_v45 }
  0xd1   : > { %820 = vmatpush.msra.mxu0 %v791_v61 }
  0xd2   : > { %v719_v26 = vsel %vm718_vm9, %v1069_v9, %v717_v51 }
  0xd3   : > { %821 = vmatpush.msra.mxu0 %v790_v44 }
 0x119   : > { %v549_v57 = vpop.permute.xlu2 %548 }
 0x121   : > { %v673_v2 = vpop.permute.xlu2 %672 }
 0x129   : > { %v693_v20 = vpop.permute.xlu2 %692 }
 0x12e   : > { %v671_v33 = vpop.permute.xlu1 %670 }
 0x12f   : > { %v674_v12 = vsel %vm564_vm4, %v671_v33, %v673_v2  ;;  %v798_v33 = vld [vmem:[%s1250_s22 + $0x80] sm:$0xff] }
 0x130   : > { %v660_v32 = vpop.permute.xlu0 %659  ;;  %849 = vmatpush.msra.mxu1 %v798_v33 }
 0x136   : > { %v662_v0 = vpop.permute.xlu1 %661 }
 0x137   : > { %v663_v3 = vsel %vm552_vm3, %v660_v32, %v662_v0  ;;  %v667_v4 = vadd.f32 %v662_v0, %v602_v63  ;;  %v789_v63 = vld [vmem:[%s1250_s22 + $0x38] sm:$0xff] }
 0x138   : > { %v551_v31 = vpop.permute.xlu0 %550  ;;  %v666_v7 = vadd.f32 %v663_v3, %v591_v6  ;;  %822 = vmatpush.msra.mxu0 %v789_v63 }
 0x139   : > { %v678_v10 = vadd.f32 %v673_v2, %v667_v4  ;;  %v553_v21 = vsel %vm552_vm3, %v549_v57, %v551_v31  ;;  %v557_v13 = vadd.f32 %v551_v31, %v453_v11  ;;  %v787_v4 = vld [vmem:[%s1250_s22 + $0x28] sm:$0xff] }
 0x13a   : > { %v677_v14 = vadd.f32 %v674_v12, %v666_v7  ;;  %v556_v18 = vadd.f32 %v553_v21, %v440_v23  ;;  %823 = vmatpush.msra.mxu0 %v788_v1  ;;  %v786_v7 = vld [vmem:[%s1250_s22 + $0x20] sm:$0xff] }
 0x13b   : > { %v682_v16 = vrot.slane %v678_v10, 7  ;;  %v785_v10 = vld [vmem:[%s1250_s22 + $0x18] sm:$0xff] }
 0x13c   : > { %v681_v34 = vrot.slane %v677_v14, 7  ;;  %824 = vmatpush.msra.mxu0 %v787_v4 }
 0x13e   : > { %v563_v60 = vpop.permute.xlu1 %562  ;;  %825 = vmatpush.msra.mxu0 %v786_v7 }
 0x13f   : > { %v569_v17 = vadd.f32 %v563_v60, %v557_v13  ;;  %v784_v13 = vld [vmem:[%s1250_s22 + $0x10] sm:$0xff] }
 0x140   : > { %v561_v19 = vpop.permute.xlu0 %560  ;;  %826 = vmatpush.msra.mxu0 %v785_v10 }
 0x141   : > { %v687_v27 = vsel %vm685_vm5, %v569_v17, %v682_v16  ;;  %v565_v28 = vsel %vm564_vm4, %v561_v19, %v563_v60  ;;  %v782_v17 = vld [vmem:[%s1250_s22] sm:$0xff] }
 0x142   : > { %v696_v35 = vadd.f32 %v693_v20, %v687_v27  ;;  %v568_v36 = vadd.f32 %v565_v28, %v556_v18  ;;  %827 = vmatpush.msra.mxu0 %v784_v13 }
 0x144   : > { %v706_v37 = vsel %vm705_vm6, %v696_v35, 0.0  ;;  %v686_v38 = vsel %vm685_vm5, %v568_v36, %v681_v34  ;;  %828 = vmatpush.msra.mxu0 %v783_v15 }
 0x145   : > { %v707_v40 = vrot.slane %v706_v37, 4  ;;  %v695_v41 = vadd.f32 %v693_v20, %v686_v38 }
 0x146   : > { %829 = vmatpush.msra.mxu0 %v782_v17 }
 0x147   : > { %v708_v24 = vadd.f32 %v707_v40, %v706_v37  ;;  %v698_v47 = vsel %vm697_vm7, %v695_v41, 0.0 }
 0x148   : > { %v699_v22 = vrot.slane %v698_v47, 4 }
 0x149   : > { %v709_v50 = vrot.slane %v708_v24, 2 }
 0x14a   : > { %v700_v53 = vadd.f32 %v699_v22, %v698_v47  ;;  %v774_v22 = vld [vmem:[%s393_s20] sm:$0x3] }
 0x14b   : > { %v710_v56 = vadd.f32 %v709_v50, %v708_v24  ;;  %v777_v51 = vperm.slane %v774_v22, 1  ;;  %v776_v58 = vperm.slane %v774_v22, 0 }
 0x14c   : > { %v701_v57 = vrot.slane %v700_v53, 2 }
 0x14d   : > { %v711_v59 = vrot.slane %v710_v56, 1 }
 0x14e   : > { %v702_v32 = vadd.f32 %v701_v57, %v700_v53 }
 0x14f   : > { %v712_v25 = vadd.f32 %v711_v59, %v710_v56 }
 0x150   : > { %v703_v43 = vrot.slane %v702_v32, 1 }
 0x151   : > { %v721_v62 = vmul.f32 %v719_v26, %v712_v25 }
 0x152   : > { %v704_v42 = vadd.f32 %v703_v43, %v702_v32  ;;  %v1067_v32 = vld [vmem:[%s396_s23] ss:$0 sm:$0xff] }
 0x153   : > { %v1381_v0 = vsub.f32 %v696_v35, %v721_v62 }
 0x154   : > { %v720_v2 = vmul.f32 %v719_v26, %v704_v42 }
 0x155   : > { %v725_v3 = vmul.f32 %v1381_v0, %v1381_v0 }
 0x156   : > { %v1387_v5 = vsub.f32 %v695_v41, %v720_v2 }
 0x157   : > { %v733_v6 = vsel %vm705_vm6, %v725_v3, 0.0 }
 0x158   : > { %v734_v31 = vrot.slane %v733_v6, 4  ;;  %v724_v8 = vmul.f32 %v1387_v5, %v1387_v5 }
 0x15a   : > { %v735_v9 = vadd.f32 %v734_v31, %v733_v6  ;;  %v726_v11 = vsel %vm697_vm7, %v724_v8, 0.0 }
 0x15b   : > { %v727_v12 = vrot.slane %v726_v11, 4 }
 0x15c   : > { %v736_v21 = vrot.slane %v735_v9, 2 }
 0x15d   : > { %v728_v14 = vadd.f32 %v727_v12, %v726_v11 }
 0x15e   : > { %v737_v23 = vadd.f32 %v736_v21, %v735_v9 }
 0x15f   : > { %v729_v60 = vrot.slane %v728_v14, 2 }
 0x160   : > { %v738_v16 = vrot.slane %v737_v23, 1 }
 0x161   : > { %v730_v18 = vadd.f32 %v729_v60, %v728_v14 }
 0x162   : > { %v739_v19 = vadd.f32 %v738_v16, %v737_v23 }
 0x163   : > { %v731_v20 = vrot.slane %v730_v18, 1 }
 0x164   : > { %v741_v27 = vmul.f32 %v739_v19, %v719_v26 }
 0x165   : > { %v732_v28 = vadd.f32 %v731_v20, %v730_v18 }
 0x166   : > { %v743_v34 = vadd.f32 1e-05, %v741_v27 }
 0x167   : > { %v740_v29 = vmul.f32 %v732_v28, %v719_v26 }
 0x168   : > { %1070 = vrsqrt.f32 %v743_v34  ;;  %vm760_vm11 = vweird.f32 %v743_v34 }
 0x169   : > { %v742_v35 = vadd.f32 1e-05, %v740_v29 }
 0x16b   : > { %1072 = vrsqrt.f32 %v742_v35  ;;  %vm750_vm14 = vweird.f32 %v742_v35 }
 0x16e   : > { %v1071_v36 = vpop.eup %1070 }
 0x16f   : > { %v755_v37 = vmul.f32 %v1071_v36, %v743_v34  ;;  %vm761_vm10 = vweird.f32 %v1071_v36 }
 0x170   : > { %vm762_vm12 = vmor %vm760_vm11, %vm761_vm10 }
 0x171   : > { %v1073_v38 = vpop.eup %1072  ;;  %v756_v39 = vmul.f32 %v1071_v36, %v755_v37 }
 0x172   : > { %v745_v30 = vmul.f32 %v1073_v38, %v742_v35  ;;  %vm751_vm13 = vweird.f32 %v1073_v38 }
 0x173   : > { %v757_v40 = vmul.f32 0.5, %v756_v39  ;;  %vm752_vm15 = vmor %vm750_vm14, %vm751_vm13 }
 0x174   : > { %v746_v41 = vmul.f32 %v1073_v38, %v745_v30 }
 0x175   : > { %v758_v45 = vsub.f32 1.5, %v757_v40 }
 0x176   : > { %v747_v24 = vmul.f32 0.5, %v746_v41 }
 0x177   : > { %v759_v47 = vmul.f32 %v1071_v36, %v758_v45 }
 0x178   : > { %v748_v49 = vsub.f32 1.5, %v747_v24 }
 0x179   : > { %v763_v52 = vsel %vm762_vm12, %v1071_v36, %v759_v47 }
 0x17a   : > { %v765_v50 = vmul.f32 %v763_v52, %v1381_v0  ;;  %v749_v53 = vmul.f32 %v1073_v38, %v748_v49 }
 0x17c   : > { %v773_v55 = vmul.f32 %v769_v48, %v765_v50  ;;  %v753_v56 = vsel %vm752_vm15, %v1073_v38, %v749_v53 }
 0x17d   : > { %v764_v57 = vmul.f32 %v753_v56, %v1387_v5 }
 0x17e   : > { %v781_v33 = vadd.f32 %v777_v51, %v773_v55 }
 0x17f   : > { %v772_v59 = vmul.f32 %v768_v54, %v764_v57 }
 0x180   : > { %1010 = vmatmul.msk.f32.vlgmr.msra.gmra.mxu1 %vm806_vm0, %v781_v33 }
 0x181   : > { %v780_v26 = vadd.f32 %v776_v58, %v772_v59 }
 0x183   : > { %830 = vmatmul.f32.vlgmr.msra.gmra.mxu0 %v780_v26 }
 0x1fd   : > { %v851_v44 = vpop.f32.mrf.mxu1 }
 0x200   : > { %v831_v61 = vpop.f32.mrf.mxu0 }
 0x201   : > { %v832_v25 = vadd.f32 %v1067_v32, %v831_v61 }
 0x203   : > { %v852_v43 = vadd.f32 %v851_v44, %v832_v25 }
 0x205   : > { %855 = vst.msk [vmem:[%s400_s8] sm:$0x3] %vm854_vm1, %v852_v43 }
 0x206 PF: > { %p17_p7 = scmp.ge.s32.totalorder %s1208_s29, 4   ;;  %s1442_s24 = smov %s1130_s25 }
 0x207   : > { %s1443_s25 = smov %s1134_s26  ;;  %s1444_s26 = smov %s1218_s9 }
 0x208   : > { %s1445_s27 = smov %s1208_s29  ;;  %19 = sbr.rel (!%p17_p7) target bundleno = 3 (0x3), region = 109 }
 0x20d   :  { %875 = vsyncpa [#allocation3], 1 }
 0x20e   :  { %877 = vsyncpa [#allocation3 + $0x1], 1 }

// kernel: _lambda_.2
= control target key start
LH: loop header
LB: loop body
LE: loop exit
PB: predicated region body
PF: predicated region fallthrough
CT: control target
= control target key end

     0   :  { %s5971_s0 = inlined_call_operand.vmem [shape: f32[2,5,19,16], index: 0, kind: input, shape index: {}]   ;;  %s5972_s1 = inlined_call_operand.vmem [shape: f32[2,5,19,19], index: 1, kind: input, shape index: {}]   ;;  %s5973_s2 = inlined_call_operand.vmem [shape: f32[2,5,48,32], index: 2, kind: input, shape index: {}]   ;;  %s5974_s3 = inlined_call_operand.vmem [shape: f32[2,5,1,32], index: 3, kind: input, shape index: {}]   ;;  %s5975_s4 = inlined_call_operand.hbm [shape: f32[2,10,96,32], index: 4, kind: input, shape index: {}]   ;;  %s5976_s5 = inlined_call_operand.vmem [shape: f32[2,10,1,32], index: 5, kind: input, shape index: {}]   ;;  %s5977_s6 = inlined_call_operand.hbm [shape: f32[2,5,96,32], index: 6, kind: input, shape index: {}]   ;;  %s5978_s7 = inlined_call_operand.hbm [shape: f32[2,5,1,32], index: 7, kind: input, shape index: {}]   ;;  %s5979_s8 = inlined_call_operand.vmem [shape: f32[2,2,19,160], index: 8, kind: output, shape index: {}]  }
   0x1   :  { %5985 = sst [smem:[#allocation15_spill]] %s5972_s1 }
   0x2   :  { %5986 = sst [smem:[#allocation16_spill]] %s5973_s2 }
   0x3   :  { %5987 = sst [smem:[#allocation17_spill]] %s5974_s3 }
   0x4   :  { %5988 = sst [smem:[#allocation18_spill]] %s5976_s5 }
   0x5   :  { %5989 = sst [smem:[#allocation19_spill]] %s5977_s6 }
   0x6   :  { %5990 = sst [smem:[#allocation20_spill]] %s5979_s8 }
   0x7   :  { %13 = vsyncpa [#allocation3], 0 }
   0x8   :  { %15 = vsyncpa [#allocation3 + $0x1], 0 }
   0x9   :  { %16 = vsyncpa [#allocation5], 0 }
   0xa   :  { %18 = vsyncpa [#allocation5 + $0x1], 0  ;;  %s4589_s27 = smov 0   ;;  %s4591_s28 = smov 0  }
   0xb   :  { %s4593_s29 = smov 0   ;;  %s4595_s30 = smov 0  }
   0xc   :  { %s4597_s9 = smov 0   ;;  %s4599_s10 = smov 0  }
   0xd   :  { %s4601_s11 = smov 0   ;;  %s4603_s12 = smov 0  }
   0xe LB: > { %5991 = sst [smem:[#allocation9_spill]] %s4514_s29  ;;  %s5980_s13 = sadd.s32 4294967295, %s4534_s12   ;;  %s4534_s12 = sphi %s4603_s12, %s24_s12   ;;  %s4530_s11 = sphi %s4601_s11, %s6016_s11   ;;  %s4526_s10 = sphi %s4599_s10, %s6011_s10   ;;  %s4522_s9 = sphi %s4597_s9, %s6015_s9   ;;  %s4518_s30 = sphi %s4595_s30, %s6010_s30   ;;  %s4514_s29 = sphi %s4593_s29, %s6009_s29   ;;  %s4510_s28 = sphi %s4591_s28, %s6014_s28   ;;  %s4506_s27 = sphi %s4589_s27, %s6013_s27  }
   0xf   : > { %5992 = sst [smem:[#allocation10_spill]] %s4522_s9  ;;  %s33_s14 = sadd.s32 1, %s4526_s10 }
  0x10   : > { %5993 = sst [smem:[#allocation11_spill]] %s4526_s10  ;;  %p34_p0 = scmp.ge.s32.totalorder %s33_s14, 2 }
  0x11   : > { %s36_s15 = sadd.s32 1, %s4530_s11  ;;  %s147_s16 = sadd.s32 1, %s4514_s29 }
  0x12   : > { %p154_p1 = scmp.ne.s32.totalorder %s4514_s29, %s4510_s28  ;;  %s6018_s14 = smov (%p34_p0, %s33_s14), 0 }
  0x13   : > { %5994 = sst [smem:[#allocation12_spill]] %s6018_s14  ;;  %s6020_s15 = smov (!%p34_p0, %s36_s15), %s4530_s11 }
  0x14   : > { %p155_p2 = scmp.eq.s32.totalorder %s4534_s12, 0  ;;  %p160_p3 = scmp.ne.s32.totalorder %s4510_s28, %s4506_s27 }
  0x15   : > { %p38_p4 = scmp.ge.s32.totalorder %s6020_s15, 2  ;;  %p161_p5 = scmp.eq.s32.totalorder %s5980_s13, 0 }
  0x16   : > { %p156_p6 = por %p155_p2, %p154_p1  ;;  %p4281_p8 = scmp.lt.s32.totalorder %s4534_s12, 4 }
  0x17   : > { %s6022_s15 = smov (%p38_p4, %s6020_s15), 0  ;;  %p4642_p7 = por %p161_p5, %p160_p3 }
  0x18   : > { %5995 = sst [smem:[#allocation13_spill]] %s6022_s15  ;;  %s144_s18 = ssub.s32 %s4530_s11, %s6022_s15 }
  0x19   : > { %s4650_s19 = sand.u32 1, %s4514_s29   ;;  %p145_p9 = scmp.eq.s32.totalorder %s144_s18, 0 }
  0x1a   : > { %p4652_p10 = pnand %p4281_p8, %p156_p6  ;;  %s350_s22 = sand.u32 1, %s4534_s12  }
  0x1b   : > { %s4657_s21 = scalar_select %p145_p9, %s4514_s29, %s147_s16  }
  0x1c   : > { %s4252_s23 = smul.u32 480, %s4650_s19  ;;  %p3802_p11 = scmp.ge.s32.totalorder %s4534_s12, 1 }
  0x1d   : > { %5998 = sst [smem:[#allocation14_spill]] %s4657_s21  ;;  %s4253_s24 = smul.u32 480, %s4530_s11 }
  0x1e   : > { %p391_p12 = scmp.lt.s32.totalorder %s4534_s12, 5  ;;  %s5999_s6 = sld [smem:[#allocation19_spill]] }
  0x1f   : > { %s354_s18 = scalar_lea.vmem [#allocation4], %s4252_s23  ;;  %s351_s14 = scalar_lea.sflag [#allocation5], %s350_s22 }
  0x20   : > { %s362_s13 = sshll.u32 %s354_s18, 4  ;;  %p4667_p13 = pnand %p3802_p11, %p391_p12  ;;  %s363_s13 = int_to_ptr.vmem [resolvable:$true] %s362_s13 }
  0x21   : > { %s4536_s10 = smov 128   ;;  %s4537_s21 = smov 8  }
  0x22   : > { %s4250_s29 = smul.u32 960, %s4650_s19  ;;  %s322_s5 = scalar_lea.sflag [#allocation3], %s4650_s19 }
  0x23   : > { %s4251_s25 = smul.u32 960, %s4530_s11 }
  0x24   : > { %s359_s27 = scalar_lea.hbm %s5999_s6, %s4253_s24  ;;  %s4254_s24 = smul.u32 5, %s4650_s19 }
  0x25   : > { %s360_s15 = sshll.u32 %s359_s27, 4  ;;  %s330_s27 = scalar_lea.hbm %s5975_s4, %s4251_s25  ;;  %s361_s15 = int_to_ptr.hbm [resolvable:$true] %s360_s15 }
  0x26   : > { %4277 = dma.hbm_to_vmem [thread:$0]  (!%p4652_p10), %s361_s15, 7680, %s363_s13, %s351_s14, %s4536_s10, %s4536_s10, %s4537_s21  }
  0x27   : > { %s325_s18 = scalar_lea.vmem [#allocation2], %s4250_s29  ;;  %s331_s8 = sshll.u32 %s330_s27, 4  ;;  %s332_s8 = int_to_ptr.hbm [resolvable:$true] %s331_s8 }
  0x28   : > { %s333_s6 = sshll.u32 %s325_s18, 4  ;;  %s4255_s22 = smul.u32 5, %s4530_s11  ;;  %s334_s6 = int_to_ptr.vmem [resolvable:$true] %s333_s6 }
  0x29   : > { %4274 = dma.hbm_to_vmem [thread:$0]  (!%p4652_p10), %s332_s8, 15360, %s334_s6, %s322_s5, %s4536_s10, %s4536_s10, %s4537_s21  }
  0x2a   : > { %s376_s3 = scalar_lea.vmem [#allocation6], %s4254_s24  ;;  %s380_s9 = scalar_lea.hbm %s5978_s7, %s4255_s22 }
  0x2b   : > { %s383_s2 = sshll.u32 %s376_s3, 4  ;;  %s381_s1 = sshll.u32 %s380_s9, 4  ;;  %s384_s2 = int_to_ptr.vmem [resolvable:$true] %s383_s2  ;;  %s382_s1 = int_to_ptr.hbm [resolvable:$true] %s381_s1 }
  0x2c   : > { %s4538_s25 = smov 16   ;;  %s4539_s29 = smov 1  }
  0x2d   : > { %4280 = dma.hbm_to_vmem [thread:$0]  (!%p4652_p10), %s382_s1, 80, %s384_s2, %s351_s14, %s4538_s25, %s4538_s25, %s4539_s29  }
  0x2e   : > { %395 = sbr.rel (%p4667_p13) target bundleno = 8406 (0x20d6), region = 52  ;;  %s4691_s5 = sand.u32 (!%p4667_p13), 1, %s4510_s28  }
  0x2f   : > { %s4256_s3 = smul.u32 (!%p4667_p13), 960, %s4691_s5  ;;  %s398_s6 = scalar_lea.sflag (!%p4667_p13), [#allocation3], %s4691_s5 }
  0x31   : > { %s4695_s8 = scalar_lea.vmem (!%p4667_p13), [#allocation2], %s4256_s3 }
  0x33   : > { %4497 = dma.done.wait (%p4642_p7), %s398_s6, 15360  }
  0x34   : > { %4499 = vsyncadd (%p4642_p7), %s398_s6, 4294951936  ;;  %s6001_s1 = sadd.s32 4294967295, %s4534_s12   ;;  %s4257_s9 = smul.u32 480, %s4691_s5 }
  0x35   : > { %s407_s2 = sand.u32 1, %s6001_s1  }
  0x36   : > { %s408_s10 = scalar_lea.sflag [#allocation5], %s407_s2  ;;  %s4704_s14 = scalar_lea.vmem [#allocation4], %s4257_s9 }
  0x37   : > { %4501 = dma.done.wait (%p4642_p7), %s408_s10, 7760  }
  0x38   : > { %4503 = vsyncadd (%p4642_p7), %s408_s10, 4294959536  ;;  %p492_p0 = scmp.lt.s32.totalorder %s4518_s30, 1  ;;  %vm547_vm0 = vcmask 1042432   ;;  %s6002_s26 = sld [smem:[#allocation15_spill]]  ;;  %vm537_vm1 = vcmask 154624   ;;  %vm635_vm2 = vcmask 130048  }
  0x39   : > { %s6003_s27 = sld [smem:[#allocation10_spill]]  ;;  %s4540_s18 = smov 16   ;;  %vm646_vm3 = vcmask 392192   ;;  %vm639_vm4 = vcmask 261120   ;;  %v696_v49 = vld [vmem:[%s4695_s8 + $0x58] sm:$0xff]  ;;  %v695_v50 = vld [vmem:[%s4695_s8 + $0x50] sm:$0xff] }
  0x3a   : > { %s6024_s30 = smov (!%p492_p0, %s4518_s30), 1  ;;  %s6004_s25 = sld [smem:[#allocation16_spill]]  ;;  %v694_v51 = vld [vmem:[%s4695_s8 + $0x48] sm:$0xff]  ;;  %v693_v52 = vld [vmem:[%s4695_s8 + $0x40] sm:$0xff]  ;;  %v692_v53 = vld [vmem:[%s4695_s8 + $0x38] sm:$0xff]  ;;  %vm788_vm5 = vcmask 523264  }
  0x3b   : > { %s4259_s19 = smul.u32 120, %s6024_s30  ;;  %s4541_s3 = smov 32   ;;  %v691_v54 = vld [vmem:[%s4695_s8 + $0x30] sm:$0xff]  ;;  %v690_v55 = vld [vmem:[%s4695_s8 + $0x28] sm:$0xff]  ;;  %vm795_vm6 = vcmask 785408   ;;  %vm3593_vm7 = vcmask 256000  }
  0x3c   : > { %s6005_s9 = sld [smem:[#allocation17_spill]] }
  0x3d   : > { %s4718_s16 = scalar_lea.vmem %s5971_s0, %s4259_s19  ;;  %s6006_s23 = sld [smem:[#allocation18_spill]] }
  0x3e   : > { %s4723_s17 = scalar_lea.vmem %s6002_s26, %s4259_s19  ;;  %v4726_v0 = vld [vmem:[%s4718_s16 + $0x10] sm:$0x7]  ;;  %v4729_v1 = vld [vmem:[%s4718_s16 + $0x8] sm:$0xff]  ;;  %v527_v2 = vld [vmem:[%s4718_s16] sm:$0xff]  ;;  %s4542_s19 = smov 64  }
  0x3f   : > { %3807 = vmatpush.msk.msra.mxu0 %vm547_vm0, %v4726_v0  ;;  %v4736_v3 = vld [vmem:[%s4723_s17] sm:$0xff]  ;;  %v4741_v4 = vld [vmem:[%s4723_s17 + $0x8] sm:$0xff]  ;;  %v4746_v5 = vld [vmem:[%s4723_s17 + $0x10] sm:$0x7]  ;;  %p502_p1 = scmp.lt.s32.totalorder %s6003_s27, 1 }
  0x41   : > { %565 = vmatpush.msra.mxu0 %v4729_v1  ;;  %s6026_s27 = smov (!%p502_p1, %s6003_s27), 1 }
  0x42   : > { %s4260_s22 = smul.u32 240, %s6026_s27 }
  0x43   : > { %566 = vmatpush.msra.mxu0 %v527_v2  ;;  %s4261_s6 = smul.u32 5, %s6026_s27 }
  0x44   : > { %3808 = vmatmul.msk.f32.vlgmr.msra.gmra.mxu0 %vm537_vm1, %v4736_v3  ;;  %s4768_s29 = scalar_lea.vmem %s6004_s25, %s4260_s22  ;;  %s4262_s20 = smul.u32 10, %s6026_s27 }
  0x45   : > { %v535_v9 = vld [vmem:[%s4768_s29 + $0x28] sm:$0xff]  ;;  %s4777_s10 = scalar_lea.vmem %s6005_s9, %s4261_s6  ;;  %v534_v19 = vld [vmem:[%s4768_s29 + $0x20] sm:$0xff]  ;;  %v533_v20 = vld [vmem:[%s4768_s29 + $0x18] sm:$0xff]  ;;  %s4258_s22 = smul.u32 5, %s4691_s5 }
  0x46   : > { %666 = vmatpush.msra.mxu2 %v535_v9  ;;  %v532_v21 = vld [vmem:[%s4768_s29 + $0x10] sm:$0xff]  ;;  %v531_v22 = vld [vmem:[%s4768_s29 + $0x8] sm:$0xff]  ;;  %v530_v23 = vld [vmem:[%s4768_s29] sm:$0xff]  ;;  %s4834_s26 = scalar_lea.vmem %s6006_s23, %s4262_s20  ;;  %s4543_s5 = smov 96  }
  0x47   : > { %v4354_v38 = vld [vmem:[%s4777_s10] ss:$0 sm:$0xff]  ;;  %s5015_s13 = scalar_lea.vmem [#allocation6], %s4258_s22 }
  0x48   : > { %667 = vmatpush.msra.mxu2 %v534_v19 }
  0x4a   : > { %668 = vmatpush.msra.mxu2 %v533_v20 }
  0x4c   : > { %3809 = vmatmul.msk.f32.gmra.mxu0 %vm537_vm1, %v4741_v4  ;;  %669 = vmatpush.msra.mxu2 %v532_v21 }
  0x4e   : > { %670 = vmatpush.msra.mxu2 %v531_v22 }
  0x50   : > { %671 = vmatpush.msra.mxu2 %v530_v23  ;;  %v4355_v23 = vld [vmem:[%s4834_s26] ss:$0 sm:$0xff] }
  0x54   : > { %3810 = vmatmul.msk.f32.gmra.mxu0 %vm537_vm1, %v4746_v5 }
  0xc1   : > { %v568_v6 = vpop.f32.mrf.mxu0 }
  0xc2   : > { %614 = vrot.lane.b32.xlu0 %v568_v6, %s4540_s18 }
  0xc9   : > { %v571_v7 = vpop.f32.mrf.mxu0 }
  0xca   : > { %616 = vrot.lane.b32.xlu1 %v571_v7, %s4540_s18 }
  0xd1   : > { %v574_v8 = vpop.f32.mrf.mxu0 }
  0xd2   : > { %618 = vrot.lane.b32.xlu2 %v574_v8, %s4540_s18  ;;  %3811 = vmatpush.msk.msra.mxu1 %vm547_vm0, %v574_v8  ;;  %v685_v8 = vld [vmem:[%s4695_s8] sm:$0xff] }
  0xd4   : > { %594 = vmatpush.msra.mxu1 %v571_v7  ;;  %v686_v7 = vld [vmem:[%s4695_s8 + $0x8] sm:$0xff] }
  0xd6   : > { %595 = vmatpush.msra.mxu1 %v568_v6  ;;  %v687_v6 = vld [vmem:[%s4695_s8 + $0x10] sm:$0xff] }
  0xd7   : > { %3812 = vmatmul.msk.f32.vlgmr.msra.gmra.mxu1 %vm537_vm1, %v4736_v3 }
  0xd8   : > { %809 = vmatpush.msrb.mxu1 %v696_v49 }
  0xda   : > { %810 = vmatpush.msrb.mxu1 %v695_v50  ;;  %v3833_v50 = vld [vmem:[%s4695_s8 + $0x80] sm:$0xff] }
  0xdc   : > { %811 = vmatpush.msrb.mxu1 %v694_v51  ;;  %v3832_v51 = vld [vmem:[%s4695_s8 + $0x78] sm:$0xff] }
  0xde   : > { %812 = vmatpush.msrb.mxu1 %v693_v52  ;;  %v3831_v52 = vld [vmem:[%s4695_s8 + $0x70] sm:$0xff] }
  0xdf   : > { %3813 = vmatmul.msk.f32.gmra.mxu1 %vm537_vm1, %v4741_v4 }
  0xe0   : > { %813 = vmatpush.msrb.mxu1 %v692_v53  ;;  %v3830_v53 = vld [vmem:[%s4695_s8 + $0x68] sm:$0xff] }
  0xe2   : > { %814 = vmatpush.msrb.mxu1 %v691_v54  ;;  %v3829_v54 = vld [vmem:[%s4695_s8 + $0x60] sm:$0xff] }
  0xe4   : > { %815 = vmatpush.msrb.mxu1 %v690_v55  ;;  %v4898_v55 = vld [vmem:[%s4718_s16 + $0x28] sm:$0x7] }
  0xe7   : > { %3814 = vmatmul.msk.f32.gmra.mxu1 %vm537_vm1, %v4746_v5 }
 0x12c   : > { %v619_v29 = vpop.permute.xlu2 %618 }
 0x12d   : > { %v638_v34 = vsel %vm635_vm2, %v4726_v0, %v619_v29 }
 0x134   : > { %v615_v24 = vpop.permute.xlu0 %614 }
 0x135   : > { %v636_v25 = vsel %vm635_vm2, %v527_v2, %v615_v24 }
 0x13c   : > { %v617_v26 = vpop.permute.xlu1 %616 }
 0x13d   : > { %v637_v30 = vsel %vm635_vm2, %v4729_v1, %v617_v26 }
 0x154   : > { %v597_v10 = vpop.f32.mrf.mxu1 }
 0x155   : > { %v606_v11 = vmul.f32 2.0, %v597_v10 }
 0x157   : > { %v609_v12 = vsub.f32 %v606_v11, %v527_v2  ;;  %v688_v2 = vld [vmem:[%s4695_s8 + $0x18] sm:$0xff] }
 0x159   : > { %626 = vrot.lane.b32.xlu0 %v609_v12, %s4541_s3 }
 0x15c   : > { %v600_v13 = vpop.f32.mrf.mxu1 }
 0x15d   : > { %v607_v14 = vmul.f32 2.0, %v600_v13 }
 0x15f   : > { %v610_v15 = vsub.f32 %v607_v14, %v4729_v1  ;;  %v689_v1 = vld [vmem:[%s4695_s8 + $0x20] sm:$0xff] }
 0x160   : > { %816 = vmatpush.msrb.mxu1 %v689_v1 }
 0x161   : > { %628 = vrot.lane.b32.xlu1 %v610_v15, %s4541_s3 }
 0x162   : > { %817 = vmatpush.msrb.mxu1 %v688_v2 }
 0x164   : > { %v603_v16 = vpop.f32.mrf.mxu1  ;;  %818 = vmatpush.msrb.mxu1 %v687_v6 }
 0x165   : > { %v608_v17 = vmul.f32 2.0, %v603_v16 }
 0x166   : > { %819 = vmatpush.msrb.mxu1 %v686_v7 }
 0x167   : > { %v611_v18 = vsub.f32 %v608_v17, %v4726_v0 }
 0x168   : > { %820 = vmatpush.msrb.mxu1 %v685_v8 }
 0x169   : > { %630 = vrot.lane.b32.xlu2 %v611_v18, %s4541_s3 }
 0x1c3   : > { %v631_v33 = vpop.permute.xlu2 %630 }
 0x1c4   : > { %v642_v35 = vsel %vm639_vm4, %v638_v34, %v631_v33  ;;  %v3840_v34 = vld [vmem:[%s4695_s8 + $0xb8] sm:$0xff] }
 0x1cb   : > { %v627_v27 = vpop.permute.xlu0 %626 }
 0x1cc   : > { %v640_v28 = vsel %vm639_vm4, %v636_v25, %v627_v27 }
 0x1cd   : > { %3815 = vmatmul.msk.f32.vlgmr.msra.gmra.mxu2 %vm646_vm3, %v640_v28 }
 0x1d3   : > { %v629_v31 = vpop.permute.xlu1 %628 }
 0x1d4   : > { %v641_v32 = vsel %vm639_vm4, %v637_v30, %v629_v31 }
 0x1d5   : > { %3816 = vmatmul.msk.f32.gmra.mxu2 %vm646_vm3, %v641_v32 }
 0x1dd   : > { %3817 = vmatmul.msk.f32.gmra.mxu2 %vm646_vm3, %v642_v35  ;;  %v3839_v35 = vld [vmem:[%s4695_s8 + $0xb0] sm:$0xff] }
 0x250   : > { %v673_v36 = vpop.f32.mrf.mxu2 }
 0x251   : > { %v674_v42 = vadd.f32 %v4354_v38, %v673_v36  ;;  %v3838_v36 = vld [vmem:[%s4695_s8 + $0xa8] sm:$0xff] }
 0x253   : > { %v682_v45 = vmax.f32 %v674_v42, 0.0 }
 0x258   : > { %v676_v37 = vpop.f32.mrf.mxu2 }
 0x259   : > { %v677_v40 = vadd.f32 %v4354_v38, %v676_v37  ;;  %v3837_v37 = vld [vmem:[%s4695_s8 + $0xa0] sm:$0xff] }
 0x25b   : > { %v4801_v44 = vmax.f32 %v677_v40, 0.0  ;;  %v3834_v40 = vld [vmem:[%s4695_s8 + $0x88] sm:$0xff] }
 0x260   : > { %v679_v39 = vpop.f32.mrf.mxu2 }
 0x261   : > { %v680_v41 = vadd.f32 %v4354_v38, %v679_v39  ;;  %v3836_v38 = vld [vmem:[%s4695_s8 + $0x98] sm:$0xff]  ;;  %v3835_v39 = vld [vmem:[%s4695_s8 + $0x90] sm:$0xff] }
 0x263   : > { %v4799_v43 = vmax.f32 %v680_v41, 0.0 }
 0x265   : > { %3818 = vmatpush.msk.msra.mxu3 %vm547_vm0, %v4799_v43 }
 0x267   : > { %715 = vmatpush.msra.mxu3 %v4801_v44 }
 0x269   : > { %716 = vmatpush.msra.mxu3 %v682_v45 }
 0x26a   : > { %3819 = vmatmul.msk.f32.vlgmr.msra.gmra.mxu3 %vm537_vm1, %v4736_v3 }
 0x272   : > { %3820 = vmatmul.msk.f32.gmra.mxu3 %vm537_vm1, %v4741_v4 }
 0x27a   : > { %3821 = vmatmul.msk.f32.gmra.mxu3 %vm537_vm1, %v4746_v5 }
 0x2ed   : > { %v718_v46 = vpop.f32.mrf.mxu3 }
 0x2ee   : > { %764 = vrot.lane.b32.xlu0 %v718_v46, %s4541_s3 }
 0x2f5   : > { %v721_v47 = vpop.f32.mrf.mxu3 }
 0x2f6   : > { %766 = vrot.lane.b32.xlu2 %v721_v47, %s4541_s3 }
 0x2fd   : > { %v724_v48 = vpop.f32.mrf.mxu3 }
 0x2fe   : > { %3822 = vmatpush.msk.msrb.mxu0 %vm547_vm0, %v724_v48 }
 0x300   : > { %744 = vmatpush.msrb.mxu0 %v721_v47 }
 0x302   : > { %745 = vmatpush.msrb.mxu0 %v718_v46 }
 0x303   : > { %3823 = vmatmul.msk.f32.vlgmr.msrb.gmra.mxu0 %vm537_vm1, %v4736_v3 }
 0x304   : > { %958 = vmatpush.msra.mxu0 %v3840_v34 }
 0x306   : > { %959 = vmatpush.msra.mxu0 %v3839_v35 }
 0x308   : > { %960 = vmatpush.msra.mxu0 %v3838_v36 }
 0x30a   : > { %961 = vmatpush.msra.mxu0 %v3837_v37  ;;  %v3873_v37 = vld [vmem:[%s4768_s29 + $0x48] sm:$0xff] }
 0x30b   : > { %3824 = vmatmul.msk.f32.gmra.mxu0 %vm537_vm1, %v4741_v4 }
 0x30c   : > { %962 = vmatpush.msra.mxu0 %v3836_v38  ;;  %v3872_v38 = vld [vmem:[%s4768_s29 + $0x40] sm:$0xff] }
 0x30e   : > { %963 = vmatpush.msra.mxu0 %v3835_v39  ;;  %v3870_v39 = vld [vmem:[%s4768_s29 + $0x30] sm:$0xff] }
 0x310   : > { %964 = vmatpush.msra.mxu0 %v3834_v40 }
 0x312   : > { %965 = vmatpush.msra.mxu0 %v3833_v50  ;;  %v989_v50 = vld [vmem:[%s4704_s14 + $0x30] sm:$0xff] }
 0x313   : > { %3825 = vmatmul.msk.f32.gmra.mxu0 %vm537_vm1, %v4746_v5 }
 0x314   : > { %966 = vmatpush.msra.mxu0 %v3832_v51 }
 0x316   : > { %967 = vmatpush.msra.mxu0 %v3831_v52 }
 0x318   : > { %968 = vmatpush.msra.mxu0 %v3830_v53 }
 0x31a   : > { %969 = vmatpush.msra.mxu0 %v3829_v54  ;;  %v988_v54 = vld [vmem:[%s4704_s14 + $0x28] sm:$0xff] }
 0x31c   : > { %3877 = vmatpush.msk.msrb.mxu0 %vm547_vm0, %v4898_v55 }
 0x350   : > { %v767_v13 = vpop.permute.xlu2 %766 }
 0x351   : > { %v786_v14 = vsel %vm639_vm4, %v4801_v44, %v767_v13 }
 0x360   : > { %v765_v9 = vpop.permute.xlu0 %764 }
 0x361   : > { %v785_v10 = vsel %vm639_vm4, %v682_v45, %v765_v9  ;;  %v4922_v9 = vld [vmem:[%s4723_s17 + $0x18] sm:$0xff] }
 0x380   : > { %v747_v56 = vpop.f32.mrf.mxu0 }
 0x381   : > { %v756_v57 = vmul.f32 2.0, %v747_v56  ;;  %v4901_v56 = vld [vmem:[%s4718_s16 + $0x20] sm:$0xff] }
 0x382   : > { %1170 = vmatpush.msrb.mxu0 %v4901_v56 }
 0x383   : > { %v759_v58 = vsub.f32 %v756_v57, %v682_v45  ;;  %v4906_v57 = vld [vmem:[%s4718_s16 + $0x18] sm:$0xff] }
 0x384   : > { %1171 = vmatpush.msrb.mxu0 %v4906_v57 }
 0x385   : > { %776 = vrot.lane.b32.xlu1 %v759_v58, %s4542_s19 }
 0x388   : > { %v750_v59 = vpop.f32.mrf.mxu0 }
 0x389   : > { %v757_v60 = vmul.f32 2.0, %v750_v59 }
 0x38b   : > { %v760_v61 = vsub.f32 %v757_v60, %v4801_v44 }
 0x38d   : > { %768 = vrot.lane.b32.xlu1 %v724_v48, %s4541_s3  ;;  %778 = vrot.lane.b32.xlu0 %v760_v61, %s4542_s19 }
 0x390   : > { %v753_v62 = vpop.f32.mrf.mxu0 }
 0x391   : > { %v758_v63 = vmul.f32 2.0, %v753_v62 }
 0x393   : > { %v761_v0 = vsub.f32 %v758_v63, %v4799_v43 }
 0x395   : > { %780 = vrot.lane.b32.xlu2 %v761_v0, %s4542_s19 }
 0x3ef   : > { %v781_v19 = vpop.permute.xlu2 %780 }
 0x3f7   : > { %v777_v11 = vpop.permute.xlu1 %776 }
 0x3f8   : > { %v789_v12 = vsel %vm788_vm5, %v785_v10, %v777_v11  ;;  %v4927_v10 = vld [vmem:[%s4723_s17 + $0x20] sm:$0xff]  ;;  %v4932_v11 = vld [vmem:[%s4723_s17 + $0x28] sm:$0x7] }
 0x3f9   : > { %3826 = vmatmul.msk.f32.vlgmr.msrb.gmra.mxu1 %vm795_vm6, %v789_v12 }
 0x3ff   : > { %v779_v15 = vpop.permute.xlu0 %778  ;;  %v769_v17 = vpop.permute.xlu1 %768 }
 0x400   : > { %v790_v16 = vsel %vm788_vm5, %v786_v14, %v779_v15  ;;  %v787_v18 = vsel %vm639_vm4, %v4799_v43, %v769_v17  ;;  %v4356_v14 = vld [vmem:[%s4834_s26 + $0x1] ss:$0 sm:$0xff] }
 0x401   : > { %3827 = vmatmul.msk.f32.gmra.mxu1 %vm795_vm6, %v790_v16  ;;  %v791_v20 = vsel %vm788_vm5, %v787_v18, %v781_v19 }
 0x409   : > { %3828 = vmatmul.msk.f32.gmra.mxu1 %vm795_vm6, %v791_v20 }
 0x476   : > { %v822_v21 = vpop.f32.mrf.mxu1 }
 0x477   : > { %v823_v27 = vadd.f32 %v4355_v23, %v822_v21 }
 0x479   : > { %v831_v30 = vmax.f32 %v823_v27, 0.0 }
 0x47e   : > { %v825_v22 = vpop.f32.mrf.mxu1 }
 0x47f   : > { %v826_v25 = vadd.f32 %v4355_v23, %v825_v22 }
 0x481   : > { %v4859_v29 = vmax.f32 %v826_v25, 0.0 }
 0x486   : > { %v828_v24 = vpop.f32.mrf.mxu1 }
 0x487   : > { %v829_v26 = vadd.f32 %v4355_v23, %v828_v24 }
 0x489   : > { %v4857_v28 = vmax.f32 %v829_v26, 0.0 }
 0x48b   : > { %3842 = vmatpush.msk.msrb.mxu3 %vm547_vm0, %v4857_v28 }
 0x48d   : > { %866 = vmatpush.msrb.mxu3 %v4859_v29 }
 0x48f   : > { %867 = vmatpush.msrb.mxu3 %v831_v30 }
 0x490   : > { %3843 = vmatmul.msk.f32.vlgmr.msrb.gmra.mxu3 %vm537_vm1, %v4736_v3 }
 0x498   : > { %3844 = vmatmul.msk.f32.gmra.mxu3 %vm537_vm1, %v4741_v4 }
 0x4a0   : > { %3845 = vmatmul.msk.f32.gmra.mxu3 %vm537_vm1, %v4746_v5 }
 0x513   : > { %v869_v31 = vpop.f32.mrf.mxu3 }
 0x514   : > { %915 = vrot.lane.b32.xlu0 %v869_v31, %s4541_s3 }
 0x51b   : > { %v872_v32 = vpop.f32.mrf.mxu3 }
 0x51c   : > { %917 = vrot.lane.b32.xlu2 %v872_v32, %s4541_s3 }
 0x523   : > { %v875_v33 = vpop.f32.mrf.mxu3 }
 0x524   : > { %3846 = vmatpush.msk.msrb.mxu2 %vm547_vm0, %v875_v33 }
 0x526   : > { %895 = vmatpush.msrb.mxu2 %v872_v32 }
 0x528   : > { %896 = vmatpush.msrb.mxu2 %v869_v31 }
 0x529   : > { %3847 = vmatmul.msk.f32.vlgmr.msrb.gmra.mxu2 %vm537_vm1, %v4736_v3 }
 0x531   : > { %3848 = vmatmul.msk.f32.gmra.mxu2 %vm537_vm1, %v4741_v4 }
 0x539   : > { %3849 = vmatmul.msk.f32.gmra.mxu2 %vm537_vm1, %v4746_v5 }
 0x576   : > { %v918_v62 = vpop.permute.xlu2 %917 }
 0x577   : > { %v937_v63 = vsel %vm639_vm4, %v4859_v29, %v918_v62 }
 0x586   : > { %v916_v58 = vpop.permute.xlu0 %915 }
 0x587   : > { %v936_v59 = vsel %vm639_vm4, %v831_v30, %v916_v58 }
 0x5ac   : > { %v898_v41 = vpop.f32.mrf.mxu2 }
 0x5ad   : > { %v907_v42 = vmul.f32 2.0, %v898_v41  ;;  %v994_v41 = vld [vmem:[%s4704_s14 + $0x58] sm:$0xff] }
 0x5ae   : > { %1105 = vmatpush.msra.mxu2 %v994_v41  ;;  %v3898_v41 = vld [vmem:[%s4695_s8 + $0x110] sm:$0xff] }
 0x5af   : > { %v910_v43 = vsub.f32 %v907_v42, %v831_v30  ;;  %v993_v42 = vld [vmem:[%s4704_s14 + $0x50] sm:$0xff] }
 0x5b0   : > { %1106 = vmatpush.msra.mxu2 %v993_v42  ;;  %v3897_v42 = vld [vmem:[%s4695_s8 + $0x108] sm:$0xff] }
 0x5b1   : > { %927 = vrot.lane.b32.xlu1 %v910_v43, %s4542_s19 }
 0x5b4   : > { %v901_v44 = vpop.f32.mrf.mxu2 }
 0x5b5   : > { %v908_v45 = vmul.f32 2.0, %v901_v44 }
 0x5b7   : > { %v911_v46 = vsub.f32 %v908_v45, %v4859_v29 }
 0x5b9   : > { %919 = vrot.lane.b32.xlu1 %v875_v33, %s4541_s3  ;;  %929 = vrot.lane.b32.xlu0 %v911_v46, %s4542_s19  ;;  %v992_v46 = vld [vmem:[%s4704_s14 + $0x48] sm:$0xff] }
 0x5ba   : > { %1107 = vmatpush.msra.mxu2 %v992_v46  ;;  %v3893_v46 = vld [vmem:[%s4695_s8 + $0xe8] sm:$0xff] }
 0x5bc   : > { %v904_v47 = vpop.f32.mrf.mxu2 }
 0x5bd   : > { %v909_v48 = vmul.f32 2.0, %v904_v47  ;;  %v991_v47 = vld [vmem:[%s4704_s14 + $0x40] sm:$0xff] }
 0x5be   : > { %1108 = vmatpush.msra.mxu2 %v991_v47 }
 0x5bf   : > { %v912_v49 = vsub.f32 %v909_v48, %v4857_v28 }
 0x5c1   : > { %931 = vrot.lane.b32.xlu2 %v912_v49, %s4542_s19  ;;  %v990_v49 = vld [vmem:[%s4704_s14 + $0x38] sm:$0xff] }
 0x5c2   : > { %1109 = vmatpush.msra.mxu2 %v990_v49 }
 0x5c4   : > { %1110 = vmatpush.msra.mxu2 %v989_v50 }
 0x5c6   : > { %1111 = vmatpush.msra.mxu2 %v988_v54 }
 0x61b   : > { %v932_v7 = vpop.permute.xlu2 %931 }
 0x623   : > { %v928_v60 = vpop.permute.xlu1 %927 }
 0x624   : > { %v939_v61 = vsel %vm788_vm5, %v936_v59, %v928_v60 }
 0x625   : > { %3850 = vmatmul.msk.f32.vlgmr.msra.gmra.mxu0 %vm795_vm6, %v939_v61 }
 0x62b   : > { %v930_v0 = vpop.permute.xlu0 %929  ;;  %v920_v2 = vpop.permute.xlu1 %919 }
 0x62c   : > { %v940_v1 = vsel %vm788_vm5, %v937_v63, %v930_v0  ;;  %v938_v6 = vsel %vm639_vm4, %v4857_v28, %v920_v2  ;;  %v3875_v28 = vld [vmem:[%s4768_s29 + $0x58] sm:$0xff] }
 0x62d   : > { %3851 = vmatmul.msk.f32.gmra.mxu0 %vm795_vm6, %v940_v1  ;;  %v941_v8 = vsel %vm788_vm5, %v938_v6, %v932_v7  ;;  %v987_v7 = vld [vmem:[%s4704_s14 + $0x20] sm:$0xff] }
 0x62e   : > { %1112 = vmatpush.msra.mxu2 %v987_v7 }
 0x635   : > { %3852 = vmatmul.msk.f32.gmra.mxu0 %vm795_vm6, %v941_v8  ;;  %v986_v8 = vld [vmem:[%s4704_s14 + $0x18] sm:$0xff] }
 0x636   : > { %1113 = vmatpush.msra.mxu2 %v986_v8 }
 0x63d   : > { %3878 = vmatmul.msk.f32.vlgmr.msrb.gmra.mxu0 %vm537_vm1, %v4922_v9 }
 0x645   : > { %3879 = vmatmul.msk.f32.gmra.mxu0 %vm537_vm1, %v4927_v10 }
 0x64d   : > { %3880 = vmatmul.msk.f32.gmra.mxu0 %vm537_vm1, %v4932_v11 }
 0x6a2   : > { %v971_v12 = vpop.f32.mrf.mxu0 }
 0x6a3   : > { %v972_v18 = vadd.f32 %v4356_v14, %v971_v12  ;;  %v985_v12 = vld [vmem:[%s4704_s14 + $0x10] sm:$0xff] }
 0x6a4   : > { %1114 = vmatpush.msra.mxu2 %v985_v12 }
 0x6a5   : > { %v4943_v21 = vmax.f32 %v972_v18, 0.0 }
 0x6aa   : > { %v974_v13 = vpop.f32.mrf.mxu0 }
 0x6ab   : > { %v975_v16 = vadd.f32 %v4356_v14, %v974_v13  ;;  %v984_v13 = vld [vmem:[%s4704_s14 + $0x8] sm:$0xff] }
 0x6ac   : > { %1115 = vmatpush.msra.mxu2 %v984_v13 }
 0x6ad   : > { %v4939_v20 = vmax.f32 %v975_v16, 0.0 }
 0x6b2   : > { %v977_v15 = vpop.f32.mrf.mxu0 }
 0x6b3   : > { %v978_v17 = vadd.f32 %v4356_v14, %v977_v15  ;;  %v983_v14 = vld [vmem:[%s4704_s14] sm:$0xff] }
 0x6b4   : > { %1116 = vmatpush.msra.mxu2 %v983_v14 }
 0x6b5   : > { %v4937_v19 = vmax.f32 %v978_v17, 0.0 }
 0x6b7   : > { %3853 = vmatpush.msk.msra.mxu1 %vm547_vm0, %v4937_v19 }
 0x6b9   : > { %1013 = vmatpush.msra.mxu1 %v4939_v20 }
 0x6ba   : > { %v1173_v22 = vpop.f32.mrf.mxu0 }
 0x6bb   : > { %1014 = vmatpush.msra.mxu1 %v4943_v21  ;;  %1219 = vrot.lane.b32.xlu0 %v1173_v22, %s4540_s18 }
 0x6bc   : > { %3854 = vmatmul.msk.f32.vlgmr.msra.gmra.mxu1 %vm537_vm1, %v4736_v3 }
 0x6c2   : > { %v1176_v23 = vpop.f32.mrf.mxu0 }
 0x6c3   : > { %1221 = vrot.lane.b32.xlu2 %v1176_v23, %s4540_s18 }
 0x6c4   : > { %3855 = vmatmul.msk.f32.gmra.mxu1 %vm537_vm1, %v4741_v4 }
 0x6ca   : > { %v1179_v24 = vpop.f32.mrf.mxu0 }
 0x6cb   : > { %3881 = vmatpush.msk.msrb.mxu1 %vm547_vm0, %v1179_v24 }
 0x6cc   : > { %3856 = vmatmul.msk.f32.gmra.mxu1 %vm537_vm1, %v4746_v5 }
 0x6cd   : > { %1199 = vmatpush.msrb.mxu1 %v1176_v23 }
 0x6cf   : > { %1200 = vmatpush.msrb.mxu1 %v1173_v22 }
 0x6d4   : > { %3882 = vmatmul.msk.f32.vlgmr.msrb.gmra.mxu1 %vm537_vm1, %v4922_v9 }
 0x6dc   : > { %3883 = vmatmul.msk.f32.gmra.mxu1 %vm537_vm1, %v4927_v10 }
 0x6e4   : > { %3884 = vmatmul.msk.f32.gmra.mxu1 %vm537_vm1, %v4932_v11 }
 0x71d   : > { %v1222_v48 = vpop.permute.xlu2 %1221 }
 0x71e   : > { %v1241_v51 = vsel %vm635_vm2, %v4901_v56, %v1222_v48 }
 0x72d   : > { %v1220_v40 = vpop.permute.xlu0 %1219 }
 0x72e   : > { %v1240_v43 = vsel %vm635_vm2, %v4906_v57, %v1220_v40  ;;  %v3899_v40 = vld [vmem:[%s4695_s8 + $0x118] sm:$0xff] }
 0x72f   : > { %1411 = vmatpush.msra.mxu1 %v3899_v40 }
 0x731   : > { %1412 = vmatpush.msra.mxu1 %v3898_v41 }
 0x733   : > { %1413 = vmatpush.msra.mxu1 %v3897_v42 }
 0x739   : > { %v1016_v25 = vpop.f32.mrf.mxu1 }
 0x741   : > { %v1019_v26 = vpop.f32.mrf.mxu1 }
 0x749   : > { %v4962_v27 = vpop.f32.mrf.mxu1 }
 0x74a   : > { %3857 = vmatpush.msk.msra.mxu3 %vm547_vm0, %v4962_v27 }
 0x74c   : > { %1042 = vmatpush.msra.mxu3 %v1019_v26 }
 0x74e   : > { %1043 = vmatpush.msra.mxu3 %v1016_v25 }
 0x74f   : > { %3858 = vmatmul.msk.f32.vlgmr.msra.gmra.mxu3 %vm537_vm1, %v4736_v3 }
 0x750   : > { %1268 = vmatpush.msrb.mxu3 %v3875_v28 }
 0x751   : > { %v1202_v29 = vpop.f32.mrf.mxu1 }
 0x752   : > { %v1211_v30 = vmul.f32 2.0, %v1202_v29 }
 0x754   : > { %v1214_v31 = vsub.f32 %v1211_v30, %v4906_v57 }
 0x756   : > { %1231 = vrot.lane.b32.xlu1 %v1214_v31, %s4541_s3  ;;  %v4357_v31 = vld [vmem:[%s4777_s10 + $0x1] ss:$0 sm:$0xff] }
 0x757   : > { %3859 = vmatmul.msk.f32.gmra.mxu3 %vm537_vm1, %v4741_v4  ;;  %v3874_v4 = vld [vmem:[%s4768_s29 + $0x50] sm:$0xff] }
 0x758   : > { %1269 = vmatpush.msrb.mxu3 %v3874_v4 }
 0x759   : > { %v1205_v32 = vpop.f32.mrf.mxu1 }
 0x75a   : > { %v1212_v33 = vmul.f32 2.0, %v1205_v32  ;;  %1270 = vmatpush.msrb.mxu3 %v3873_v37 }
 0x75c   : > { %v1215_v34 = vsub.f32 %v1212_v33, %v4901_v56  ;;  %1271 = vmatpush.msrb.mxu3 %v3872_v38 }
 0x75e   : > { %1223 = vrot.lane.b32.xlu1 %v1179_v24, %s4540_s18  ;;  %1233 = vrot.lane.b32.xlu0 %v1215_v34, %s4541_s3 }
 0x75f   : > { %3860 = vmatmul.msk.f32.gmra.mxu3 %vm537_vm1, %v4746_v5  ;;  %v3871_v5 = vld [vmem:[%s4768_s29 + $0x38] sm:$0xff] }
 0x760   : > { %1272 = vmatpush.msrb.mxu3 %v3871_v5 }
 0x761   : > { %v1208_v3 = vpop.f32.mrf.mxu1 }
 0x762   : > { %v1213_v35 = vmul.f32 2.0, %v1208_v3  ;;  %1273 = vmatpush.msrb.mxu3 %v3870_v39 }
 0x764   : > { %v1216_v36 = vsub.f32 %v1213_v35, %v4898_v55 }
 0x766   : > { %1062 = vrot.lane.b32.xlu0 %v1016_v25, %s4541_s3  ;;  %1235 = vrot.lane.b32.xlu2 %v1216_v36, %s4541_s3 }
 0x76e   : > { %1064 = vrot.lane.b32.xlu2 %v1019_v26, %s4541_s3 }
 0x7c0   : > { %v1236_v56 = vpop.permute.xlu2 %1235 }
 0x7c8   : > { %v1232_v44 = vpop.permute.xlu1 %1231  ;;  %v1065_v23 = vpop.permute.xlu2 %1064 }
 0x7c9   : > { %v1243_v45 = vsel %vm639_vm4, %v1240_v43, %v1232_v44  ;;  %v1084_v24 = vsel %vm639_vm4, %v4939_v20, %v1065_v23  ;;  %v3896_v43 = vld [vmem:[%s4695_s8 + $0x100] sm:$0xff]  ;;  %v3895_v44 = vld [vmem:[%s4695_s8 + $0xf8] sm:$0xff] }
 0x7ca   : > { %3885 = vmatmul.msk.f32.vlgmr.msrb.gmra.mxu3 %vm646_vm3, %v1243_v45  ;;  %1414 = vmatpush.msra.mxu1 %v3896_v43  ;;  %v3894_v45 = vld [vmem:[%s4695_s8 + $0xf0] sm:$0xff] }
 0x7cc   : > { %1415 = vmatpush.msra.mxu1 %v3895_v44  ;;  %v3916_v44 = vld [vmem:[%s4695_s8 + $0x140] sm:$0xff] }
 0x7ce   : > { %1416 = vmatpush.msra.mxu1 %v3894_v45  ;;  %v3915_v45 = vld [vmem:[%s4695_s8 + $0x138] sm:$0xff] }
 0x7d0   : > { %v1234_v52 = vpop.permute.xlu0 %1233  ;;  %v1224_v58 = vpop.permute.xlu1 %1223  ;;  %1417 = vmatpush.msra.mxu1 %v3893_v46  ;;  %v3914_v46 = vld [vmem:[%s4695_s8 + $0x130] sm:$0xff] }
 0x7d1   : > { %v1244_v53 = vsel %vm639_vm4, %v1241_v51, %v1234_v52  ;;  %v1242_v61 = vsel %vm635_vm2, %v4898_v55, %v1224_v58  ;;  %v3892_v58 = vld [vmem:[%s4695_s8 + $0xe0] sm:$0xff] }
 0x7d2   : > { %v1045_v57 = vpop.f32.mrf.mxu3  ;;  %3886 = vmatmul.msk.f32.gmra.mxu3 %vm646_vm3, %v1244_v53  ;;  %v1245_v62 = vsel %vm639_vm4, %v1242_v61, %v1236_v56  ;;  %1418 = vmatpush.msra.mxu1 %v3892_v58  ;;  %v3889_v61 = vld [vmem:[%s4695_s8 + $0xc8] sm:$0xff]  ;;  %v3888_v56 = vld [vmem:[%s4695_s8 + $0xc0] sm:$0xff] }
 0x7d3   : > { %v1054_v59 = vmul.f32 2.0, %v1045_v57 }
 0x7d5   : > { %v1057_v60 = vsub.f32 %v1054_v59, %v4943_v21  ;;  %v3891_v59 = vld [vmem:[%s4695_s8 + $0xd8] sm:$0xff] }
 0x7d6   : > { %1419 = vmatpush.msra.mxu1 %v3891_v59 }
 0x7d7   : > { %1074 = vrot.lane.b32.xlu1 %v1057_v60, %s4542_s19  ;;  %v3890_v60 = vld [vmem:[%s4695_s8 + $0xd0] sm:$0xff] }
 0x7d8   : > { %v1063_v15 = vpop.permute.xlu0 %1062  ;;  %1420 = vmatpush.msra.mxu1 %v3890_v60 }
 0x7d9   : > { %v1083_v16 = vsel %vm639_vm4, %v4943_v21, %v1063_v15 }
 0x7da   : > { %v1048_v63 = vpop.f32.mrf.mxu3  ;;  %3887 = vmatmul.msk.f32.gmra.mxu3 %vm646_vm3, %v1245_v62  ;;  %1421 = vmatpush.msra.mxu1 %v3889_v61 }
 0x7db   : > { %v1055_v0 = vmul.f32 2.0, %v1048_v63 }
 0x7dc   : > { %1422 = vmatpush.msra.mxu1 %v3888_v56 }
 0x7dd   : > { %v1058_v1 = vsub.f32 %v1055_v0, %v4939_v20 }
 0x7df   : > { %1066 = vrot.lane.b32.xlu1 %v4962_v27, %s4541_s3  ;;  %1076 = vrot.lane.b32.xlu0 %v1058_v1, %s4542_s19 }
 0x7e2   : > { %v1051_v55 = vpop.f32.mrf.mxu3 }
 0x7e3   : > { %v1056_v2 = vmul.f32 2.0, %v1051_v55 }
 0x7e5   : > { %v1059_v6 = vsub.f32 %v1056_v2, %v4937_v19 }
 0x7e7   : > { %1078 = vrot.lane.b32.xlu2 %v1059_v6, %s4542_s19 }
 0x841   : > { %v1079_v29 = vpop.permute.xlu2 %1078 }
 0x849   : > { %v1075_v17 = vpop.permute.xlu1 %1074 }
 0x84a   : > { %v1086_v18 = vsel %vm788_vm5, %v1083_v16, %v1075_v17  ;;  %v4359_v17 = vld [vmem:[%s4834_s26 + $0x2] ss:$0 sm:$0xff] }
 0x84b   : > { %3861 = vmatmul.msk.f32.vlgmr.msra.gmra.mxu2 %vm795_vm6, %v1086_v18 }
 0x84d   : > { %v1275_v22 = vpop.f32.mrf.mxu3 }
 0x84e   : > { %v1276_v20 = vadd.f32 %v4357_v31, %v1275_v22 }
 0x850   : > { %v1284_v36 = vmax.f32 %v1276_v20, 0.0  ;;  %v3918_v20 = vld [vmem:[%s4695_s8 + $0x150] sm:$0xff] }
 0x851   : > { %v1077_v25 = vpop.permute.xlu0 %1076  ;;  %v1067_v27 = vpop.permute.xlu1 %1066 }
 0x852   : > { %v1087_v26 = vsel %vm788_vm5, %v1084_v24, %v1077_v25  ;;  %v1085_v21 = vsel %vm639_vm4, %v4937_v19, %v1067_v27 }
 0x853   : > { %3862 = vmatmul.msk.f32.gmra.mxu2 %vm795_vm6, %v1087_v26  ;;  %v1088_v30 = vsel %vm788_vm5, %v1085_v21, %v1079_v29 }
 0x855   : > { %v1278_v28 = vpop.f32.mrf.mxu3 }
 0x856   : > { %v1279_v33 = vadd.f32 %v4357_v31, %v1278_v28 }
 0x858   : > { %v5037_v35 = vmax.f32 %v1279_v33, 0.0  ;;  %v3920_v33 = vld [vmem:[%s4695_s8 + $0x160] sm:$0xff] }
 0x85b   : > { %3863 = vmatmul.msk.f32.gmra.mxu2 %vm795_vm6, %v1088_v30  ;;  %v3923_v30 = vld [vmem:[%s4695_s8 + $0x178] sm:$0xff] }
 0x85d   : > { %v1281_v32 = vpop.f32.mrf.mxu3 }
 0x85e   : > { %v1282_v34 = vadd.f32 %v4357_v31, %v1281_v32  ;;  %v3922_v31 = vld [vmem:[%s4695_s8 + $0x170] sm:$0xff]  ;;  %v3921_v32 = vld [vmem:[%s4695_s8 + $0x168] sm:$0xff] }
 0x860   : > { %v5035_v3 = vmax.f32 %v1282_v34, 0.0  ;;  %v3919_v34 = vld [vmem:[%s4695_s8 + $0x158] sm:$0xff] }
 0x862   : > { %3901 = vmatpush.msk.msrb.mxu2 %vm547_vm0, %v5035_v3 }
 0x864   : > { %1319 = vmatpush.msrb.mxu2 %v5037_v35 }
 0x866   : > { %1320 = vmatpush.msrb.mxu2 %v1284_v36 }
 0x867   : > { %3902 = vmatmul.msk.f32.vlgmr.msrb.gmra.mxu2 %vm537_vm1, %v4922_v9 }
 0x86f   : > { %3903 = vmatmul.msk.f32.gmra.mxu2 %vm537_vm1, %v4927_v10 }
 0x877   : > { %3904 = vmatmul.msk.f32.gmra.mxu2 %vm537_vm1, %v4932_v11 }
 0x8ce   : > { %v5048_v19 = vpop.f32.mrf.mxu2 }
 0x8d6   : > { %v5050_v4 = vpop.f32.mrf.mxu2 }
 0x8de   : > { %v5052_v37 = vpop.f32.mrf.mxu2 }
 0x8ea   : > { %v1322_v38 = vpop.f32.mrf.mxu2 }
 0x8eb   : > { %1368 = vrot.lane.b32.xlu0 %v1322_v38, %s4541_s3 }
 0x8f2   : > { %v1325_v5 = vpop.f32.mrf.mxu2 }
 0x8f3   : > { %1370 = vrot.lane.b32.xlu2 %v1325_v5, %s4541_s3 }
 0x8fa   : > { %v1328_v39 = vpop.f32.mrf.mxu2 }
 0x8fb   : > { %3905 = vmatpush.msk.msra.mxu0 %vm547_vm0, %v1328_v39 }
 0x8fd   : > { %1348 = vmatpush.msra.mxu0 %v1325_v5 }
 0x8ff   : > { %1349 = vmatpush.msra.mxu0 %v1322_v38 }
 0x900   : > { %3906 = vmatmul.msk.f32.vlgmr.msra.gmra.mxu0 %vm537_vm1, %v4922_v9 }
 0x901   : > { %1560 = vmatpush.msrb.mxu0 %v3923_v30 }
 0x903   : > { %1561 = vmatpush.msrb.mxu0 %v3922_v31 }
 0x905   : > { %1562 = vmatpush.msrb.mxu0 %v3921_v32 }
 0x907   : > { %1563 = vmatpush.msrb.mxu0 %v3920_v33 }
 0x908   : > { %3907 = vmatmul.msk.f32.gmra.mxu0 %vm537_vm1, %v4927_v10 }
 0x909   : > { %1564 = vmatpush.msrb.mxu0 %v3919_v34 }
 0x90b   : > { %1565 = vmatpush.msrb.mxu0 %v3918_v20 }
 0x910   : > { %3908 = vmatmul.msk.f32.gmra.mxu0 %vm537_vm1, %v4932_v11 }
 0x94d   : > { %v1371_v55 = vpop.permute.xlu2 %1370 }
 0x94e   : > { %v1390_v2 = vsel %vm639_vm4, %v5037_v35, %v1371_v55  ;;  %v5163_v55 = vld [vmem:[%s4723_s17 + $0x38] sm:$0xff] }
 0x95d   : > { %v1369_v62 = vpop.permute.xlu0 %1368 }
 0x95e   : > { %v1389_v63 = vsel %vm639_vm4, %v1284_v36, %v1369_v62 }
 0x97d   : > { %v1351_v47 = vpop.f32.mrf.mxu0 }
 0x97e   : > { %v1360_v48 = vmul.f32 2.0, %v1351_v47  ;;  %v3913_v47 = vld [vmem:[%s4695_s8 + $0x128] sm:$0xff] }
 0x980   : > { %v1363_v49 = vsub.f32 %v1360_v48, %v1284_v36  ;;  %v3912_v48 = vld [vmem:[%s4695_s8 + $0x120] sm:$0xff] }
 0x982   : > { %1380 = vrot.lane.b32.xlu1 %v1363_v49, %s4542_s19  ;;  %v5134_v49 = vld [vmem:[%s4718_s16 + $0x40] sm:$0x7] }
 0x985   : > { %v1354_v50 = vpop.f32.mrf.mxu0 }
 0x986   : > { %v1361_v51 = vmul.f32 2.0, %v1354_v50  ;;  %v5137_v50 = vld [vmem:[%s4718_s16 + $0x38] sm:$0xff] }
 0x988   : > { %v1364_v52 = vsub.f32 %v1361_v51, %v5037_v35  ;;  %v5142_v51 = vld [vmem:[%s4718_s16 + $0x30] sm:$0xff] }
 0x98a   : > { %1372 = vrot.lane.b32.xlu1 %v1328_v39, %s4541_s3  ;;  %1382 = vrot.lane.b32.xlu0 %v1364_v52, %s4542_s19 }
 0x98d   : > { %v1357_v53 = vpop.f32.mrf.mxu0 }
 0x98e   : > { %v1362_v54 = vmul.f32 2.0, %v1357_v53 }
 0x990   : > { %v1365_v57 = vsub.f32 %v1362_v54, %v5035_v3 }
 0x992   : > { %1384 = vrot.lane.b32.xlu2 %v1365_v57, %s4542_s19 }
 0x9ec   : > { %v1385_v13 = vpop.permute.xlu2 %1384 }
 0x9f4   : > { %v1381_v0 = vpop.permute.xlu1 %1380 }
 0x9f5   : > { %v1392_v1 = vsel %vm788_vm5, %v1389_v63, %v1381_v0 }
 0x9f6   : > { %3909 = vmatmul.msk.f32.vlgmr.msra.gmra.mxu1 %vm795_vm6, %v1392_v1  ;;  %v5158_v1 = vld [vmem:[%s4723_s17 + $0x30] sm:$0xff] }
 0x9fc   : > { %v1383_v6 = vpop.permute.xlu0 %1382  ;;  %v1373_v8 = vpop.permute.xlu1 %1372 }
 0x9fd   : > { %v1393_v7 = vsel %vm788_vm5, %v1390_v2, %v1383_v6  ;;  %v1391_v12 = vsel %vm639_vm4, %v5035_v3, %v1373_v8  ;;  %v3917_v3 = vld [vmem:[%s4695_s8 + $0x148] sm:$0xff]  ;;  %v5168_v2 = vld [vmem:[%s4723_s17 + $0x40] sm:$0x7]  ;;  %v4360_v8 = vld [vmem:[%s4834_s26 + $0x3] ss:$0 sm:$0xff] }
 0x9fe   : > { %3910 = vmatmul.msk.f32.gmra.mxu1 %vm795_vm6, %v1393_v7  ;;  %v1394_v14 = vsel %vm788_vm5, %v1391_v12, %v1385_v13  ;;  %1566 = vmatpush.msrb.mxu0 %v3917_v3  ;;  %v3969_v3 = vld [vmem:[%s4768_s29 + $0x78] sm:$0xff] }
 0xa00   : > { %1567 = vmatpush.msrb.mxu0 %v3916_v44  ;;  %v3944_v44 = vld [vmem:[%s4704_s14 + $0xa0] sm:$0xff] }
 0xa02   : > { %1568 = vmatpush.msrb.mxu0 %v3915_v45 }
 0xa04   : > { %1569 = vmatpush.msrb.mxu0 %v3914_v46  ;;  %v3943_v46 = vld [vmem:[%s4704_s14 + $0x98] sm:$0xff] }
 0xa06   : > { %3911 = vmatmul.msk.f32.gmra.mxu1 %vm795_vm6, %v1394_v14  ;;  %1570 = vmatpush.msrb.mxu0 %v3913_v47  ;;  %v3942_v47 = vld [vmem:[%s4704_s14 + $0x90] sm:$0xff] }
 0xa08   : > { %1571 = vmatpush.msrb.mxu0 %v3912_v48 }
 0xa0a   : > { %3973 = vmatpush.msk.msra.mxu0 %vm547_vm0, %v5134_v49 }
 0xa0c   : > { %1774 = vmatpush.msra.mxu0 %v5137_v50 }
 0xa0e   : > { %1775 = vmatpush.msra.mxu0 %v5142_v51 }
 0xa73   : > { %v1424_v15 = vpop.f32.mrf.mxu1 }
 0xa74   : > { %v1425_v24 = vadd.f32 %v4359_v17, %v1424_v15 }
 0xa76   : > { %v1433_v27 = vmax.f32 %v1425_v24, 0.0 }
 0xa7b   : > { %v1427_v16 = vpop.f32.mrf.mxu1 }
 0xa7c   : > { %v1428_v22 = vadd.f32 %v4359_v17, %v1427_v16 }
 0xa7e   : > { %v5095_v26 = vmax.f32 %v1428_v22, 0.0 }
 0xa83   : > { %v1430_v18 = vpop.f32.mrf.mxu1 }
 0xa84   : > { %v1431_v23 = vadd.f32 %v4359_v17, %v1430_v18 }
 0xa86   : > { %v5093_v25 = vmax.f32 %v1431_v23, 0.0 }
 0xa88   : > { %3925 = vmatpush.msk.msra.mxu3 %vm547_vm0, %v5093_v25 }
 0xa8a   : > { %1468 = vmatpush.msra.mxu3 %v5095_v26 }
 0xa8c   : > { %1469 = vmatpush.msra.mxu3 %v1433_v27 }
 0xa8d   : > { %3926 = vmatmul.msk.f32.vlgmr.msra.gmra.mxu3 %vm537_vm1, %v4922_v9 }
 0xa95   : > { %3927 = vmatmul.msk.f32.gmra.mxu3 %vm537_vm1, %v4927_v10 }
 0xa9d   : > { %3928 = vmatmul.msk.f32.gmra.mxu3 %vm537_vm1, %v4932_v11 }
 0xb10   : > { %v1471_v28 = vpop.f32.mrf.mxu3 }
 0xb11   : > { %1517 = vrot.lane.b32.xlu0 %v1471_v28, %s4541_s3 }
 0xb18   : > { %v1474_v21 = vpop.f32.mrf.mxu3 }
 0xb19   : > { %1519 = vrot.lane.b32.xlu2 %v1474_v21, %s4541_s3 }
 0xb20   : > { %v1477_v29 = vpop.f32.mrf.mxu3 }
 0xb21   : > { %3929 = vmatpush.msk.msra.mxu2 %vm547_vm0, %v1477_v29 }
 0xb23   : > { %1497 = vmatpush.msra.mxu2 %v1474_v21 }
 0xb25   : > { %1498 = vmatpush.msra.mxu2 %v1471_v28  ;;  %v3971_v28 = vld [vmem:[%s4768_s29 + $0x88] sm:$0xff] }
 0xb26   : > { %3930 = vmatmul.msk.f32.vlgmr.msra.gmra.mxu2 %vm537_vm1, %v4922_v9 }
 0xb2e   : > { %3931 = vmatmul.msk.f32.gmra.mxu2 %vm537_vm1, %v4927_v10 }
 0xb36   : > { %3932 = vmatmul.msk.f32.gmra.mxu2 %vm537_vm1, %v4932_v11 }
 0xb73   : > { %v1520_v58 = vpop.permute.xlu2 %1519 }
 0xb74   : > { %v1539_v59 = vsel %vm639_vm4, %v5095_v26, %v1520_v58 }
 0xb83   : > { %v1518_v52 = vpop.permute.xlu0 %1517 }
 0xb84   : > { %v1538_v53 = vsel %vm639_vm4, %v1433_v27, %v1518_v52 }
 0xba9   : > { %v1500_v35 = vpop.f32.mrf.mxu2 }
 0xbaa   : > { %v1509_v36 = vmul.f32 2.0, %v1500_v35  ;;  %v3968_v35 = vld [vmem:[%s4768_s29 + $0x70] sm:$0xff] }
 0xbac   : > { %v1512_v38 = vsub.f32 %v1509_v36, %v1433_v27  ;;  %v3966_v36 = vld [vmem:[%s4768_s29 + $0x60] sm:$0xff] }
 0xbae   : > { %1529 = vrot.lane.b32.xlu1 %v1512_v38, %s4542_s19 }
 0xbb1   : > { %v1503_v5 = vpop.f32.mrf.mxu2 }
 0xbb2   : > { %v1510_v39 = vmul.f32 2.0, %v1503_v5  ;;  %v3947_v5 = vld [vmem:[%s4704_s14 + $0xb8] sm:$0xff] }
 0xbb3   : > { %1709 = vmatpush.msrb.mxu2 %v3947_v5 }
 0xbb4   : > { %v1513_v40 = vsub.f32 %v1510_v39, %v5095_v26  ;;  %v3946_v39 = vld [vmem:[%s4704_s14 + $0xb0] sm:$0xff] }
 0xbb5   : > { %1710 = vmatpush.msrb.mxu2 %v3946_v39 }
 0xbb6   : > { %1521 = vrot.lane.b32.xlu1 %v1477_v29, %s4541_s3  ;;  %1531 = vrot.lane.b32.xlu0 %v1513_v40, %s4542_s19 }
 0xbb9   : > { %v1506_v41 = vpop.f32.mrf.mxu2 }
 0xbba   : > { %v1511_v42 = vmul.f32 2.0, %v1506_v41 }
 0xbbc   : > { %v1514_v43 = vsub.f32 %v1511_v42, %v5093_v25 }
 0xbbe   : > { %1533 = vrot.lane.b32.xlu2 %v1514_v43, %s4542_s19  ;;  %v3945_v43 = vld [vmem:[%s4704_s14 + $0xa8] sm:$0xff] }
 0xbbf   : > { %1711 = vmatpush.msrb.mxu2 %v3945_v43  ;;  %v3992_v43 = vld [vmem:[%s4695_s8 + $0x1c0] sm:$0xff] }
 0xbc1   : > { %1712 = vmatpush.msrb.mxu2 %v3944_v44  ;;  %v3991_v44 = vld [vmem:[%s4695_s8 + $0x1b8] sm:$0xff] }
 0xbc3   : > { %1713 = vmatpush.msrb.mxu2 %v3943_v46  ;;  %v3989_v46 = vld [vmem:[%s4695_s8 + $0x1a8] sm:$0xff] }
 0xbc5   : > { %1714 = vmatpush.msrb.mxu2 %v3942_v47 }
 0xc18   : > { %v1534_v63 = vpop.permute.xlu2 %1533 }
 0xc20   : > { %v1530_v54 = vpop.permute.xlu1 %1529 }
 0xc21   : > { %v1541_v57 = vsel %vm788_vm5, %v1538_v53, %v1530_v54  ;;  %v3941_v53 = vld [vmem:[%s4704_s14 + $0x88] sm:$0xff] }
 0xc22   : > { %3933 = vmatmul.msk.f32.vlgmr.msrb.gmra.mxu0 %vm795_vm6, %v1541_v57  ;;  %1715 = vmatpush.msrb.mxu2 %v3941_v53 }
 0xc28   : > { %v1532_v60 = vpop.permute.xlu0 %1531  ;;  %v1522_v56 = vpop.permute.xlu1 %1521 }
 0xc29   : > { %v1542_v61 = vsel %vm788_vm5, %v1539_v59, %v1532_v60  ;;  %v1540_v62 = vsel %vm639_vm4, %v5093_v25, %v1522_v56 }
 0xc2a   : > { %3934 = vmatmul.msk.f32.gmra.mxu0 %vm795_vm6, %v1542_v61  ;;  %v1543_v0 = vsel %vm788_vm5, %v1540_v62, %v1534_v63 }
 0xc32   : > { %3935 = vmatmul.msk.f32.gmra.mxu0 %vm795_vm6, %v1543_v0 }
 0xc3a   : > { %3974 = vmatmul.msk.f32.vlgmr.msra.gmra.mxu0 %vm537_vm1, %v5158_v1 }
 0xc42   : > { %3975 = vmatmul.msk.f32.gmra.mxu0 %vm537_vm1, %v5163_v55 }
 0xc4a   : > { %3976 = vmatmul.msk.f32.gmra.mxu0 %vm537_vm1, %v5168_v2 }
 0xc9f   : > { %v1573_v6 = vpop.f32.mrf.mxu0 }
 0xca0   : > { %v1574_v15 = vadd.f32 %v4360_v8, %v1573_v6 }
 0xca2   : > { %v5179_v18 = vmax.f32 %v1574_v15, 0.0 }
 0xca7   : > { %v1576_v7 = vpop.f32.mrf.mxu0 }
 0xca8   : > { %v1577_v13 = vadd.f32 %v4360_v8, %v1576_v7  ;;  %v3940_v7 = vld [vmem:[%s4704_s14 + $0x80] sm:$0xff] }
 0xca9   : > { %1716 = vmatpush.msrb.mxu2 %v3940_v7 }
 0xcaa   : > { %v5175_v17 = vmax.f32 %v1577_v13, 0.0  ;;  %v3937_v13 = vld [vmem:[%s4704_s14 + $0x68] sm:$0xff] }
 0xcaf   : > { %v1579_v12 = vpop.f32.mrf.mxu0 }
 0xcb0   : > { %v1580_v14 = vadd.f32 %v4360_v8, %v1579_v12  ;;  %v3939_v8 = vld [vmem:[%s4704_s14 + $0x78] sm:$0xff]  ;;  %v3938_v12 = vld [vmem:[%s4704_s14 + $0x70] sm:$0xff] }
 0xcb1   : > { %1717 = vmatpush.msrb.mxu2 %v3939_v8 }
 0xcb2   : > { %v5173_v16 = vmax.f32 %v1580_v14, 0.0  ;;  %v3936_v14 = vld [vmem:[%s4704_s14 + $0x60] sm:$0xff] }
 0xcb3   : > { %1718 = vmatpush.msrb.mxu2 %v3938_v12 }
 0xcb4   : > { %3949 = vmatpush.msk.msrb.mxu1 %vm547_vm0, %v5173_v16 }
 0xcb5   : > { %1719 = vmatpush.msrb.mxu2 %v3937_v13 }
 0xcb6   : > { %1617 = vmatpush.msrb.mxu1 %v5175_v17 }
 0xcb7   : > { %v1777_v22 = vpop.f32.mrf.mxu0  ;;  %1720 = vmatpush.msrb.mxu2 %v3936_v14 }
 0xcb8   : > { %1618 = vmatpush.msrb.mxu1 %v5179_v18  ;;  %1823 = vrot.lane.b32.xlu0 %v1777_v22, %s4540_s18 }
 0xcb9   : > { %3950 = vmatmul.msk.f32.vlgmr.msrb.gmra.mxu1 %vm537_vm1, %v4922_v9 }
 0xcbf   : > { %v1780_v23 = vpop.f32.mrf.mxu0 }
 0xcc0   : > { %1825 = vrot.lane.b32.xlu2 %v1780_v23, %s4540_s18 }
 0xcc1   : > { %3951 = vmatmul.msk.f32.gmra.mxu1 %vm537_vm1, %v4927_v10 }
 0xcc7   : > { %v1783_v24 = vpop.f32.mrf.mxu0 }
 0xcc8   : > { %3977 = vmatpush.msk.msra.mxu1 %vm547_vm0, %v1783_v24 }
 0xcc9   : > { %3952 = vmatmul.msk.f32.gmra.mxu1 %vm537_vm1, %v4932_v11 }
 0xcca   : > { %1803 = vmatpush.msra.mxu1 %v1780_v23 }
 0xccc   : > { %1804 = vmatpush.msra.mxu1 %v1777_v22 }
 0xcd1   : > { %3978 = vmatmul.msk.f32.vlgmr.msra.gmra.mxu1 %vm537_vm1, %v5158_v1 }
 0xcd9   : > { %3979 = vmatmul.msk.f32.gmra.mxu1 %vm537_vm1, %v5163_v55 }
 0xce1   : > { %3980 = vmatmul.msk.f32.gmra.mxu1 %vm537_vm1, %v5168_v2 }
 0xd1a   : > { %v1826_v45 = vpop.permute.xlu2 %1825 }
 0xd1b   : > { %v1845_v48 = vsel %vm635_vm2, %v5137_v50, %v1826_v45  ;;  %v3990_v45 = vld [vmem:[%s4695_s8 + $0x1b0] sm:$0xff] }
 0xd2a   : > { %v1824_v38 = vpop.permute.xlu0 %1823 }
 0xd2b   : > { %v1844_v40 = vsel %vm635_vm2, %v5142_v51, %v1824_v38 }
 0xd36   : > { %v1620_v25 = vpop.f32.mrf.mxu1 }
 0xd3e   : > { %v1623_v26 = vpop.f32.mrf.mxu1 }
 0xd46   : > { %v5198_v27 = vpop.f32.mrf.mxu1 }
 0xd47   : > { %3953 = vmatpush.msk.msrb.mxu3 %vm547_vm0, %v5198_v27 }
 0xd49   : > { %1646 = vmatpush.msrb.mxu3 %v1623_v26 }
 0xd4b   : > { %1647 = vmatpush.msrb.mxu3 %v1620_v25 }
 0xd4c   : > { %3954 = vmatmul.msk.f32.vlgmr.msrb.gmra.mxu3 %vm537_vm1, %v4922_v9 }
 0xd4d   : > { %1872 = vmatpush.msra.mxu3 %v3971_v28 }
 0xd4e   : > { %v1806_v21 = vpop.f32.mrf.mxu1 }
 0xd4f   : > { %v1815_v29 = vmul.f32 2.0, %v1806_v21 }
 0xd51   : > { %v1818_v30 = vsub.f32 %v1815_v29, %v5142_v51 }
 0xd53   : > { %1835 = vrot.lane.b32.xlu1 %v1818_v30, %s4541_s3 }
 0xd54   : > { %3955 = vmatmul.msk.f32.gmra.mxu3 %vm537_vm1, %v4927_v10  ;;  %v3970_v10 = vld [vmem:[%s4768_s29 + $0x80] sm:$0xff] }
 0xd55   : > { %1873 = vmatpush.msra.mxu3 %v3970_v10 }
 0xd56   : > { %v1809_v31 = vpop.f32.mrf.mxu1 }
 0xd57   : > { %v1816_v32 = vmul.f32 2.0, %v1809_v31  ;;  %1874 = vmatpush.msra.mxu3 %v3969_v3 }
 0xd59   : > { %v1819_v33 = vsub.f32 %v1816_v32, %v5137_v50  ;;  %1875 = vmatpush.msra.mxu3 %v3968_v35 }
 0xd5b   : > { %1827 = vrot.lane.b32.xlu1 %v1783_v24, %s4540_s18  ;;  %1837 = vrot.lane.b32.xlu0 %v1819_v33, %s4541_s3  ;;  %v4361_v33 = vld [vmem:[%s4777_s10 + $0x2] ss:$0 sm:$0xff] }
 0xd5c   : > { %3956 = vmatmul.msk.f32.gmra.mxu3 %vm537_vm1, %v4932_v11  ;;  %v3967_v11 = vld [vmem:[%s4768_s29 + $0x68] sm:$0xff] }
 0xd5d   : > { %1876 = vmatpush.msra.mxu3 %v3967_v11 }
 0xd5e   : > { %v1812_v9 = vpop.f32.mrf.mxu1 }
 0xd5f   : > { %v1817_v34 = vmul.f32 2.0, %v1812_v9  ;;  %1877 = vmatpush.msra.mxu3 %v3966_v36 }
 0xd61   : > { %v1820_v20 = vsub.f32 %v1817_v34, %v5134_v49 }
 0xd63   : > { %1666 = vrot.lane.b32.xlu0 %v1620_v25, %s4541_s3  ;;  %1839 = vrot.lane.b32.xlu2 %v1820_v20, %s4541_s3 }
 0xd6b   : > { %1668 = vrot.lane.b32.xlu2 %v1623_v26, %s4541_s3 }
 0xdbd   : > { %v1840_v50 = vpop.permute.xlu2 %1839 }
 0xdc5   : > { %v1836_v41 = vpop.permute.xlu1 %1835  ;;  %v1669_v26 = vpop.permute.xlu2 %1668 }
 0xdc6   : > { %v1847_v42 = vsel %vm639_vm4, %v1844_v40, %v1836_v41  ;;  %v3995_v40 = vld [vmem:[%s4695_s8 + $0x1d8] sm:$0xff]  ;;  %v3994_v41 = vld [vmem:[%s4695_s8 + $0x1d0] sm:$0xff] }
 0xdc7   : > { %3981 = vmatmul.msk.f32.vlgmr.msra.gmra.mxu3 %vm646_vm3, %v1847_v42  ;;  %2015 = vmatpush.msrb.mxu1 %v3995_v40  ;;  %v3993_v42 = vld [vmem:[%s4695_s8 + $0x1c8] sm:$0xff] }
 0xdc9   : > { %2016 = vmatpush.msrb.mxu1 %v3994_v41 }
 0xdcb   : > { %2017 = vmatpush.msrb.mxu1 %v3993_v42 }
 0xdcd   : > { %v1838_v52 = vpop.permute.xlu0 %1837  ;;  %v1828_v57 = vpop.permute.xlu1 %1827  ;;  %2018 = vmatpush.msrb.mxu1 %v3992_v43 }
 0xdce   : > { %v1848_v51 = vsel %vm639_vm4, %v1845_v48, %v1838_v52  ;;  %v1846_v60 = vsel %vm635_vm2, %v5134_v49, %v1828_v57 }
 0xdcf   : > { %v1649_v54 = vpop.f32.mrf.mxu3  ;;  %3982 = vmatmul.msk.f32.gmra.mxu3 %vm646_vm3, %v1848_v51  ;;  %v1849_v61 = vsel %vm639_vm4, %v1846_v60, %v1840_v50  ;;  %2019 = vmatpush.msrb.mxu1 %v3991_v44  ;;  %v3988_v60 = vld [vmem:[%s4695_s8 + $0x1a0] sm:$0xff]  ;;  %v3987_v50 = vld [vmem:[%s4695_s8 + $0x198] sm:$0xff] }
 0xdd0   : > { %v1658_v58 = vmul.f32 2.0, %v1649_v54 }
 0xdd1   : > { %2020 = vmatpush.msrb.mxu1 %v3990_v45 }
 0xdd2   : > { %v1661_v59 = vsub.f32 %v1658_v58, %v5179_v18 }
 0xdd3   : > { %2021 = vmatpush.msrb.mxu1 %v3989_v46 }
 0xdd4   : > { %1678 = vrot.lane.b32.xlu1 %v1661_v59, %s4542_s19 }
 0xdd5   : > { %v1667_v15 = vpop.permute.xlu0 %1666  ;;  %2022 = vmatpush.msrb.mxu1 %v3988_v60 }
 0xdd6   : > { %v1687_v22 = vsel %vm639_vm4, %v5179_v18, %v1667_v15 }
 0xdd7   : > { %v1652_v56 = vpop.f32.mrf.mxu3  ;;  %3983 = vmatmul.msk.f32.gmra.mxu3 %vm646_vm3, %v1849_v61  ;;  %v3986_v61 = vld [vmem:[%s4695_s8 + $0x190] sm:$0xff]  ;;  %2023 = vmatpush.msrb.mxu1 %v3987_v50 }
 0xdd8   : > { %v1659_v62 = vmul.f32 2.0, %v1652_v56  ;;  %v3985_v56 = vld [vmem:[%s4695_s8 + $0x188] sm:$0xff] }
 0xdd9   : > { %2024 = vmatpush.msrb.mxu1 %v3986_v61 }
 0xdda   : > { %v1662_v63 = vsub.f32 %v1659_v62, %v5175_v17  ;;  %v3984_v62 = vld [vmem:[%s4695_s8 + $0x180] sm:$0xff] }
 0xddb   : > { %2025 = vmatpush.msrb.mxu1 %v3985_v56 }
 0xddc   : > { %1670 = vrot.lane.b32.xlu1 %v5198_v27, %s4541_s3  ;;  %1680 = vrot.lane.b32.xlu0 %v1662_v63, %s4542_s19  ;;  %v1688_v27 = vsel %vm639_vm4, %v5175_v17, %v1669_v26  ;;  %v4363_v26 = vld [vmem:[%s4834_s26 + $0x4] ss:$0 sm:$0xff] }
 0xddd   : > { %2026 = vmatpush.msrb.mxu1 %v3984_v62 }
 0xddf   : > { %v1655_v49 = vpop.f32.mrf.mxu3 }
 0xde0   : > { %v1660_v0 = vmul.f32 2.0, %v1655_v49 }
 0xde2   : > { %v1663_v6 = vsub.f32 %v1660_v0, %v5173_v16 }
 0xde4   : > { %1682 = vrot.lane.b32.xlu2 %v1663_v6, %s4542_s19 }
 0xe3e   : > { %v1683_v31 = vpop.permute.xlu2 %1682 }
 0xe46   : > { %v1679_v23 = vpop.permute.xlu1 %1678 }
 0xe47   : > { %v1690_v24 = vsel %vm788_vm5, %v1687_v22, %v1679_v23 }
 0xe48   : > { %3957 = vmatmul.msk.f32.vlgmr.msrb.gmra.mxu2 %vm795_vm6, %v1690_v24 }
 0xe4a   : > { %v1879_v25 = vpop.f32.mrf.mxu3 }
 0xe4b   : > { %v1880_v17 = vadd.f32 %v4361_v33, %v1879_v25 }
 0xe4d   : > { %v1888_v35 = vmax.f32 %v1880_v17, 0.0  ;;  %v4017_v17 = vld [vmem:[%s4695_s8 + $0x228] sm:$0xff] }
 0xe4e   : > { %v1681_v28 = vpop.permute.xlu0 %1680  ;;  %v1671_v29 = vpop.permute.xlu1 %1670 }
 0xe4f   : > { %v1691_v21 = vsel %vm788_vm5, %v1688_v27, %v1681_v28  ;;  %v1689_v18 = vsel %vm639_vm4, %v5173_v16, %v1671_v29 }
 0xe50   : > { %3958 = vmatmul.msk.f32.gmra.mxu2 %vm795_vm6, %v1691_v21  ;;  %v1692_v32 = vsel %vm788_vm5, %v1689_v18, %v1683_v31 }
 0xe52   : > { %v1882_v30 = vpop.f32.mrf.mxu3 }
 0xe53   : > { %v1883_v34 = vadd.f32 %v4361_v33, %v1882_v30 }
 0xe55   : > { %v5270_v3 = vmax.f32 %v1883_v34, 0.0  ;;  %v4019_v34 = vld [vmem:[%s4695_s8 + $0x238] sm:$0xff] }
 0xe58   : > { %3959 = vmatmul.msk.f32.gmra.mxu2 %vm795_vm6, %v1692_v32 }
 0xe5a   : > { %v1885_v9 = vpop.f32.mrf.mxu3 }
 0xe5b   : > { %v1886_v20 = vadd.f32 %v4361_v33, %v1885_v9 }
 0xe5d   : > { %v5268_v10 = vmax.f32 %v1886_v20, 0.0  ;;  %v4018_v20 = vld [vmem:[%s4695_s8 + $0x230] sm:$0xff] }
 0xe5f   : > { %3997 = vmatpush.msk.msra.mxu2 %vm547_vm0, %v5268_v10 }
 0xe61   : > { %1923 = vmatpush.msra.mxu2 %v5270_v3 }
 0xe63   : > { %1924 = vmatpush.msra.mxu2 %v1888_v35 }
 0xe64   : > { %3998 = vmatmul.msk.f32.vlgmr.msra.gmra.mxu2 %vm537_vm1, %v5158_v1 }
 0xe6c   : > { %3999 = vmatmul.msk.f32.gmra.mxu2 %vm537_vm1, %v5163_v55 }
 0xe74   : > { %4000 = vmatmul.msk.f32.gmra.mxu2 %vm537_vm1, %v5168_v2 }
 0xecb   : > { %v5281_v16 = vpop.f32.mrf.mxu2 }
 0xed3   : > { %v5283_v11 = vpop.f32.mrf.mxu2 }
 0xedb   : > { %v5285_v36 = vpop.f32.mrf.mxu2 }
 0xee7   : > { %v1926_v38 = vpop.f32.mrf.mxu2 }
 0xee8   : > { %1972 = vrot.lane.b32.xlu0 %v1926_v38, %s4541_s3 }
 0xeef   : > { %v1929_v5 = vpop.f32.mrf.mxu2 }
 0xef0   : > { %1974 = vrot.lane.b32.xlu2 %v1929_v5, %s4541_s3 }
 0xef7   : > { %v1932_v39 = vpop.f32.mrf.mxu2 }
 0xef8   : > { %4001 = vmatpush.msk.msrb.mxu0 %vm547_vm0, %v1932_v39 }
 0xefa   : > { %1952 = vmatpush.msrb.mxu0 %v1929_v5 }
 0xefc   : > { %1953 = vmatpush.msrb.mxu0 %v1926_v38  ;;  %v4013_v38 = vld [vmem:[%s4695_s8 + $0x208] sm:$0xff] }
 0xefd   : > { %4002 = vmatmul.msk.f32.vlgmr.msrb.gmra.mxu0 %vm537_vm1, %v5158_v1 }
 0xefe   : > { %2164 = vmatpush.msra.mxu0 %v4019_v34  ;;  %v4067_v34 = vld [vmem:[%s4768_s29 + $0xb8] sm:$0xff] }
 0xf00   : > { %2165 = vmatpush.msra.mxu0 %v4018_v20 }
 0xf02   : > { %2166 = vmatpush.msra.mxu0 %v4017_v17 }
 0xf05   : > { %4003 = vmatmul.msk.f32.gmra.mxu0 %vm537_vm1, %v5163_v55 }
 0xf0d   : > { %4004 = vmatmul.msk.f32.gmra.mxu0 %vm537_vm1, %v5168_v2 }
 0xf4a   : > { %v1975_v7 = vpop.permute.xlu2 %1974 }
 0xf4b   : > { %v1994_v8 = vsel %vm639_vm4, %v5270_v3, %v1975_v7 }
 0xf5a   : > { %v1973_v63 = vpop.permute.xlu0 %1972 }
 0xf5b   : > { %v1993_v49 = vsel %vm639_vm4, %v1888_v35, %v1973_v63 }
 0xf7a   : > { %v1955_v47 = vpop.f32.mrf.mxu0 }
 0xf7b   : > { %v1964_v48 = vmul.f32 2.0, %v1955_v47  ;;  %v4012_v47 = vld [vmem:[%s4695_s8 + $0x200] sm:$0xff] }
 0xf7d   : > { %v1967_v52 = vsub.f32 %v1964_v48, %v1888_v35  ;;  %v4014_v35 = vld [vmem:[%s4695_s8 + $0x210] sm:$0xff]  ;;  %v4011_v48 = vld [vmem:[%s4695_s8 + $0x1f8] sm:$0xff] }
 0xf7f   : > { %1984 = vrot.lane.b32.xlu1 %v1967_v52, %s4542_s19  ;;  %v4010_v52 = vld [vmem:[%s4695_s8 + $0x1f0] sm:$0xff] }
 0xf82   : > { %v1958_v51 = vpop.f32.mrf.mxu0 }
 0xf83   : > { %v1965_v53 = vmul.f32 2.0, %v1958_v51  ;;  %v4009_v51 = vld [vmem:[%s4695_s8 + $0x1e8] sm:$0xff] }
 0xf85   : > { %v1968_v54 = vsub.f32 %v1965_v53, %v5270_v3  ;;  %v4015_v3 = vld [vmem:[%s4695_s8 + $0x218] sm:$0xff]  ;;  %v4008_v53 = vld [vmem:[%s4695_s8 + $0x1e0] sm:$0xff] }
 0xf87   : > { %1976 = vrot.lane.b32.xlu1 %v1932_v39, %s4541_s3  ;;  %1986 = vrot.lane.b32.xlu0 %v1968_v54, %s4542_s19  ;;  %v5367_v54 = vld [vmem:[%s4718_s16 + $0x58] sm:$0x7] }
 0xf8a   : > { %v1961_v57 = vpop.f32.mrf.mxu0 }
 0xf8b   : > { %v1966_v58 = vmul.f32 2.0, %v1961_v57  ;;  %v5370_v57 = vld [vmem:[%s4718_s16 + $0x50] sm:$0xff] }
 0xf8d   : > { %v1969_v59 = vsub.f32 %v1966_v58, %v5268_v10  ;;  %v5375_v58 = vld [vmem:[%s4718_s16 + $0x48] sm:$0xff] }
 0xf8f   : > { %1988 = vrot.lane.b32.xlu2 %v1969_v59, %s4542_s19 }
 0xfe9   : > { %v1989_v22 = vpop.permute.xlu2 %1988 }
 0xff1   : > { %v1985_v0 = vpop.permute.xlu1 %1984 }
 0xff2   : > { %v1996_v6 = vsel %vm788_vm5, %v1993_v49, %v1985_v0 }
 0xff3   : > { %4005 = vmatmul.msk.f32.vlgmr.msrb.gmra.mxu1 %vm795_vm6, %v1996_v6 }
 0xff9   : > { %v1987_v12 = vpop.permute.xlu0 %1986  ;;  %v1977_v14 = vpop.permute.xlu1 %1976 }
 0xffa   : > { %v1997_v13 = vsel %vm788_vm5, %v1994_v8, %v1987_v12  ;;  %v1995_v15 = vsel %vm639_vm4, %v5268_v10, %v1977_v14  ;;  %v4016_v10 = vld [vmem:[%s4695_s8 + $0x220] sm:$0xff]  ;;  %v5391_v12 = vld [vmem:[%s4723_s17 + $0x48] sm:$0xff]  ;;  %v5401_v14 = vld [vmem:[%s4723_s17 + $0x58] sm:$0x7] }
 0xffb   : > { %4006 = vmatmul.msk.f32.gmra.mxu1 %vm795_vm6, %v1997_v13  ;;  %v1998_v23 = vsel %vm788_vm5, %v1995_v15, %v1989_v22  ;;  %2167 = vmatpush.msra.mxu0 %v4016_v10  ;;  %v5396_v13 = vld [vmem:[%s4723_s17 + $0x50] sm:$0xff] }
 0xffd   : > { %2168 = vmatpush.msra.mxu0 %v4015_v3 }
 0xfff   : > { %2169 = vmatpush.msra.mxu0 %v4014_v35 }
0x1001   : > { %2170 = vmatpush.msra.mxu0 %v4013_v38 }
0x1003   : > { %4007 = vmatmul.msk.f32.gmra.mxu1 %vm795_vm6, %v1998_v23  ;;  %2171 = vmatpush.msra.mxu0 %v4012_v47  ;;  %v4364_v23 = vld [vmem:[%s4834_s26 + $0x5] ss:$0 sm:$0xff] }
0x1005   : > { %2172 = vmatpush.msra.mxu0 %v4011_v48 }
0x1007   : > { %2173 = vmatpush.msra.mxu0 %v4010_v52  ;;  %v4041_v52 = vld [vmem:[%s4704_s14 + $0x108] sm:$0xff] }
0x1009   : > { %2174 = vmatpush.msra.mxu0 %v4009_v51  ;;  %v4040_v51 = vld [vmem:[%s4704_s14 + $0x100] sm:$0xff] }
0x100b   : > { %2175 = vmatpush.msra.mxu0 %v4008_v53 }
0x100d   : > { %4069 = vmatpush.msk.msrb.mxu0 %vm547_vm0, %v5367_v54 }
0x100f   : > { %2378 = vmatpush.msrb.mxu0 %v5370_v57 }
0x1011   : > { %2379 = vmatpush.msrb.mxu0 %v5375_v58 }
0x1070   : > { %v2028_v24 = vpop.f32.mrf.mxu1 }
0x1071   : > { %v2029_v29 = vadd.f32 %v4363_v26, %v2028_v24 }
0x1073   : > { %v2037_v31 = vmax.f32 %v2029_v29, 0.0 }
0x1078   : > { %v2031_v25 = vpop.f32.mrf.mxu1 }
0x1079   : > { %v2032_v28 = vadd.f32 %v4363_v26, %v2031_v25 }
0x107b   : > { %v5328_v18 = vmax.f32 %v2032_v28, 0.0 }
0x1080   : > { %v2034_v27 = vpop.f32.mrf.mxu1 }
0x1081   : > { %v2035_v21 = vadd.f32 %v4363_v26, %v2034_v27 }
0x1083   : > { %v5326_v30 = vmax.f32 %v2035_v21, 0.0 }
0x1085   : > { %4021 = vmatpush.msk.msrb.mxu3 %vm547_vm0, %v5326_v30 }
0x1087   : > { %2072 = vmatpush.msrb.mxu3 %v5328_v18 }
0x1089   : > { %2073 = vmatpush.msrb.mxu3 %v2037_v31 }
0x108a   : > { %4022 = vmatmul.msk.f32.vlgmr.msrb.gmra.mxu3 %vm537_vm1, %v5158_v1 }
0x1092   : > { %4023 = vmatmul.msk.f32.gmra.mxu3 %vm537_vm1, %v5163_v55 }
0x109a   : > { %4024 = vmatmul.msk.f32.gmra.mxu3 %vm537_vm1, %v5168_v2 }
0x110d   : > { %v2075_v32 = vpop.f32.mrf.mxu3 }
0x110e   : > { %2121 = vrot.lane.b32.xlu0 %v2075_v32, %s4541_s3 }
0x1115   : > { %v2078_v33 = vpop.f32.mrf.mxu3 }
0x1116   : > { %2123 = vrot.lane.b32.xlu2 %v2078_v33, %s4541_s3 }
0x111d   : > { %v2081_v9 = vpop.f32.mrf.mxu3 }
0x111e   : > { %4025 = vmatpush.msk.msrb.mxu2 %vm547_vm0, %v2081_v9 }
0x1120   : > { %2101 = vmatpush.msrb.mxu2 %v2078_v33 }
0x1122   : > { %2102 = vmatpush.msrb.mxu2 %v2075_v32 }
0x1123   : > { %4026 = vmatmul.msk.f32.vlgmr.msrb.gmra.mxu2 %vm537_vm1, %v5158_v1 }
0x112b   : > { %4027 = vmatmul.msk.f32.gmra.mxu2 %vm537_vm1, %v5163_v55 }
0x1133   : > { %4028 = vmatmul.msk.f32.gmra.mxu2 %vm537_vm1, %v5168_v2 }
0x1170   : > { %v2124_v56 = vpop.permute.xlu2 %2123 }
0x1171   : > { %v2143_v62 = vsel %vm639_vm4, %v5328_v18, %v2124_v56  ;;  %v4037_v56 = vld [vmem:[%s4704_s14 + $0xe8] sm:$0xff] }
0x1180   : > { %v2122_v59 = vpop.permute.xlu0 %2121 }
0x1181   : > { %v2142_v60 = vsel %vm639_vm4, %v2037_v31, %v2122_v59  ;;  %v4039_v59 = vld [vmem:[%s4704_s14 + $0xf8] sm:$0xff] }
0x11a6   : > { %v2104_v5 = vpop.f32.mrf.mxu2 }
0x11a7   : > { %v2113_v39 = vmul.f32 2.0, %v2104_v5 }
0x11a9   : > { %v2116_v40 = vsub.f32 %v2113_v39, %v2037_v31 }
0x11ab   : > { %2133 = vrot.lane.b32.xlu1 %v2116_v40, %s4542_s19  ;;  %v4065_v40 = vld [vmem:[%s4768_s29 + $0xa8] sm:$0xff] }
0x11ae   : > { %v2107_v41 = vpop.f32.mrf.mxu2 }
0x11af   : > { %v2114_v42 = vmul.f32 2.0, %v2107_v41  ;;  %v4064_v41 = vld [vmem:[%s4768_s29 + $0xa0] sm:$0xff] }
0x11b1   : > { %v2117_v43 = vsub.f32 %v2114_v42, %v5328_v18  ;;  %v4062_v42 = vld [vmem:[%s4768_s29 + $0x90] sm:$0xff] }
0x11b3   : > { %2125 = vrot.lane.b32.xlu1 %v2081_v9, %s4541_s3  ;;  %2135 = vrot.lane.b32.xlu0 %v2117_v43, %s4542_s19 }
0x11b6   : > { %v2110_v44 = vpop.f32.mrf.mxu2 }
0x11b7   : > { %v2115_v45 = vmul.f32 2.0, %v2110_v44  ;;  %v4043_v44 = vld [vmem:[%s4704_s14 + $0x118] sm:$0xff] }
0x11b8   : > { %2313 = vmatpush.msra.mxu2 %v4043_v44 }
0x11b9   : > { %v2118_v46 = vsub.f32 %v2115_v45, %v5326_v30  ;;  %v4042_v45 = vld [vmem:[%s4704_s14 + $0x110] sm:$0xff] }
0x11ba   : > { %2314 = vmatpush.msra.mxu2 %v4042_v45 }
0x11bb   : > { %2137 = vrot.lane.b32.xlu2 %v2118_v46, %s4542_s19 }
0x11bc   : > { %2315 = vmatpush.msra.mxu2 %v4041_v52  ;;  %v4091_v52 = vld [vmem:[%s4695_s8 + $0x298] sm:$0xff] }
0x11be   : > { %2316 = vmatpush.msra.mxu2 %v4040_v51  ;;  %v4090_v51 = vld [vmem:[%s4695_s8 + $0x290] sm:$0xff] }
0x11c0   : > { %2317 = vmatpush.msra.mxu2 %v4039_v59  ;;  %v4088_v59 = vld [vmem:[%s4695_s8 + $0x280] sm:$0xff] }
0x1215   : > { %v2138_v7 = vpop.permute.xlu2 %2137 }
0x121d   : > { %v2134_v50 = vpop.permute.xlu1 %2133 }
0x121e   : > { %v2145_v61 = vsel %vm788_vm5, %v2142_v60, %v2134_v50  ;;  %v4038_v60 = vld [vmem:[%s4704_s14 + $0xf0] sm:$0xff] }
0x121f   : > { %4029 = vmatmul.msk.f32.vlgmr.msra.gmra.mxu0 %vm795_vm6, %v2145_v61  ;;  %2318 = vmatpush.msra.mxu2 %v4038_v60  ;;  %v4087_v60 = vld [vmem:[%s4695_s8 + $0x278] sm:$0xff] }
0x1221   : > { %2319 = vmatpush.msra.mxu2 %v4037_v56 }
0x1225   : > { %v2136_v63 = vpop.permute.xlu0 %2135  ;;  %v2126_v0 = vpop.permute.xlu1 %2125 }
0x1226   : > { %v2146_v49 = vsel %vm788_vm5, %v2143_v62, %v2136_v63  ;;  %v2144_v6 = vsel %vm639_vm4, %v5326_v30, %v2126_v0 }
0x1227   : > { %4030 = vmatmul.msk.f32.gmra.mxu0 %vm795_vm6, %v2146_v49  ;;  %v2147_v8 = vsel %vm788_vm5, %v2144_v6, %v2138_v7 }
0x122f   : > { %4031 = vmatmul.msk.f32.gmra.mxu0 %vm795_vm6, %v2147_v8 }
0x1237   : > { %4070 = vmatmul.msk.f32.vlgmr.msrb.gmra.mxu0 %vm537_vm1, %v5391_v12 }
0x123f   : > { %4071 = vmatmul.msk.f32.gmra.mxu0 %vm537_vm1, %v5396_v13 }
0x1247   : > { %4072 = vmatmul.msk.f32.gmra.mxu0 %vm537_vm1, %v5401_v14 }
0x129c   : > { %v2177_v15 = vpop.f32.mrf.mxu0 }
0x129d   : > { %v2178_v27 = vadd.f32 %v4364_v23, %v2177_v15 }
0x129f   : > { %v5412_v29 = vmax.f32 %v2178_v27, 0.0  ;;  %v4034_v27 = vld [vmem:[%s4704_s14 + $0xd0] sm:$0xff] }
0x12a4   : > { %v2180_v22 = vpop.f32.mrf.mxu0 }
0x12a5   : > { %v2181_v25 = vadd.f32 %v4364_v23, %v2180_v22 }
0x12a7   : > { %v5408_v21 = vmax.f32 %v2181_v25, 0.0  ;;  %v4036_v25 = vld [vmem:[%s4704_s14 + $0xe0] sm:$0xff] }
0x12a8   : > { %2320 = vmatpush.msra.mxu2 %v4036_v25 }
0x12ac   : > { %v2183_v24 = vpop.f32.mrf.mxu0 }
0x12ad   : > { %v2184_v26 = vadd.f32 %v4364_v23, %v2183_v24 }
0x12af   : > { %v5406_v28 = vmax.f32 %v2184_v26, 0.0  ;;  %v4035_v26 = vld [vmem:[%s4704_s14 + $0xd8] sm:$0xff] }
0x12b0   : > { %2321 = vmatpush.msra.mxu2 %v4035_v26 }
0x12b1   : > { %4045 = vmatpush.msk.msra.mxu1 %vm547_vm0, %v5406_v28 }
0x12b2   : > { %2322 = vmatpush.msra.mxu2 %v4034_v27 }
0x12b3   : > { %2221 = vmatpush.msra.mxu1 %v5408_v21 }
0x12b4   : > { %v2381_v30 = vpop.f32.mrf.mxu0 }
0x12b5   : > { %2222 = vmatpush.msra.mxu1 %v5412_v29  ;;  %2427 = vrot.lane.b32.xlu0 %v2381_v30, %s4540_s18 }
0x12b6   : > { %4046 = vmatmul.msk.f32.vlgmr.msra.gmra.mxu1 %vm537_vm1, %v5158_v1 }
0x12bc   : > { %v2384_v18 = vpop.f32.mrf.mxu0 }
0x12bd   : > { %2429 = vrot.lane.b32.xlu2 %v2384_v18, %s4540_s18 }
0x12be   : > { %4047 = vmatmul.msk.f32.gmra.mxu1 %vm537_vm1, %v5163_v55 }
0x12c4   : > { %v2387_v31 = vpop.f32.mrf.mxu0 }
0x12c5   : > { %4073 = vmatpush.msk.msrb.mxu1 %vm547_vm0, %v2387_v31 }
0x12c6   : > { %4048 = vmatmul.msk.f32.gmra.mxu1 %vm537_vm1, %v5168_v2 }
0x12c7   : > { %2407 = vmatpush.msrb.mxu1 %v2384_v18  ;;  %v4032_v18 = vld [vmem:[%s4704_s14 + $0xc0] sm:$0xff] }
0x12c9   : > { %2408 = vmatpush.msrb.mxu1 %v2381_v30  ;;  %v4033_v30 = vld [vmem:[%s4704_s14 + $0xc8] sm:$0xff] }
0x12ca   : > { %2323 = vmatpush.msra.mxu2 %v4033_v30 }
0x12cb   : > { %2619 = vmatpush.msra.mxu1 %v4091_v52  ;;  %v4109_v52 = vld [vmem:[%s4695_s8 + $0x2c8] sm:$0xff] }
0x12cc   : > { %2324 = vmatpush.msra.mxu2 %v4032_v18 }
0x12cd   : > { %2620 = vmatpush.msra.mxu1 %v4090_v51 }
0x12ce   : > { %4074 = vmatmul.msk.f32.vlgmr.msrb.gmra.mxu1 %vm537_vm1, %v5391_v12 }
0x12d6   : > { %4075 = vmatmul.msk.f32.gmra.mxu1 %vm537_vm1, %v5396_v13 }
0x12de   : > { %4076 = vmatmul.msk.f32.gmra.mxu1 %vm537_vm1, %v5401_v14 }
0x1317   : > { %v2430_v53 = vpop.permute.xlu2 %2429 }
0x1318   : > { %v2449_v50 = vsel %vm635_vm2, %v5370_v57, %v2430_v53  ;;  %v4089_v53 = vld [vmem:[%s4695_s8 + $0x288] sm:$0xff] }
0x1319   : > { %2621 = vmatpush.msra.mxu1 %v4089_v53 }
0x131b   : > { %2622 = vmatpush.msra.mxu1 %v4088_v59 }
0x131d   : > { %2623 = vmatpush.msra.mxu1 %v4087_v60 }
0x1327   : > { %v2428_v43 = vpop.permute.xlu0 %2427 }
0x1328   : > { %v2448_v46 = vsel %vm635_vm2, %v5375_v58, %v2428_v43 }
0x1333   : > { %v2224_v32 = vpop.f32.mrf.mxu1 }
0x133b   : > { %v2227_v33 = vpop.f32.mrf.mxu1 }
0x1343   : > { %v5431_v9 = vpop.f32.mrf.mxu1 }
0x1344   : > { %4049 = vmatpush.msk.msra.mxu3 %vm547_vm0, %v5431_v9 }
0x1346   : > { %2250 = vmatpush.msra.mxu3 %v2227_v33 }
0x1348   : > { %2251 = vmatpush.msra.mxu3 %v2224_v32 }
0x1349   : > { %4050 = vmatmul.msk.f32.vlgmr.msra.gmra.mxu3 %vm537_vm1, %v5158_v1 }
0x134a   : > { %2476 = vmatpush.msrb.mxu3 %v4067_v34 }
0x134b   : > { %v2410_v20 = vpop.f32.mrf.mxu1 }
0x134c   : > { %v2419_v17 = vmul.f32 2.0, %v2410_v20 }
0x134e   : > { %v2422_v10 = vsub.f32 %v2419_v17, %v5375_v58 }
0x1350   : > { %2439 = vrot.lane.b32.xlu1 %v2422_v10, %s4541_s3 }
0x1351   : > { %4051 = vmatmul.msk.f32.gmra.mxu3 %vm537_vm1, %v5163_v55  ;;  %v4066_v55 = vld [vmem:[%s4768_s29 + $0xb0] sm:$0xff] }
0x1352   : > { %2477 = vmatpush.msrb.mxu3 %v4066_v55 }
0x1353   : > { %v2413_v3 = vpop.f32.mrf.mxu1 }
0x1354   : > { %v2420_v35 = vmul.f32 2.0, %v2413_v3  ;;  %2478 = vmatpush.msrb.mxu3 %v4065_v40 }
0x1356   : > { %v2423_v38 = vsub.f32 %v2420_v35, %v5370_v57  ;;  %2479 = vmatpush.msrb.mxu3 %v4064_v41 }
0x1358   : > { %2431 = vrot.lane.b32.xlu1 %v2387_v31, %s4540_s18  ;;  %2441 = vrot.lane.b32.xlu0 %v2423_v38, %s4541_s3 }
0x1359   : > { %4052 = vmatmul.msk.f32.gmra.mxu3 %vm537_vm1, %v5168_v2  ;;  %v4063_v2 = vld [vmem:[%s4768_s29 + $0x98] sm:$0xff] }
0x135a   : > { %2480 = vmatpush.msrb.mxu3 %v4063_v2 }
0x135b   : > { %v2416_v1 = vpop.f32.mrf.mxu1 }
0x135c   : > { %v2421_v5 = vmul.f32 2.0, %v2416_v1  ;;  %2481 = vmatpush.msrb.mxu3 %v4062_v42 }
0x135e   : > { %v2424_v39 = vsub.f32 %v2421_v5, %v5367_v54 }
0x1360   : > { %2270 = vrot.lane.b32.xlu0 %v2224_v32, %s4541_s3  ;;  %2443 = vrot.lane.b32.xlu2 %v2424_v39, %s4541_s3  ;;  %v4365_v39 = vld [vmem:[%s4777_s10 + $0x3] ss:$0 sm:$0xff] }
0x1368   : > { %2272 = vrot.lane.b32.xlu2 %v2227_v33, %s4541_s3 }
0x13ba   : > { %v2444_v57 = vpop.permute.xlu2 %2443 }
0x13c2   : > { %v2440_v47 = vpop.permute.xlu1 %2439  ;;  %v2273_v20 = vpop.permute.xlu2 %2272 }
0x13c3   : > { %v2451_v48 = vsel %vm639_vm4, %v2448_v46, %v2440_v47  ;;  %v2292_v17 = vsel %vm639_vm4, %v5408_v21, %v2273_v20 }
0x13c4   : > { %4077 = vmatmul.msk.f32.vlgmr.msrb.gmra.mxu3 %vm646_vm3, %v2451_v48 }
0x13ca   : > { %v2442_v61 = vpop.permute.xlu0 %2441  ;;  %v2432_v63 = vpop.permute.xlu1 %2431 }
0x13cb   : > { %v2452_v58 = vsel %vm639_vm4, %v2449_v50, %v2442_v61  ;;  %v2450_v6 = vsel %vm635_vm2, %v5367_v54, %v2432_v63  ;;  %v4086_v50 = vld [vmem:[%s4695_s8 + $0x270] sm:$0xff]  ;;  %v4085_v61 = vld [vmem:[%s4695_s8 + $0x268] sm:$0xff] }
0x13cc   : > { %v2253_v62 = vpop.f32.mrf.mxu3  ;;  %4078 = vmatmul.msk.f32.gmra.mxu3 %vm646_vm3, %v2452_v58  ;;  %v2453_v7 = vsel %vm639_vm4, %v2450_v6, %v2444_v57  ;;  %2624 = vmatpush.msra.mxu1 %v4086_v50 }
0x13cd   : > { %v2262_v49 = vmul.f32 2.0, %v2253_v62 }
0x13ce   : > { %2625 = vmatpush.msra.mxu1 %v4085_v61 }
0x13cf   : > { %v2265_v0 = vsub.f32 %v2262_v49, %v5412_v29 }
0x13d1   : > { %2282 = vrot.lane.b32.xlu1 %v2265_v0, %s4542_s19 }
0x13d2   : > { %v2271_v31 = vpop.permute.xlu0 %2270 }
0x13d3   : > { %v2291_v32 = vsel %vm639_vm4, %v5412_v29, %v2271_v31 }
0x13d4   : > { %v2256_v8 = vpop.f32.mrf.mxu3  ;;  %4079 = vmatmul.msk.f32.gmra.mxu3 %vm646_vm3, %v2453_v7 }
0x13d5   : > { %v2263_v15 = vmul.f32 2.0, %v2256_v8  ;;  %v4084_v8 = vld [vmem:[%s4695_s8 + $0x260] sm:$0xff] }
0x13d6   : > { %2626 = vmatpush.msra.mxu1 %v4084_v8  ;;  %v5603_v8 = vld [vmem:[%s4718_s16 + $0x68] sm:$0xff] }
0x13d7   : > { %v2266_v22 = vsub.f32 %v2263_v15, %v5408_v21  ;;  %v4083_v15 = vld [vmem:[%s4695_s8 + $0x258] sm:$0xff] }
0x13d8   : > { %2627 = vmatpush.msra.mxu1 %v4083_v15  ;;  %v5608_v15 = vld [vmem:[%s4718_s16 + $0x60] sm:$0xff] }
0x13d9   : > { %2274 = vrot.lane.b32.xlu1 %v5431_v9, %s4541_s3  ;;  %2284 = vrot.lane.b32.xlu0 %v2266_v22, %s4542_s19  ;;  %v4082_v22 = vld [vmem:[%s4695_s8 + $0x250] sm:$0xff] }
0x13da   : > { %2628 = vmatpush.msra.mxu1 %v4082_v22 }
0x13dc   : > { %v2259_v54 = vpop.f32.mrf.mxu3 }
0x13dd   : > { %v2264_v23 = vmul.f32 2.0, %v2259_v54  ;;  %v4081_v54 = vld [vmem:[%s4695_s8 + $0x248] sm:$0xff] }
0x13de   : > { %2629 = vmatpush.msra.mxu1 %v4081_v54 }
0x13df   : > { %v2267_v24 = vsub.f32 %v2264_v23, %v5406_v28  ;;  %v4080_v23 = vld [vmem:[%s4695_s8 + $0x240] sm:$0xff] }
0x13e0   : > { %2630 = vmatpush.msra.mxu1 %v4080_v23 }
0x13e1   : > { %2286 = vrot.lane.b32.xlu2 %v2267_v24, %s4542_s19 }
0x143b   : > { %v2287_v1 = vpop.permute.xlu2 %2286 }
0x1443   : > { %v2283_v33 = vpop.permute.xlu1 %2282 }
0x1444   : > { %v2294_v9 = vsel %vm788_vm5, %v2291_v32, %v2283_v33 }
0x1445   : > { %4053 = vmatmul.msk.f32.vlgmr.msra.gmra.mxu2 %vm795_vm6, %v2294_v9 }
0x1447   : > { %v2483_v34 = vpop.f32.mrf.mxu3 }
0x1448   : > { %v2484_v21 = vadd.f32 %v4365_v39, %v2483_v34 }
0x144a   : > { %v2492_v43 = vmax.f32 %v2484_v21, 0.0 }
0x144b   : > { %v2285_v10 = vpop.permute.xlu0 %2284  ;;  %v2275_v35 = vpop.permute.xlu1 %2274 }
0x144c   : > { %v2295_v3 = vsel %vm788_vm5, %v2292_v17, %v2285_v10  ;;  %v2293_v29 = vsel %vm639_vm4, %v5406_v28, %v2275_v35 }
0x144d   : > { %4054 = vmatmul.msk.f32.gmra.mxu2 %vm795_vm6, %v2295_v3  ;;  %v2296_v5 = vsel %vm788_vm5, %v2293_v29, %v2287_v1  ;;  %v4367_v3 = vld [vmem:[%s4834_s26 + $0x6] ss:$0 sm:$0xff] }
0x144f   : > { %v2486_v38 = vpop.f32.mrf.mxu3 }
0x1450   : > { %v2487_v40 = vadd.f32 %v4365_v39, %v2486_v38 }
0x1452   : > { %v5503_v42 = vmax.f32 %v2487_v40, 0.0 }
0x1455   : > { %4055 = vmatmul.msk.f32.gmra.mxu2 %vm795_vm6, %v2296_v5 }
0x1457   : > { %v2489_v55 = vpop.f32.mrf.mxu3 }
0x1458   : > { %v2490_v41 = vadd.f32 %v4365_v39, %v2489_v55 }
0x145a   : > { %v5501_v2 = vmax.f32 %v2490_v41, 0.0 }
0x145c   : > { %4093 = vmatpush.msk.msrb.mxu2 %vm547_vm0, %v5501_v2 }
0x145e   : > { %2527 = vmatpush.msrb.mxu2 %v5503_v42 }
0x1460   : > { %2528 = vmatpush.msrb.mxu2 %v2492_v43 }
0x1461   : > { %4094 = vmatmul.msk.f32.vlgmr.msrb.gmra.mxu2 %vm537_vm1, %v5391_v12 }
0x1469   : > { %4095 = vmatmul.msk.f32.gmra.mxu2 %vm537_vm1, %v5396_v13 }
0x1471   : > { %4096 = vmatmul.msk.f32.gmra.mxu2 %vm537_vm1, %v5401_v14 }
0x14c8   : > { %v5514_v28 = vpop.f32.mrf.mxu2 }
0x14d0   : > { %v5516_v44 = vpop.f32.mrf.mxu2 }
0x14d8   : > { %v5518_v45 = vpop.f32.mrf.mxu2 }
0x14e4   : > { %v2530_v46 = vpop.f32.mrf.mxu2 }
0x14e5   : > { %2576 = vrot.lane.b32.xlu0 %v2530_v46, %s4541_s3 }
0x14ec   : > { %v2533_v47 = vpop.f32.mrf.mxu2 }
0x14ed   : > { %2578 = vrot.lane.b32.xlu2 %v2533_v47, %s4541_s3 }
0x14f4   : > { %v2536_v48 = vpop.f32.mrf.mxu2 }
0x14f5   : > { %4097 = vmatpush.msk.msra.mxu0 %vm547_vm0, %v2536_v48 }
0x14f7   : > { %2556 = vmatpush.msra.mxu0 %v2533_v47  ;;  %v4111_v47 = vld [vmem:[%s4695_s8 + $0x2d8] sm:$0xff] }
0x14f9   : > { %2557 = vmatpush.msra.mxu0 %v2530_v46  ;;  %v4112_v46 = vld [vmem:[%s4695_s8 + $0x2e0] sm:$0xff] }
0x14fa   : > { %4098 = vmatmul.msk.f32.vlgmr.msra.gmra.mxu0 %vm537_vm1, %v5391_v12 }
0x1502   : > { %4099 = vmatmul.msk.f32.gmra.mxu0 %vm537_vm1, %v5396_v13 }
0x150a   : > { %4100 = vmatmul.msk.f32.gmra.mxu0 %vm537_vm1, %v5401_v14 }
0x1547   : > { %v2579_v30 = vpop.permute.xlu2 %2578 }
0x1548   : > { %v2598_v18 = vsel %vm639_vm4, %v5503_v42, %v2579_v30 }
0x1557   : > { %v2577_v24 = vpop.permute.xlu0 %2576 }
0x1558   : > { %v2597_v25 = vsel %vm639_vm4, %v2492_v43, %v2577_v24 }
0x1577   : > { %v2559_v58 = vpop.f32.mrf.mxu0 }
0x1578   : > { %v2568_v56 = vmul.f32 2.0, %v2559_v58 }
0x157a   : > { %v2571_v62 = vsub.f32 %v2568_v56, %v2492_v43  ;;  %v4113_v43 = vld [vmem:[%s4695_s8 + $0x2e8] sm:$0xff] }
0x157c   : > { %2588 = vrot.lane.b32.xlu1 %v2571_v62, %s4542_s19 }
0x157f   : > { %v2562_v63 = vpop.f32.mrf.mxu0 }
0x1580   : > { %v2569_v49 = vmul.f32 2.0, %v2562_v63  ;;  %v4108_v63 = vld [vmem:[%s4695_s8 + $0x2c0] sm:$0xff] }
0x1582   : > { %v2572_v0 = vsub.f32 %v2569_v49, %v5503_v42  ;;  %v4114_v42 = vld [vmem:[%s4695_s8 + $0x2f0] sm:$0xff]  ;;  %v4107_v49 = vld [vmem:[%s4695_s8 + $0x2b8] sm:$0xff] }
0x1584   : > { %2580 = vrot.lane.b32.xlu1 %v2536_v48, %s4541_s3  ;;  %2590 = vrot.lane.b32.xlu0 %v2572_v0, %s4542_s19  ;;  %v4110_v48 = vld [vmem:[%s4695_s8 + $0x2d0] sm:$0xff] }
0x1585   : > { %v4106_v0 = vld [vmem:[%s4695_s8 + $0x2b0] sm:$0xff] }
0x1587   : > { %v2565_v6 = vpop.f32.mrf.mxu0 }
0x1588   : > { %v2570_v57 = vmul.f32 2.0, %v2565_v6  ;;  %v4105_v6 = vld [vmem:[%s4695_s8 + $0x2a8] sm:$0xff] }
0x158a   : > { %v2573_v7 = vsub.f32 %v2570_v57, %v5501_v2  ;;  %v4104_v57 = vld [vmem:[%s4695_s8 + $0x2a0] sm:$0xff] }
0x158c   : > { %2592 = vrot.lane.b32.xlu2 %v2573_v7, %s4542_s19  ;;  %v5600_v7 = vld [vmem:[%s4718_s16 + $0x70] sm:$0x7]  ;;  %s4264_s16 = smul.u32 12, %s6026_s27 }
0x15e6   : > { %v2593_v34 = vpop.permute.xlu2 %2592 }
0x15ee   : > { %v2589_v26 = vpop.permute.xlu1 %2588 }
0x15ef   : > { %v2600_v27 = vsel %vm788_vm5, %v2597_v25, %v2589_v26 }
0x15f0   : > { %4101 = vmatmul.msk.f32.vlgmr.msra.gmra.mxu1 %vm795_vm6, %v2600_v27 }
0x15f6   : > { %v2591_v31 = vpop.permute.xlu0 %2590  ;;  %v2581_v33 = vpop.permute.xlu1 %2580 }
0x15f7   : > { %v2601_v32 = vsel %vm788_vm5, %v2598_v18, %v2591_v31  ;;  %v2599_v9 = vsel %vm639_vm4, %v5501_v2, %v2581_v33  ;;  %v4115_v2 = vld [vmem:[%s4695_s8 + $0x2f8] sm:$0xff] }
0x15f8   : > { %4102 = vmatmul.msk.f32.gmra.mxu1 %vm795_vm6, %v2601_v32  ;;  %v2602_v20 = vsel %vm788_vm5, %v2599_v9, %v2593_v34  ;;  %2768 = vmatpush.msrb.mxu0 %v4115_v2  ;;  %v5624_v9 = vld [vmem:[%s4723_s17 + $0x60] sm:$0xff]  ;;  %v5629_v34 = vld [vmem:[%s4723_s17 + $0x68] sm:$0xff] }
0x15fa   : > { %2769 = vmatpush.msrb.mxu0 %v4114_v42 }
0x15fc   : > { %2770 = vmatpush.msrb.mxu0 %v4113_v43 }
0x15fe   : > { %2771 = vmatpush.msrb.mxu0 %v4112_v46  ;;  %v4163_v46 = vld [vmem:[%s4768_s29 + $0xe8] sm:$0xff] }
0x1600   : > { %4103 = vmatmul.msk.f32.gmra.mxu1 %vm795_vm6, %v2602_v20  ;;  %2772 = vmatpush.msrb.mxu0 %v4111_v47  ;;  %v5634_v20 = vld [vmem:[%s4723_s17 + $0x70] sm:$0x7] }
0x1602   : > { %2773 = vmatpush.msrb.mxu0 %v4110_v48 }
0x1604   : > { %2774 = vmatpush.msrb.mxu0 %v4109_v52 }
0x1606   : > { %2775 = vmatpush.msrb.mxu0 %v4108_v63  ;;  %v4139_v63 = vld [vmem:[%s4704_s14 + $0x178] sm:$0xff] }
0x1608   : > { %2776 = vmatpush.msrb.mxu0 %v4107_v49  ;;  %v4138_v49 = vld [vmem:[%s4704_s14 + $0x170] sm:$0xff] }
0x160a   : > { %2777 = vmatpush.msrb.mxu0 %v4106_v0 }
0x160c   : > { %2778 = vmatpush.msrb.mxu0 %v4105_v6 }
0x160e   : > { %2779 = vmatpush.msrb.mxu0 %v4104_v57 }
0x1610   : > { %4165 = vmatpush.msk.msra.mxu0 %vm547_vm0, %v5600_v7 }
0x1612   : > { %2982 = vmatpush.msra.mxu0 %v5603_v8 }
0x1614   : > { %2983 = vmatpush.msra.mxu0 %v5608_v15 }
0x166d   : > { %v2632_v17 = vpop.f32.mrf.mxu1 }
0x166e   : > { %v2633_v1 = vadd.f32 %v4367_v3, %v2632_v17 }
0x1670   : > { %v2641_v55 = vmax.f32 %v2633_v1, 0.0 }
0x1675   : > { %v2635_v10 = vpop.f32.mrf.mxu1 }
0x1676   : > { %v2636_v38 = vadd.f32 %v4367_v3, %v2635_v10 }
0x1678   : > { %v5561_v39 = vmax.f32 %v2636_v38, 0.0 }
0x167d   : > { %v2638_v35 = vpop.f32.mrf.mxu1 }
0x167e   : > { %v2639_v29 = vadd.f32 %v4367_v3, %v2638_v35  ;;  %v4368_v3 = vld [vmem:[%s4834_s26 + $0x7] ss:$0 sm:$0xff] }
0x1680   : > { %v5559_v5 = vmax.f32 %v2639_v29, 0.0 }
0x1682   : > { %4117 = vmatpush.msk.msra.mxu3 %vm547_vm0, %v5559_v5 }
0x1684   : > { %2676 = vmatpush.msra.mxu3 %v5561_v39 }
0x1686   : > { %2677 = vmatpush.msra.mxu3 %v2641_v55 }
0x1687   : > { %4118 = vmatmul.msk.f32.vlgmr.msra.gmra.mxu3 %vm537_vm1, %v5391_v12 }
0x168f   : > { %4119 = vmatmul.msk.f32.gmra.mxu3 %vm537_vm1, %v5396_v13 }
0x1697   : > { %4120 = vmatmul.msk.f32.gmra.mxu3 %vm537_vm1, %v5401_v14 }
0x170a   : > { %v2679_v40 = vpop.f32.mrf.mxu3 }
0x170b   : > { %2725 = vrot.lane.b32.xlu0 %v2679_v40, %s4541_s3 }
0x1712   : > { %v2682_v41 = vpop.f32.mrf.mxu3 }
0x1713   : > { %2727 = vrot.lane.b32.xlu2 %v2682_v41, %s4541_s3 }
0x171a   : > { %v2685_v21 = vpop.f32.mrf.mxu3 }
0x171b   : > { %4121 = vmatpush.msk.msra.mxu2 %vm547_vm0, %v2685_v21 }
0x171d   : > { %2705 = vmatpush.msra.mxu2 %v2682_v41 }
0x171f   : > { %2706 = vmatpush.msra.mxu2 %v2679_v40 }
0x1720   : > { %4122 = vmatmul.msk.f32.vlgmr.msra.gmra.mxu2 %vm537_vm1, %v5391_v12 }
0x1721   : > { %2917 = vmatpush.msrb.mxu2 %v4139_v63 }
0x1723   : > { %2918 = vmatpush.msrb.mxu2 %v4138_v49 }
0x1728   : > { %4123 = vmatmul.msk.f32.gmra.mxu2 %vm537_vm1, %v5396_v13 }
0x1730   : > { %4124 = vmatmul.msk.f32.gmra.mxu2 %vm537_vm1, %v5401_v14 }
0x176d   : > { %v2728_v25 = vpop.permute.xlu2 %2727 }
0x176e   : > { %v2747_v26 = vsel %vm639_vm4, %v5561_v39, %v2728_v25  ;;  %v4134_v25 = vld [vmem:[%s4704_s14 + $0x150] sm:$0xff] }
0x177d   : > { %v2726_v22 = vpop.permute.xlu0 %2725 }
0x177e   : > { %v2746_v54 = vsel %vm639_vm4, %v2641_v55, %v2726_v22  ;;  %v4137_v22 = vld [vmem:[%s4704_s14 + $0x168] sm:$0xff] }
0x177f   : > { %2919 = vmatpush.msrb.mxu2 %v4137_v22 }
0x17a3   : > { %v2708_v51 = vpop.f32.mrf.mxu2 }
0x17a4   : > { %v2717_v53 = vmul.f32 2.0, %v2708_v51 }
0x17a6   : > { %v2720_v59 = vsub.f32 %v2717_v53, %v2641_v55 }
0x17a8   : > { %2737 = vrot.lane.b32.xlu1 %v2720_v59, %s4542_s19 }
0x17ab   : > { %v2711_v60 = vpop.f32.mrf.mxu2 }
0x17ac   : > { %v2718_v50 = vmul.f32 2.0, %v2711_v60 }
0x17ae   : > { %v2721_v61 = vsub.f32 %v2718_v50, %v5561_v39 }
0x17b0   : > { %2729 = vrot.lane.b32.xlu1 %v2685_v21, %s4541_s3  ;;  %2739 = vrot.lane.b32.xlu0 %v2721_v61, %s4542_s19  ;;  %v4161_v61 = vld [vmem:[%s4768_s29 + $0xd8] sm:$0xff] }
0x17b3   : > { %v2714_v58 = vpop.f32.mrf.mxu2 }
0x17b4   : > { %v2719_v56 = vmul.f32 2.0, %v2714_v58  ;;  %v4160_v58 = vld [vmem:[%s4768_s29 + $0xd0] sm:$0xff] }
0x17b6   : > { %v2722_v62 = vsub.f32 %v2719_v56, %v5559_v5  ;;  %v4158_v56 = vld [vmem:[%s4768_s29 + $0xc0] sm:$0xff] }
0x17b8   : > { %2741 = vrot.lane.b32.xlu2 %v2722_v62, %s4542_s19 }
0x1812   : > { %v2742_v32 = vpop.permute.xlu2 %2741 }
0x181a   : > { %v2738_v23 = vpop.permute.xlu1 %2737 }
0x181b   : > { %v2749_v24 = vsel %vm788_vm5, %v2746_v54, %v2738_v23  ;;  %v4136_v54 = vld [vmem:[%s4704_s14 + $0x160] sm:$0xff] }
0x181c   : > { %4125 = vmatmul.msk.f32.vlgmr.msrb.gmra.mxu0 %vm795_vm6, %v2749_v24  ;;  %v4135_v24 = vld [vmem:[%s4704_s14 + $0x158] sm:$0xff]  ;;  %2920 = vmatpush.msrb.mxu2 %v4136_v54 }
0x181e   : > { %2921 = vmatpush.msrb.mxu2 %v4135_v24  ;;  %v4187_v24 = vld [vmem:[%s4695_s8 + $0x358] sm:$0xff] }
0x1820   : > { %2922 = vmatpush.msrb.mxu2 %v4134_v25  ;;  %v4186_v25 = vld [vmem:[%s4695_s8 + $0x350] sm:$0xff] }
0x1822   : > { %v2740_v27 = vpop.permute.xlu0 %2739  ;;  %v2730_v18 = vpop.permute.xlu1 %2729 }
0x1823   : > { %v2750_v30 = vsel %vm788_vm5, %v2747_v26, %v2740_v27  ;;  %v2748_v31 = vsel %vm639_vm4, %v5559_v5, %v2730_v18 }
0x1824   : > { %4126 = vmatmul.msk.f32.gmra.mxu0 %vm795_vm6, %v2750_v30  ;;  %v2751_v33 = vsel %vm788_vm5, %v2748_v31, %v2742_v32  ;;  %v4133_v30 = vld [vmem:[%s4704_s14 + $0x148] sm:$0xff] }
0x1825   : > { %2923 = vmatpush.msrb.mxu2 %v4133_v30  ;;  %v4182_v30 = vld [vmem:[%s4695_s8 + $0x330] sm:$0xff] }
0x182c   : > { %4127 = vmatmul.msk.f32.gmra.mxu0 %vm795_vm6, %v2751_v33 }
0x1834   : > { %4166 = vmatmul.msk.f32.vlgmr.msra.gmra.mxu0 %vm537_vm1, %v5624_v9 }
0x183c   : > { %4167 = vmatmul.msk.f32.gmra.mxu0 %vm537_vm1, %v5629_v34 }
0x1844   : > { %4168 = vmatmul.msk.f32.gmra.mxu0 %vm537_vm1, %v5634_v20 }
0x1899   : > { %v2781_v17 = vpop.f32.mrf.mxu0 }
0x189a   : > { %v2782_v1 = vadd.f32 %v4368_v3, %v2781_v17 }
0x189c   : > { %v5645_v55 = vmax.f32 %v2782_v1, 0.0 }
0x18a1   : > { %v2784_v10 = vpop.f32.mrf.mxu0 }
0x18a2   : > { %v2785_v38 = vadd.f32 %v4368_v3, %v2784_v10 }
0x18a4   : > { %v5641_v39 = vmax.f32 %v2785_v38, 0.0 }
0x18a9   : > { %v2787_v35 = vpop.f32.mrf.mxu0 }
0x18aa   : > { %v2788_v29 = vadd.f32 %v4368_v3, %v2787_v35 }
0x18ac   : > { %v5639_v5 = vmax.f32 %v2788_v29, 0.0 }
0x18ae   : > { %4141 = vmatpush.msk.msrb.mxu1 %vm547_vm0, %v5639_v5 }
0x18b0   : > { %2825 = vmatpush.msrb.mxu1 %v5641_v39 }
0x18b1   : > { %v2985_v40 = vpop.f32.mrf.mxu0 }
0x18b2   : > { %2826 = vmatpush.msrb.mxu1 %v5645_v55  ;;  %3031 = vrot.lane.b32.xlu0 %v2985_v40, %s4540_s18 }
0x18b3   : > { %4142 = vmatmul.msk.f32.vlgmr.msrb.gmra.mxu1 %vm537_vm1, %v5391_v12 }
0x18b9   : > { %v2988_v41 = vpop.f32.mrf.mxu0 }
0x18ba   : > { %3033 = vrot.lane.b32.xlu2 %v2988_v41, %s4540_s18 }
0x18bb   : > { %4143 = vmatmul.msk.f32.gmra.mxu1 %vm537_vm1, %v5396_v13 }
0x18c1   : > { %v2991_v21 = vpop.f32.mrf.mxu0 }
0x18c2   : > { %4169 = vmatpush.msk.msra.mxu1 %vm547_vm0, %v2991_v21 }
0x18c3   : > { %4144 = vmatmul.msk.f32.gmra.mxu1 %vm537_vm1, %v5401_v14 }
0x18c4   : > { %3011 = vmatpush.msra.mxu1 %v2988_v41  ;;  %v4131_v41 = vld [vmem:[%s4704_s14 + $0x138] sm:$0xff] }
0x18c6   : > { %3012 = vmatpush.msra.mxu1 %v2985_v40  ;;  %v4132_v40 = vld [vmem:[%s4704_s14 + $0x140] sm:$0xff] }
0x18c7   : > { %2924 = vmatpush.msrb.mxu2 %v4132_v40  ;;  %v4177_v40 = vld [vmem:[%s4695_s8 + $0x308] sm:$0xff] }
0x18c8   : > { %3223 = vmatpush.msrb.mxu1 %v4187_v24  ;;  %v4208_v24 = vld [vmem:[%s4695_s8 + $0x3a0] sm:$0xff] }
0x18c9   : > { %2925 = vmatpush.msrb.mxu2 %v4131_v41  ;;  %v4176_v41 = vld [vmem:[%s4695_s8 + $0x300] sm:$0xff] }
0x18ca   : > { %3224 = vmatpush.msrb.mxu1 %v4186_v25  ;;  %v4207_v25 = vld [vmem:[%s4695_s8 + $0x398] sm:$0xff] }
0x18cb   : > { %4170 = vmatmul.msk.f32.vlgmr.msra.gmra.mxu1 %vm537_vm1, %v5624_v9 }
0x18d3   : > { %4171 = vmatmul.msk.f32.gmra.mxu1 %vm537_vm1, %v5629_v34 }
0x18db   : > { %4172 = vmatmul.msk.f32.gmra.mxu1 %vm537_vm1, %v5634_v20 }
0x1914   : > { %v3034_v23 = vpop.permute.xlu2 %3033 }
0x1915   : > { %v3053_v26 = vsel %vm635_vm2, %v5603_v8, %v3034_v23 }
0x1924   : > { %v3032_v62 = vpop.permute.xlu0 %3031 }
0x1925   : > { %v3052_v0 = vsel %vm635_vm2, %v5608_v15, %v3032_v62 }
0x1930   : > { %v2828_v2 = vpop.f32.mrf.mxu1 }
0x1938   : > { %v2831_v42 = vpop.f32.mrf.mxu1 }
0x1940   : > { %v5664_v43 = vpop.f32.mrf.mxu1 }
0x1941   : > { %4145 = vmatpush.msk.msrb.mxu3 %vm547_vm0, %v5664_v43 }
0x1943   : > { %2854 = vmatpush.msrb.mxu3 %v2831_v42 }
0x1945   : > { %2855 = vmatpush.msrb.mxu3 %v2828_v2 }
0x1946   : > { %4146 = vmatmul.msk.f32.vlgmr.msrb.gmra.mxu3 %vm537_vm1, %v5391_v12 }
0x1947   : > { %3080 = vmatpush.msra.mxu3 %v4163_v46 }
0x1948   : > { %v3014_v47 = vpop.f32.mrf.mxu1 }
0x1949   : > { %v3023_v48 = vmul.f32 2.0, %v3014_v47 }
0x194b   : > { %v3026_v52 = vsub.f32 %v3023_v48, %v5608_v15 }
0x194d   : > { %3043 = vrot.lane.b32.xlu1 %v3026_v52, %s4541_s3 }
0x194e   : > { %4147 = vmatmul.msk.f32.gmra.mxu3 %vm537_vm1, %v5396_v13  ;;  %v4162_v13 = vld [vmem:[%s4768_s29 + $0xe0] sm:$0xff] }
0x194f   : > { %3081 = vmatpush.msra.mxu3 %v4162_v13 }
0x1950   : > { %v3017_v51 = vpop.f32.mrf.mxu1 }
0x1951   : > { %v3024_v53 = vmul.f32 2.0, %v3017_v51  ;;  %3082 = vmatpush.msra.mxu3 %v4161_v61 }
0x1953   : > { %v3027_v59 = vsub.f32 %v3024_v53, %v5603_v8  ;;  %3083 = vmatpush.msra.mxu3 %v4160_v58  ;;  %v4369_v58 = vld [vmem:[%s4777_s10 + $0x4] ss:$0 sm:$0xff] }
0x1955   : > { %3035 = vrot.lane.b32.xlu1 %v2991_v21, %s4540_s18  ;;  %3045 = vrot.lane.b32.xlu0 %v3027_v59, %s4541_s3  ;;  %v4130_v21 = vld [vmem:[%s4704_s14 + $0x130] sm:$0xff]  ;;  %s6007_s18 = sld [smem:[#allocation20_spill]] }
0x1956   : > { %4148 = vmatmul.msk.f32.gmra.mxu3 %vm537_vm1, %v5401_v14  ;;  %v4159_v14 = vld [vmem:[%s4768_s29 + $0xc8] sm:$0xff]  ;;  %2926 = vmatpush.msrb.mxu2 %v4130_v21 }
0x1957   : > { %3084 = vmatpush.msra.mxu3 %v4159_v14 }
0x1958   : > { %v3020_v12 = vpop.f32.mrf.mxu1 }
0x1959   : > { %v3025_v60 = vmul.f32 2.0, %v3020_v12  ;;  %3085 = vmatpush.msra.mxu3 %v4158_v56 }
0x195b   : > { %v3028_v50 = vsub.f32 %v3025_v60, %v5600_v7 }
0x195d   : > { %2874 = vrot.lane.b32.xlu0 %v2828_v2, %s4541_s3  ;;  %3047 = vrot.lane.b32.xlu2 %v3028_v50, %s4541_s3  ;;  %v4129_v2 = vld [vmem:[%s4704_s14 + $0x128] sm:$0xff] }
0x195e   : > { %2927 = vmatpush.msrb.mxu2 %v4129_v2 }
0x1965   : > { %2876 = vrot.lane.b32.xlu2 %v2831_v42, %s4541_s3  ;;  %v4128_v42 = vld [vmem:[%s4704_s14 + $0x120] sm:$0xff] }
0x1966   : > { %2928 = vmatpush.msrb.mxu2 %v4128_v42 }
0x19b7   : > { %v3048_v8 = vpop.permute.xlu2 %3047 }
0x19bf   : > { %v3044_v6 = vpop.permute.xlu1 %3043  ;;  %v2877_v51 = vpop.permute.xlu2 %2876 }
0x19c0   : > { %v3055_v57 = vsel %vm639_vm4, %v3052_v0, %v3044_v6  ;;  %v2896_v53 = vsel %vm639_vm4, %v5641_v39, %v2877_v51 }
0x19c1   : > { %4173 = vmatmul.msk.f32.vlgmr.msra.gmra.mxu3 %vm646_vm3, %v3055_v57 }
0x19c7   : > { %v3046_v27 = vpop.permute.xlu0 %3045  ;;  %v3036_v31 = vpop.permute.xlu1 %3035 }
0x19c8   : > { %v3056_v15 = vsel %vm639_vm4, %v3053_v26, %v3046_v27  ;;  %v3054_v17 = vsel %vm635_vm2, %v5600_v7, %v3036_v31  ;;  %v4185_v26 = vld [vmem:[%s4695_s8 + $0x348] sm:$0xff]  ;;  %v4184_v27 = vld [vmem:[%s4695_s8 + $0x340] sm:$0xff] }
0x19c9   : > { %v2857_v18 = vpop.f32.mrf.mxu3  ;;  %4174 = vmatmul.msk.f32.gmra.mxu3 %vm646_vm3, %v3056_v15  ;;  %v3057_v10 = vsel %vm639_vm4, %v3054_v17, %v3048_v8  ;;  %3225 = vmatpush.msrb.mxu1 %v4185_v26  ;;  %v4183_v15 = vld [vmem:[%s4695_s8 + $0x338] sm:$0xff]  ;;  %v4206_v26 = vld [vmem:[%s4695_s8 + $0x390] sm:$0xff] }
0x19ca   : > { %v2866_v32 = vmul.f32 2.0, %v2857_v18  ;;  %v4181_v18 = vld [vmem:[%s4695_s8 + $0x328] sm:$0xff] }
0x19cb   : > { %3226 = vmatpush.msrb.mxu1 %v4184_v27  ;;  %v4205_v27 = vld [vmem:[%s4695_s8 + $0x388] sm:$0xff] }
0x19cc   : > { %v2869_v33 = vsub.f32 %v2866_v32, %v5645_v55 }
0x19cd   : > { %3227 = vmatpush.msrb.mxu1 %v4183_v15 }
0x19ce   : > { %2886 = vrot.lane.b32.xlu1 %v2869_v33, %s4542_s19 }
0x19cf   : > { %v2875_v46 = vpop.permute.xlu0 %2874  ;;  %3228 = vmatpush.msrb.mxu1 %v4182_v30 }
0x19d1   : > { %v2860_v3 = vpop.f32.mrf.mxu3  ;;  %4175 = vmatmul.msk.f32.gmra.mxu3 %vm646_vm3, %v3057_v10  ;;  %3229 = vmatpush.msrb.mxu1 %v4181_v18 }
0x19d2   : > { %v2867_v35 = vmul.f32 2.0, %v2860_v3 }
0x19d4   : > { %v2870_v38 = vsub.f32 %v2867_v35, %v5641_v39 }
0x19d6   : > { %2878 = vrot.lane.b32.xlu1 %v5664_v43, %s4541_s3  ;;  %2888 = vrot.lane.b32.xlu0 %v2870_v38, %s4542_s19  ;;  %v2895_v43 = vsel %vm639_vm4, %v5645_v55, %v2875_v46 }
0x19d9   : > { %v2863_v7 = vpop.f32.mrf.mxu3 }
0x19da   : > { %v2868_v29 = vmul.f32 2.0, %v2863_v7  ;;  %v4180_v7 = vld [vmem:[%s4695_s8 + $0x320] sm:$0xff] }
0x19db   : > { %3230 = vmatpush.msrb.mxu1 %v4180_v7  ;;  %v4201_v7 = vld [vmem:[%s4695_s8 + $0x368] sm:$0xff] }
0x19dc   : > { %v2871_v1 = vsub.f32 %v2868_v29, %v5639_v5  ;;  %v4179_v29 = vld [vmem:[%s4695_s8 + $0x318] sm:$0xff] }
0x19dd   : > { %3231 = vmatpush.msrb.mxu1 %v4179_v29  ;;  %v4200_v29 = vld [vmem:[%s4695_s8 + $0x360] sm:$0xff] }
0x19de   : > { %2890 = vrot.lane.b32.xlu2 %v2871_v1, %s4542_s19  ;;  %v4178_v1 = vld [vmem:[%s4695_s8 + $0x310] sm:$0xff] }
0x19df   : > { %3232 = vmatpush.msrb.mxu1 %v4178_v1 }
0x19e1   : > { %3233 = vmatpush.msrb.mxu1 %v4177_v40 }
0x19e3   : > { %3234 = vmatpush.msrb.mxu1 %v4176_v41 }
0x1a38   : > { %v2891_v13 = vpop.permute.xlu2 %2890 }
0x1a40   : > { %v2887_v47 = vpop.permute.xlu1 %2886 }
0x1a41   : > { %v2898_v48 = vsel %vm788_vm5, %v2895_v43, %v2887_v47 }
0x1a42   : > { %4149 = vmatmul.msk.f32.vlgmr.msrb.gmra.mxu2 %vm795_vm6, %v2898_v48 }
0x1a44   : > { %v3087_v52 = vpop.f32.mrf.mxu3 }
0x1a45   : > { %v3088_v39 = vadd.f32 %v4369_v58, %v3087_v52 }
0x1a47   : > { %v3096_v0 = vmax.f32 %v3088_v39, 0.0 }
0x1a48   : > { %v2889_v59 = vpop.permute.xlu0 %2888  ;;  %v2879_v60 = vpop.permute.xlu1 %2878 }
0x1a49   : > { %v2899_v12 = vsel %vm788_vm5, %v2896_v53, %v2889_v59  ;;  %v2897_v55 = vsel %vm639_vm4, %v5639_v5, %v2879_v60 }
0x1a4a   : > { %4150 = vmatmul.msk.f32.gmra.mxu2 %vm795_vm6, %v2899_v12  ;;  %v2900_v61 = vsel %vm788_vm5, %v2897_v55, %v2891_v13  ;;  %v4371_v55 = vld [vmem:[%s4834_s26 + $0x8] ss:$0 sm:$0xff] }
0x1a4c   : > { %v3090_v50 = vpop.f32.mrf.mxu3 }
0x1a4d   : > { %v3091_v56 = vadd.f32 %v4369_v58, %v3090_v50 }
0x1a4f   : > { %v5736_v49 = vmax.f32 %v3091_v56, 0.0 }
0x1a52   : > { %4151 = vmatmul.msk.f32.gmra.mxu2 %vm795_vm6, %v2900_v61 }
0x1a54   : > { %v3093_v14 = vpop.f32.mrf.mxu3 }
0x1a55   : > { %v3094_v62 = vadd.f32 %v4369_v58, %v3093_v14 }
0x1a57   : > { %v5734_v63 = vmax.f32 %v3094_v62, 0.0 }
0x1a59   : > { %4189 = vmatpush.msk.msra.mxu2 %vm547_vm0, %v5734_v63 }
0x1a5b   : > { %3131 = vmatpush.msra.mxu2 %v5736_v49 }
0x1a5d   : > { %3132 = vmatpush.msra.mxu2 %v3096_v0 }
0x1a5e   : > { %4190 = vmatmul.msk.f32.vlgmr.msra.gmra.mxu2 %vm537_vm1, %v5624_v9 }
0x1a66   : > { %4191 = vmatmul.msk.f32.gmra.mxu2 %vm537_vm1, %v5629_v34 }
0x1a6e   : > { %4192 = vmatmul.msk.f32.gmra.mxu2 %vm537_vm1, %v5634_v20 }
0x1ac5   : > { %v5747_v5 = vpop.f32.mrf.mxu2 }
0x1acd   : > { %v5749_v6 = vpop.f32.mrf.mxu2 }
0x1ad5   : > { %v5751_v57 = vpop.f32.mrf.mxu2 }
0x1ae1   : > { %v3134_v22 = vpop.f32.mrf.mxu2 }
0x1ae2   : > { %3180 = vrot.lane.b32.xlu0 %v3134_v22, %s4541_s3 }
0x1ae9   : > { %v3137_v54 = vpop.f32.mrf.mxu2 }
0x1aea   : > { %3182 = vrot.lane.b32.xlu2 %v3137_v54, %s4541_s3 }
0x1af1   : > { %v3140_v23 = vpop.f32.mrf.mxu2 }
0x1af2   : > { %4193 = vmatpush.msk.msrb.mxu0 %vm547_vm0, %v3140_v23 }
0x1af4   : > { %3160 = vmatpush.msrb.mxu0 %v3137_v54  ;;  %v4210_v54 = vld [vmem:[%s4695_s8 + $0x3b0] sm:$0xff] }
0x1af6   : > { %3161 = vmatpush.msrb.mxu0 %v3134_v22  ;;  %v4211_v22 = vld [vmem:[%s4695_s8 + $0x3b8] sm:$0xff] }
0x1af7   : > { %4194 = vmatmul.msk.f32.vlgmr.msrb.gmra.mxu0 %vm537_vm1, %v5624_v9 }
0x1af8   : > { %3372 = vmatpush.msra.mxu0 %v4211_v22 }
0x1afa   : > { %3373 = vmatpush.msra.mxu0 %v4210_v54 }
0x1aff   : > { %4195 = vmatmul.msk.f32.gmra.mxu0 %vm537_vm1, %v5629_v34 }
0x1b07   : > { %4196 = vmatmul.msk.f32.gmra.mxu0 %vm537_vm1, %v5634_v20 }
0x1b44   : > { %v3183_v43 = vpop.permute.xlu2 %3182 }
0x1b45   : > { %v3202_v47 = vsel %vm639_vm4, %v5736_v49, %v3183_v43 }
0x1b54   : > { %v3181_v21 = vpop.permute.xlu0 %3180 }
0x1b55   : > { %v3201_v2 = vsel %vm639_vm4, %v3096_v0, %v3181_v21 }
0x1b74   : > { %v3163_v31 = vpop.f32.mrf.mxu0 }
0x1b75   : > { %v3172_v32 = vmul.f32 2.0, %v3163_v31 }
0x1b77   : > { %v3175_v33 = vsub.f32 %v3172_v32, %v3096_v0 }
0x1b79   : > { %3192 = vrot.lane.b32.xlu1 %v3175_v33, %s4542_s19 }
0x1b7c   : > { %v3166_v17 = vpop.f32.mrf.mxu0 }
0x1b7d   : > { %v3173_v8 = vmul.f32 2.0, %v3166_v17 }
0x1b7f   : > { %v3176_v10 = vsub.f32 %v3173_v8, %v5736_v49 }
0x1b81   : > { %3184 = vrot.lane.b32.xlu1 %v3140_v23, %s4541_s3  ;;  %3194 = vrot.lane.b32.xlu0 %v3176_v10, %s4542_s19  ;;  %v4209_v23 = vld [vmem:[%s4695_s8 + $0x3a8] sm:$0xff] }
0x1b82   : > { %3374 = vmatpush.msra.mxu0 %v4209_v23 }
0x1b84   : > { %v3169_v3 = vpop.f32.mrf.mxu0  ;;  %3375 = vmatpush.msra.mxu0 %v4208_v24  ;;  %v4362_v24 = vld [vmem:[%s5015_s13 + $0x1] ss:$0 sm:$0xff] }
0x1b85   : > { %v3174_v35 = vmul.f32 2.0, %v3169_v3  ;;  %v4204_v3 = vld [vmem:[%s4695_s8 + $0x380] sm:$0xff] }
0x1b86   : > { %3376 = vmatpush.msra.mxu0 %v4207_v25  ;;  %v4233_v25 = vld [vmem:[%s4704_s14 + $0x1c8] sm:$0xff] }
0x1b87   : > { %v3177_v38 = vsub.f32 %v3174_v35, %v5734_v63  ;;  %v4203_v35 = vld [vmem:[%s4695_s8 + $0x378] sm:$0xff] }
0x1b88   : > { %3377 = vmatpush.msra.mxu0 %v4206_v26 }
0x1b89   : > { %3196 = vrot.lane.b32.xlu2 %v3177_v38, %s4542_s19  ;;  %v4202_v38 = vld [vmem:[%s4695_s8 + $0x370] sm:$0xff]  ;;  %s4263_s8 = smul.u32 6, %s6024_s30 }
0x1b8a   : > { %3378 = vmatpush.msra.mxu0 %v4205_v27  ;;  %v1723_v27 = vadd.f32 %v4362_v24, %v5281_v16 }
0x1b8c   : > { %3379 = vmatpush.msra.mxu0 %v4204_v3 }
0x1b8e   : > { %3380 = vmatpush.msra.mxu0 %v4203_v35  ;;  %v4228_v35 = vld [vmem:[%s4704_s14 + $0x1a0] sm:$0xff] }
0x1b90   : > { %3381 = vmatpush.msra.mxu0 %v4202_v38  ;;  %v4227_v38 = vld [vmem:[%s4704_s14 + $0x198] sm:$0xff] }
0x1b92   : > { %3382 = vmatpush.msra.mxu0 %v4201_v7  ;;  %v4226_v7 = vld [vmem:[%s4704_s14 + $0x190] sm:$0xff] }
0x1b94   : > { %3383 = vmatpush.msra.mxu0 %v4200_v29 }
0x1be3   : > { %v3197_v59 = vpop.permute.xlu2 %3196 }
0x1beb   : > { %v3193_v42 = vpop.permute.xlu1 %3192 }
0x1bec   : > { %v3204_v46 = vsel %vm788_vm5, %v3201_v2, %v3193_v42 }
0x1bed   : > { %4197 = vmatmul.msk.f32.vlgmr.msrb.gmra.mxu1 %vm795_vm6, %v3204_v46 }
0x1bf3   : > { %v3195_v48 = vpop.permute.xlu0 %3194  ;;  %v3185_v51 = vpop.permute.xlu1 %3184 }
0x1bf4   : > { %v3205_v52 = vsel %vm788_vm5, %v3202_v47, %v3195_v48  ;;  %v3203_v53 = vsel %vm639_vm4, %v5734_v63, %v3185_v51 }
0x1bf5   : > { %4198 = vmatmul.msk.f32.gmra.mxu1 %vm795_vm6, %v3205_v52  ;;  %v3206_v12 = vsel %vm788_vm5, %v3203_v53, %v3197_v59 }
0x1bfd   : > { %4199 = vmatmul.msk.f32.gmra.mxu1 %vm795_vm6, %v3206_v12  ;;  %v4372_v12 = vld [vmem:[%s4834_s26 + $0x9] ss:$0 sm:$0xff] }
0x1c6a   : > { %v3236_v60 = vpop.f32.mrf.mxu1 }
0x1c6b   : > { %v3237_v14 = vadd.f32 %v4371_v55, %v3236_v60 }
0x1c6d   : > { %v3245_v39 = vmax.f32 %v3237_v14, 0.0 }
0x1c72   : > { %v3239_v50 = vpop.f32.mrf.mxu1 }
0x1c73   : > { %v3240_v61 = vadd.f32 %v4371_v55, %v3239_v50 }
0x1c75   : > { %v5794_v62 = vmax.f32 %v3240_v61, 0.0 }
0x1c7a   : > { %v3242_v13 = vpop.f32.mrf.mxu1 }
0x1c7b   : > { %v3243_v58 = vadd.f32 %v4371_v55, %v3242_v13 }
0x1c7d   : > { %v5792_v56 = vmax.f32 %v3243_v58, 0.0 }
0x1c7f   : > { %4213 = vmatpush.msk.msrb.mxu3 %vm547_vm0, %v5792_v56 }
0x1c81   : > { %3280 = vmatpush.msrb.mxu3 %v5794_v62 }
0x1c83   : > { %3281 = vmatpush.msrb.mxu3 %v3245_v39 }
0x1c84   : > { %4214 = vmatmul.msk.f32.vlgmr.msrb.gmra.mxu3 %vm537_vm1, %v5624_v9 }
0x1c8c   : > { %4215 = vmatmul.msk.f32.gmra.mxu3 %vm537_vm1, %v5629_v34 }
0x1c94   : > { %4216 = vmatmul.msk.f32.gmra.mxu3 %vm537_vm1, %v5634_v20 }
0x1d07   : > { %v3283_v63 = vpop.f32.mrf.mxu3 }
0x1d08   : > { %3329 = vrot.lane.b32.xlu0 %v3283_v63, %s4541_s3 }
0x1d0f   : > { %v3286_v49 = vpop.f32.mrf.mxu3 }
0x1d10   : > { %3331 = vrot.lane.b32.xlu2 %v3286_v49, %s4541_s3 }
0x1d17   : > { %v3289_v0 = vpop.f32.mrf.mxu3 }
0x1d18   : > { %4217 = vmatpush.msk.msrb.mxu2 %vm547_vm0, %v3289_v0 }
0x1d1a   : > { %3309 = vmatpush.msrb.mxu2 %v3286_v49 }
0x1d1c   : > { %3310 = vmatpush.msrb.mxu2 %v3283_v63 }
0x1d1d   : > { %4218 = vmatmul.msk.f32.vlgmr.msrb.gmra.mxu2 %vm537_vm1, %v5624_v9 }
0x1d25   : > { %4219 = vmatmul.msk.f32.gmra.mxu2 %vm537_vm1, %v5629_v34 }
0x1d2d   : > { %4220 = vmatmul.msk.f32.gmra.mxu2 %vm537_vm1, %v5634_v20 }
0x1d6a   : > { %v3332_v2 = vpop.permute.xlu2 %3331 }
0x1d6b   : > { %v3351_v42 = vsel %vm639_vm4, %v5794_v62, %v3332_v2 }
0x1d7a   : > { %v3330_v1 = vpop.permute.xlu0 %3329 }
0x1d7b   : > { %v3350_v40 = vsel %vm639_vm4, %v3245_v39, %v3330_v1 }
0x1da0   : > { %v3312_v15 = vpop.f32.mrf.mxu2 }
0x1da1   : > { %v3321_v30 = vmul.f32 2.0, %v3312_v15  ;;  %v1726_v15 = vadd.f32 %v4362_v24, %v5283_v11 }
0x1da3   : > { %v3324_v18 = vsub.f32 %v3321_v30, %v3245_v39 }
0x1da5   : > { %3341 = vrot.lane.b32.xlu1 %v3324_v18, %s4542_s19  ;;  %v4232_v18 = vld [vmem:[%s4704_s14 + $0x1c0] sm:$0xff] }
0x1da8   : > { %v3315_v31 = vpop.f32.mrf.mxu2 }
0x1da9   : > { %v3322_v32 = vmul.f32 2.0, %v3315_v31  ;;  %v4231_v31 = vld [vmem:[%s4704_s14 + $0x1b8] sm:$0xff] }
0x1dab   : > { %v3325_v33 = vsub.f32 %v3322_v32, %v5794_v62  ;;  %v4366_v32 = vld [vmem:[%s5015_s13 + $0x2] ss:$0 sm:$0xff] }
0x1dac   : > { %v2327_v16 = vadd.f32 %v4366_v32, %v5514_v28  ;;  %v2330_v11 = vadd.f32 %v4366_v32, %v5516_v44  ;;  %v2333_v44 = vadd.f32 %v4366_v32, %v5518_v45 }
0x1dad   : > { %3333 = vrot.lane.b32.xlu1 %v3289_v0, %s4541_s3  ;;  %3343 = vrot.lane.b32.xlu0 %v3325_v33, %s4542_s19  ;;  %v4230_v33 = vld [vmem:[%s4704_s14 + $0x1b0] sm:$0xff] }
0x1db0   : > { %v3318_v17 = vpop.f32.mrf.mxu2 }
0x1db1   : > { %v3323_v8 = vmul.f32 2.0, %v3318_v17  ;;  %v4229_v17 = vld [vmem:[%s4704_s14 + $0x1a8] sm:$0xff] }
0x1db3   : > { %v3326_v10 = vsub.f32 %v3323_v8, %v5792_v56  ;;  %v1729_v8 = vadd.f32 %v4362_v24, %v5285_v36 }
0x1db5   : > { %3345 = vrot.lane.b32.xlu2 %v3326_v10, %s4542_s19  ;;  %v4370_v10 = vld [vmem:[%s5015_s13 + $0x3] ss:$0 sm:$0xff] }
0x1db6   : > { %v2931_v3 = vadd.f32 %v4370_v10, %v5747_v5  ;;  %v2934_v28 = vadd.f32 %v4370_v10, %v5749_v6  ;;  %v2937_v36 = vadd.f32 %v4370_v10, %v5751_v57  ;;  %v4225_v5 = vld [vmem:[%s4704_s14 + $0x188] sm:$0xff]  ;;  %v4224_v6 = vld [vmem:[%s4704_s14 + $0x180] sm:$0xff] }
0x1e0f   : > { %v3346_v52 = vpop.permute.xlu2 %3345 }
0x1e17   : > { %v3342_v41 = vpop.permute.xlu1 %3341 }
0x1e18   : > { %v3353_v21 = vsel %vm788_vm5, %v3350_v40, %v3342_v41 }
0x1e19   : > { %4221 = vmatmul.msk.f32.vlgmr.msra.gmra.mxu0 %vm795_vm6, %v3353_v21 }
0x1e1f   : > { %v3344_v46 = vpop.permute.xlu0 %3343  ;;  %v3334_v47 = vpop.permute.xlu1 %3333 }
0x1e20   : > { %v3354_v43 = vsel %vm788_vm5, %v3351_v42, %v3344_v46  ;;  %v3352_v48 = vsel %vm639_vm4, %v5792_v56, %v3334_v47 }
0x1e21   : > { %4222 = vmatmul.msk.f32.gmra.mxu0 %vm795_vm6, %v3354_v43  ;;  %v3355_v51 = vsel %vm788_vm5, %v3352_v48, %v3346_v52  ;;  %v4358_v48 = vld [vmem:[%s5015_s13] ss:$0 sm:$0xff] }
0x1e22   : > { %v1125_v52 = vadd.f32 %v4358_v48, %v5052_v37 }
0x1e29   : > { %4223 = vmatmul.msk.f32.gmra.mxu0 %vm795_vm6, %v3355_v51 }
0x1e96   : > { %v3385_v53 = vpop.f32.mrf.mxu0 }
0x1e97   : > { %v3386_v13 = vadd.f32 %v4372_v12, %v3385_v53 }
0x1e99   : > { %v5850_v14 = vmax.f32 %v3386_v13, 0.0 }
0x1e9e   : > { %v3388_v59 = vpop.f32.mrf.mxu0 }
0x1e9f   : > { %v3389_v50 = vadd.f32 %v4372_v12, %v3388_v59 }
0x1ea1   : > { %v5846_v58 = vmax.f32 %v3389_v50, 0.0 }
0x1ea6   : > { %v3391_v60 = vpop.f32.mrf.mxu0 }
0x1ea7   : > { %v3392_v55 = vadd.f32 %v4372_v12, %v3391_v60 }
0x1ea9   : > { %v5844_v61 = vmax.f32 %v3392_v55, 0.0 }
0x1eab   : > { %4237 = vmatpush.msk.msra.mxu1 %vm547_vm0, %v5844_v61 }
0x1ead   : > { %3429 = vmatpush.msra.mxu1 %v5846_v58 }
0x1eaf   : > { %3430 = vmatpush.msra.mxu1 %v5850_v14 }
0x1eb0   : > { %4238 = vmatmul.msk.f32.vlgmr.msra.gmra.mxu1 %vm537_vm1, %v5624_v9 }
0x1eb8   : > { %4239 = vmatmul.msk.f32.gmra.mxu1 %vm537_vm1, %v5629_v34 }
0x1ec0   : > { %4240 = vmatmul.msk.f32.gmra.mxu1 %vm537_vm1, %v5634_v20 }
0x1f2d   : > { %v3432_v56 = vpop.f32.mrf.mxu1 }
0x1f2e   : > { %3478 = vrot.lane.b32.xlu0 %v3432_v56, %s4541_s3 }
0x1f35   : > { %v3435_v62 = vpop.f32.mrf.mxu1 }
0x1f36   : > { %3480 = vrot.lane.b32.xlu2 %v3435_v62, %s4541_s3 }
0x1f3d   : > { %v3438_v39 = vpop.f32.mrf.mxu1 }
0x1f3e   : > { %4241 = vmatpush.msk.msra.mxu3 %vm547_vm0, %v3438_v39 }
0x1f40   : > { %3458 = vmatpush.msra.mxu3 %v3435_v62 }
0x1f42   : > { %3459 = vmatpush.msra.mxu3 %v3432_v56 }
0x1f43   : > { %4242 = vmatmul.msk.f32.vlgmr.msra.gmra.mxu3 %vm537_vm1, %v5624_v9  ;;  %v4235_v9 = vld [vmem:[%s4704_s14 + $0x1d8] sm:$0xff] }
0x1f44   : > { %3521 = vmatpush.msra.mxu2 %v4235_v9 }
0x1f4b   : > { %4243 = vmatmul.msk.f32.gmra.mxu3 %vm537_vm1, %v5629_v34  ;;  %v4234_v34 = vld [vmem:[%s4704_s14 + $0x1d0] sm:$0xff]  ;;  %s521_s14 = sadd.s32 %s4264_s16, %s4263_s8 }
0x1f4c   : > { %3522 = vmatpush.msra.mxu2 %v4234_v34  ;;  %s3806_s17 = sshll.u32 %s521_s14, 3 }
0x1f4d   : > { %s5924_s15 = scalar_lea.vmem %s6007_s18, %s3806_s17 }
0x1f4e   : > { %3523 = vmatpush.msra.mxu2 %v4233_v25 }
0x1f50   : > { %3524 = vmatpush.msra.mxu2 %v4232_v18 }
0x1f52   : > { %3525 = vmatpush.msra.mxu2 %v4231_v31 }
0x1f53   : > { %4244 = vmatmul.msk.f32.gmra.mxu3 %vm537_vm1, %v5634_v20 }
0x1f54   : > { %3526 = vmatpush.msra.mxu2 %v4230_v33 }
0x1f56   : > { %3527 = vmatpush.msra.mxu2 %v4229_v17 }
0x1f58   : > { %3528 = vmatpush.msra.mxu2 %v4228_v35 }
0x1f5a   : > { %3529 = vmatpush.msra.mxu2 %v4227_v38 }
0x1f5c   : > { %3530 = vmatpush.msra.mxu2 %v4226_v7 }
0x1f5e   : > { %3531 = vmatpush.msra.mxu2 %v4225_v5 }
0x1f60   : > { %3532 = vmatpush.msra.mxu2 %v4224_v6 }
0x1f90   : > { %v3481_v45 = vpop.permute.xlu2 %3480 }
0x1f91   : > { %v3500_v2 = vsel %vm639_vm4, %v5846_v58, %v3481_v45 }
0x1fa0   : > { %v3479_v1 = vpop.permute.xlu0 %3478 }
0x1fa1   : > { %v3499_v57 = vsel %vm639_vm4, %v5850_v14, %v3479_v1 }
0x1fc6   : > { %v3461_v63 = vpop.f32.mrf.mxu3 }
0x1fc7   : > { %v3470_v49 = vmul.f32 2.0, %v3461_v63 }
0x1fc9   : > { %v3473_v0 = vsub.f32 %v3470_v49, %v5850_v14  ;;  %v1122_v14 = vadd.f32 %v4358_v48, %v5050_v4 }
0x1fcb   : > { %3490 = vrot.lane.b32.xlu1 %v3473_v0, %s4542_s19 }
0x1fce   : > { %v3464_v22 = vpop.f32.mrf.mxu3 }
0x1fcf   : > { %v3471_v54 = vmul.f32 2.0, %v3464_v22 }
0x1fd1   : > { %v3474_v23 = vsub.f32 %v3471_v54, %v5846_v58  ;;  %v1119_v58 = vadd.f32 %v4358_v48, %v5048_v19  ;;  %v4373_v19 = vld [vmem:[%s5015_s13 + $0x4] ss:$0 sm:$0xff] }
0x1fd3   : > { %3482 = vrot.lane.b32.xlu1 %v3438_v39, %s4541_s3  ;;  %3492 = vrot.lane.b32.xlu0 %v3474_v23, %s4542_s19 }
0x1fd6   : > { %v3467_v20 = vpop.f32.mrf.mxu3 }
0x1fd7   : > { %v3472_v26 = vmul.f32 2.0, %v3467_v20 }
0x1fd9   : > { %v3475_v30 = vsub.f32 %v3472_v26, %v5844_v61 }
0x1fdb   : > { %3548 = vrot.lane.b32.xlu1 %v1726_v15, %s4541_s3  ;;  %3546 = vrot.lane.b32.xlu0 %v1723_v27, %s4541_s3 }
0x1fdc   : > { %3494 = vrot.lane.b32.xlu2 %v3475_v30, %s4542_s19 }
0x1fe3   : > { %3560 = vrot.lane.b32.xlu1 %v2330_v11, %s4542_s19  ;;  %3558 = vrot.lane.b32.xlu0 %v2327_v16, %s4542_s19 }
0x1fe4   : > { %3550 = vrot.lane.b32.xlu2 %v1729_v8, %s4541_s3 }
0x1feb   : > { %3572 = vrot.lane.b32.xlu1 %v2934_v28, %s4543_s5  ;;  %3570 = vrot.lane.b32.xlu0 %v2931_v3, %s4543_s5 }
0x1fec   : > { %3562 = vrot.lane.b32.xlu2 %v2333_v44, %s4542_s19 }
0x1ff4   : > { %3574 = vrot.lane.b32.xlu2 %v2937_v36, %s4543_s5 }
0x2036   : > { %v3495_v29 = vpop.permute.xlu2 %3494 }
0x203d   : > { %v3491_v40 = vpop.permute.xlu1 %3490 }
0x203e   : > { %v3502_v41 = vsel %vm788_vm5, %v3499_v57, %v3491_v40  ;;  %v3551_v21 = vpop.permute.xlu2 %3550 }
0x203f   : > { %4245 = vmatmul.msk.f32.vlgmr.msra.gmra.mxu2 %vm795_vm6, %v3502_v41  ;;  %v3581_v53 = vsel %vm639_vm4, %v1125_v52, %v3551_v21 }
0x2045   : > { %v3483_v42 = vpop.permute.xlu1 %3482  ;;  %v3493_v46 = vpop.permute.xlu0 %3492 }
0x2046   : > { %v3503_v43 = vsel %vm788_vm5, %v3500_v2, %v3493_v46  ;;  %v3563_v47 = vpop.permute.xlu2 %3562  ;;  %v3501_v51 = vsel %vm639_vm4, %v5844_v61, %v3483_v42 }
0x2047   : > { %4246 = vmatmul.msk.f32.gmra.mxu2 %vm795_vm6, %v3503_v43  ;;  %v3584_v60 = vsel %vm788_vm5, %v3581_v53, %v3563_v47  ;;  %v3504_v55 = vsel %vm788_vm5, %v3501_v51, %v3495_v29 }
0x204d   : > { %v3549_v59 = vpop.permute.xlu1 %3548  ;;  %v3547_v12 = vpop.permute.xlu0 %3546 }
0x204e   : > { %v3575_v50 = vpop.permute.xlu2 %3574  ;;  %v3580_v56 = vsel %vm639_vm4, %v1122_v14, %v3549_v59  ;;  %v3579_v62 = vsel %vm639_vm4, %v1119_v58, %v3547_v12 }
0x204f   : > { %v3587_v37 = vsel %vm795_vm6, %v3584_v60, %v3575_v50  ;;  %4247 = vmatmul.msk.f32.gmra.mxu2 %vm795_vm6, %v3504_v55 }
0x2050   : > { %3592 = vst [vmem:[%s5924_s15 + $0x20] sm:$0x7] %v3587_v37 }
0x2055   : > { %v3561_v13 = vpop.permute.xlu1 %3560  ;;  %v3559_v61 = vpop.permute.xlu0 %3558 }
0x2056   : > { %v3583_v39 = vsel %vm788_vm5, %v3580_v56, %v3561_v13  ;;  %v3582_v63 = vsel %vm788_vm5, %v3579_v62, %v3559_v61 }
0x205d   : > { %v3573_v49 = vpop.permute.xlu1 %3572  ;;  %v3571_v0 = vpop.permute.xlu0 %3570 }
0x205e   : > { %v3586_v22 = vsel %vm795_vm6, %v3583_v39, %v3573_v49  ;;  %v3585_v54 = vsel %vm795_vm6, %v3582_v63, %v3571_v0 }
0x205f   : > { %3590 = vst [vmem:[%s5924_s15 + $0x10] sm:$0xff] %v3586_v22 }
0x2060   : > { %3588 = vst [vmem:[%s5924_s15] sm:$0xff] %v3585_v54 }
0x20c2   : > { %v3534_v4 = vpop.f32.mrf.mxu2 }
0x20c3   : > { %v3535_v23 = vadd.f32 %v4373_v19, %v3534_v4 }
0x20c5   : > { %3589 = vst.msk [vmem:[%s5924_s15 + $0x8] sm:$0xff] %vm639_vm4, %v3535_v23 }
0x20ca   : > { %v3537_v9 = vpop.f32.mrf.mxu2 }
0x20cb   : > { %v3538_v34 = vadd.f32 %v4373_v19, %v3537_v9 }
0x20cd   : > { %3591 = vst.msk [vmem:[%s5924_s15 + $0x18] sm:$0xff] %vm639_vm4, %v3538_v34 }
0x20d2   : > { %v3540_v24 = vpop.f32.mrf.mxu2 }
0x20d3   : > { %v3541_v20 = vadd.f32 %v4373_v19, %v3540_v24 }
0x20d5   : > { %3594 = vst.msk [vmem:[%s5924_s15 + $0x28] sm:$0x7] %vm3593_vm7, %v3541_v20 }
0x20d6 PF: > { %s24_s12 = sadd.s32 1, %s4534_s12   ;;  %s6008_s25 = sld [smem:[#allocation9_spill]] }
0x20d7   : > { %p21_p2 = scmp.ge.s32.totalorder %s24_s12, 6   ;;  %s6009_s29 = sld [smem:[#allocation14_spill]] }
0x20d8   : > { %s6010_s30 = sld [smem:[#allocation11_spill]]  ;;  %s6013_s27 = smov %s4510_s28 }
0x20d9   : > { %s6011_s10 = sld [smem:[#allocation12_spill]]  ;;  %s6015_s9 = smov %s4530_s11 }
0x20da   : > { %s6012_s3 = sld [smem:[#allocation13_spill]] }
0x20dc   : > { %s6014_s28 = smov %s6008_s25  ;;  %23 = sbr.rel (!%p21_p2) target bundleno = 14 (0xe), region = 173 }
0x20e0   : > { %s6016_s11 = smov %s6012_s3 }
0x20e1   :  { %3624 = vsyncpa [#allocation3], 1 }
0x20e2   :  { %3626 = vsyncpa [#allocation3 + $0x1], 1 }
0x20e3   :  { %3627 = vsyncpa [#allocation5], 1 }
0x20e4   :  { %3629 = vsyncpa [#allocation5 + $0x1], 1 }

</bundles_post_ra>
